<compile_context>
chip_gen: v6e
topology: v6e:2x2x1
jax: 0.10.0
libtpu: 0.0.40
codegen_flags: <defaults>
</compile_context>

<pallas_src>
import functools

import jax
import jax.numpy as jnp
from jax.experimental import pallas as pl
from jax.experimental.pallas import tpu as pltpu

LATENT_DIM = 100
NUM_CLASSES = 10
IN_DIM = LATENT_DIM + NUM_CLASSES       # 110
IN_PAD = 128                            # padded K for layer 1
H1, H2, H3 = 256, 512, 1024
OUT_DIM = 28 * 28                       # 784
OUT_PAD = 896                           # 7 * 128 (lane-dense output)

MAX_TB = 256                            # batch tile


def _generator_kernel(x_ref,
                      w1_ref, b1_ref,
                      w2_ref, b2_ref,
                      w3_ref, b3_ref,
                      w4_ref, b4_ref,
                      out_ref):
    """One batch tile through the full MLP: 3x(matmul+bias+ReLU), matmul+bias+tanh.

    Matmul inputs/weights are bf16 (MXU-native), accumulation and elementwise
    math are f32. Weights are resident in VMEM across the whole grid.
    """
    x = x_ref[...]                                                      # (TB, 128) bf16

    h = jnp.dot(x, w1_ref[...], preferred_element_type=jnp.float32) + b1_ref[...]
    h = jnp.maximum(h, 0.0).astype(jnp.bfloat16)                        # (TB, 256)

    h = jnp.dot(h, w2_ref[...], preferred_element_type=jnp.float32) + b2_ref[...]
    h = jnp.maximum(h, 0.0).astype(jnp.bfloat16)                        # (TB, 512)

    h = jnp.dot(h, w3_ref[...], preferred_element_type=jnp.float32) + b3_ref[...]
    h = jnp.maximum(h, 0.0).astype(jnp.bfloat16)                        # (TB, 1024)

    h = jnp.dot(h, w4_ref[...], preferred_element_type=jnp.float32) + b4_ref[...]
    out_ref[...] = jnp.tanh(h)                                          # (TB, 896) f32


def init_generator_params(key):
    """PyTorch-Linear-like uniform init; weights stored as (in, out), f32."""
    dims = [(IN_DIM, H1), (H1, H2), (H2, H3), (H3, OUT_DIM)]
    params = []
    for (fan_in, fan_out) in dims:
        key, kw, kb = jax.random.split(key, 3)
        bound = 1.0 / jnp.sqrt(jnp.float32(fan_in))
        w = jax.random.uniform(kw, (fan_in, fan_out), jnp.float32, -bound, bound)
        b = jax.random.uniform(kb, (1, fan_out), jnp.float32, -bound, bound)
        params.extend([w, b])
    return tuple(params)


def prepare_kernel_params(params_f32):
    """Pad to 128-aligned K/N and cast weights to bf16 once (not per call)."""
    w1, b1, w2, b2, w3, b3, w4, b4 = params_f32
    w1p = jnp.zeros((IN_PAD, H1), jnp.float32).at[:IN_DIM, :].set(w1)
    w4p = jnp.zeros((H3, OUT_PAD), jnp.float32).at[:, :OUT_DIM].set(w4)
    b4p = jnp.zeros((1, OUT_PAD), jnp.float32).at[:, :OUT_DIM].set(b4)
    return (w1p.astype(jnp.bfloat16), b1,
            w2.astype(jnp.bfloat16), b2,
            w3.astype(jnp.bfloat16), b3,
            w4p.astype(jnp.bfloat16), b4p)


@jax.jit
def generator_forward(z, labels, kparams):
    """z: (B, 100) f32, labels: (B,) int32 -> (B, 1, 28, 28) f32."""
    B = z.shape[0]
    # Glue (one-hot + concat + padding) stays in plain JAX.
    label_onehot = jax.nn.one_hot(labels, NUM_CLASSES, dtype=jnp.float32)   # (B, 10)
    x = jnp.concatenate([z, label_onehot], axis=1)                          # (B, 110)
    x = jnp.pad(x, ((0, 0), (0, IN_PAD - IN_DIM)))                          # (B, 128)

    # Batch tile: multiple of 16 (bf16 sublane), capped at MAX_TB.
    b16 = ((B + 15) // 16) * 16
    tb = min(MAX_TB, b16)
    bp = ((B + tb - 1) // tb) * tb
    x = jnp.pad(x, ((0, bp - B), (0, 0))).astype(jnp.bfloat16)              # (Bp, 128)

    w1, b1, w2, b2, w3, b3, w4, b4 = kparams
    const = lambda i: (0, 0)

    out_pad = pl.pallas_call(
        _generator_kernel,
        out_shape=jax.ShapeDtypeStruct((bp, OUT_PAD), jnp.float32),
        grid_spec=pltpu.PrefetchScalarGridSpec(
            num_scalar_prefetch=0,
            grid=(bp // tb,),
            in_specs=[
                pl.BlockSpec((tb, IN_PAD), lambda i: (i, 0)),   # x tile
                pl.BlockSpec((IN_PAD, H1), const),              # w1 (resident)
                pl.BlockSpec((1, H1), const),                   # b1
                pl.BlockSpec((H1, H2), const),                  # w2
                pl.BlockSpec((1, H2), const),                   # b2
                pl.BlockSpec((H2, H3), const),                  # w3
                pl.BlockSpec((1, H3), const),                   # b3
                pl.BlockSpec((H3, OUT_PAD), const),             # w4
                pl.BlockSpec((1, OUT_PAD), const),              # b4
            ],
            out_specs=pl.BlockSpec((tb, OUT_PAD), lambda i: (i, 0)),
        ),
        compiler_params=pltpu.CompilerParams(
            dimension_semantics=("parallel",),
            vmem_limit_bytes=32 * 1024 * 1024,
        ),
    )(x, w1, b1, w2, b2, w3, b3, w4, b4)

    return out_pad[:B, :OUT_DIM].reshape(B, 1, 28, 28)


def _reference_forward(z, labels, params_f32):
    """Pure-JAX f32 reference matching the PyTorch module."""
    w1, b1, w2, b2, w3, b3, w4, b4 = params_f32
    oh = jax.nn.one_hot(labels, NUM_CLASSES, dtype=jnp.float32)
    x = jnp.concatenate([z, oh], axis=1)
    h = jax.nn.relu(x @ w1 + b1)
    h = jax.nn.relu(h @ w2 + b2)
    h = jax.nn.relu(h @ w3 + b3)
    out = jnp.tanh(h @ w4 + b4)
    return out.reshape(-1, 1, 28, 28)


if __name__ == "__main__":
    key = jax.random.PRNGKey(0)
    k_params, k_z, k_lbl = jax.random.split(key, 3)

    B = 8
    params_f32 = init_generator_params(k_params)
    kparams = prepare_kernel_params(params_f32)

    z = jax.random.normal(k_z, (B, LATENT_DIM), dtype=jnp.float32)
    labels = jax.random.randint(k_lbl, (B,), 0, NUM_CLASSES, dtype=jnp.int32)

    out = generator_forward(z, labels, kparams)
    out = jax.block_until_ready(out)

    assert out.shape == (B, 1, 28, 28), out.shape
    assert out.dtype == jnp.float32, out.dtype

    ref = _reference_forward(z, labels, params_f32)
    # bf16 matmul inputs vs f32 reference -> loosened tolerance.
    assert jnp.allclose(out, ref, atol=2e-2, rtol=0.0), \
        f"mismatch vs reference, max abs err = {jnp.max(jnp.abs(out - ref))}"

    print("KERNEL_OK")
</pallas_src>

<mosaic_0001>
module attributes {stable_mosaic.version = 11 : i64} {
  func.func @_generator_kernel(%arg0: i32, %arg1: memref<16x128xbf16, #tpu.memory_space<vmem>>, %arg2: memref<128x256xbf16, #tpu.memory_space<vmem>>, %arg3: memref<1x256xf32, #tpu.memory_space<vmem>>, %arg4: memref<256x512xbf16, #tpu.memory_space<vmem>>, %arg5: memref<1x512xf32, #tpu.memory_space<vmem>>, %arg6: memref<512x1024xbf16, #tpu.memory_space<vmem>>, %arg7: memref<1x1024xf32, #tpu.memory_space<vmem>>, %arg8: memref<1024x896xbf16, #tpu.memory_space<vmem>>, %arg9: memref<1x896xf32, #tpu.memory_space<vmem>>, %arg10: memref<16x896xf32, #tpu.memory_space<vmem>>) attributes {dimension_semantics = [#tpu.dimension_semantics<parallel>], iteration_bounds = array<i64: 1>, scalar_prefetch = 0 : i64, scratch_operands = 0 : i64, tpu.core_type = #tpu.core_type<tc>, window_params = [{transform_indices = @transform_0, window_bounds = array<i64: 16, 128>}, {pipeline_mode = #tpu.pipeline_mode<synchronous>, transform_indices = @transform_1, window_bounds = array<i64: 128, 256>}, {pipeline_mode = #tpu.pipeline_mode<synchronous>, transform_indices = @transform_2, window_bounds = array<i64: 1, 256>}, {pipeline_mode = #tpu.pipeline_mode<synchronous>, transform_indices = @transform_3, window_bounds = array<i64: 256, 512>}, {pipeline_mode = #tpu.pipeline_mode<synchronous>, transform_indices = @transform_4, window_bounds = array<i64: 1, 512>}, {pipeline_mode = #tpu.pipeline_mode<synchronous>, transform_indices = @transform_5, window_bounds = array<i64: 512, 1024>}, {pipeline_mode = #tpu.pipeline_mode<synchronous>, transform_indices = @transform_6, window_bounds = array<i64: 1, 1024>}, {pipeline_mode = #tpu.pipeline_mode<synchronous>, transform_indices = @transform_7, window_bounds = array<i64: 1024, 896>}, {pipeline_mode = #tpu.pipeline_mode<synchronous>, transform_indices = @transform_8, window_bounds = array<i64: 1, 896>}, {transform_indices = @transform_9, window_bounds = array<i64: 16, 896>}]} {
    %c0 = arith.constant 0 : index
    %c0_0 = arith.constant 0 : index
    %0 = vector.load %arg1[%c0, %c0_0] : memref<16x128xbf16, #tpu.memory_space<vmem>>, vector<16x128xbf16>
    %c0_1 = arith.constant 0 : index
    %c0_2 = arith.constant 0 : index
    %1 = vector.load %arg2[%c0_1, %c0_2] : memref<128x256xbf16, #tpu.memory_space<vmem>>, vector<128x256xbf16>
    %cst = arith.constant dense<0.000000e+00> : vector<16x256xf32>
    %2 = tpu.matmul %0, %1, %cst {dimension_numbers = #tpu.dot_dimension_numbers<[1], [0], [0], [1], [0, 0, 1, 1], [], []>} : vector<16x128xbf16>, vector<128x256xbf16>, vector<16x256xf32> -> vector<16x256xf32>
    %c0_3 = arith.constant 0 : index
    %c0_4 = arith.constant 0 : index
    %3 = vector.load %arg3[%c0_3, %c0_4] : memref<1x256xf32, #tpu.memory_space<vmem>>, vector<1x256xf32>
    %4 = vector.broadcast %3 : vector<1x256xf32> to vector<16x256xf32>
    %5 = arith.addf %2, %4 : vector<16x256xf32>
    %cst_5 = arith.constant 0.000000e+00 : f32
    %6 = vector.broadcast %cst_5 : f32 to vector<16x256xf32>
    %7 = arith.maximumf %5, %6 : vector<16x256xf32>
    %8 = arith.truncf %7 : vector<16x256xf32> to vector<16x256xbf16>
    %c0_6 = arith.constant 0 : index
    %c0_7 = arith.constant 0 : index
    %9 = vector.load %arg4[%c0_6, %c0_7] : memref<256x512xbf16, #tpu.memory_space<vmem>>, vector<256x512xbf16>
    %cst_8 = arith.constant dense<0.000000e+00> : vector<16x512xf32>
    %10 = tpu.matmul %8, %9, %cst_8 {dimension_numbers = #tpu.dot_dimension_numbers<[1], [0], [0], [1], [0, 0, 1, 1], [], []>} : vector<16x256xbf16>, vector<256x512xbf16>, vector<16x512xf32> -> vector<16x512xf32>
    %c0_9 = arith.constant 0 : index
    %c0_10 = arith.constant 0 : index
    %11 = vector.load %arg5[%c0_9, %c0_10] : memref<1x512xf32, #tpu.memory_space<vmem>>, vector<1x512xf32>
    %12 = vector.broadcast %11 : vector<1x512xf32> to vector<16x512xf32>
    %13 = arith.addf %10, %12 : vector<16x512xf32>
    %cst_11 = arith.constant 0.000000e+00 : f32
    %14 = vector.broadcast %cst_11 : f32 to vector<16x512xf32>
    %15 = arith.maximumf %13, %14 : vector<16x512xf32>
    %16 = arith.truncf %15 : vector<16x512xf32> to vector<16x512xbf16>
    %c0_12 = arith.constant 0 : index
    %c0_13 = arith.constant 0 : index
    %17 = vector.load %arg6[%c0_12, %c0_13] : memref<512x1024xbf16, #tpu.memory_space<vmem>>, vector<512x1024xbf16>
    %cst_14 = arith.constant dense<0.000000e+00> : vector<16x1024xf32>
    %18 = tpu.matmul %16, %17, %cst_14 {dimension_numbers = #tpu.dot_dimension_numbers<[1], [0], [0], [1], [0, 0, 1, 1], [], []>} : vector<16x512xbf16>, vector<512x1024xbf16>, vector<16x1024xf32> -> vector<16x1024xf32>
    %c0_15 = arith.constant 0 : index
    %c0_16 = arith.constant 0 : index
    %19 = vector.load %arg7[%c0_15, %c0_16] : memref<1x1024xf32, #tpu.memory_space<vmem>>, vector<1x1024xf32>
    %20 = vector.broadcast %19 : vector<1x1024xf32> to vector<16x1024xf32>
    %21 = arith.addf %18, %20 : vector<16x1024xf32>
    %cst_17 = arith.constant 0.000000e+00 : f32
    %22 = vector.broadcast %cst_17 : f32 to vector<16x1024xf32>
    %23 = arith.maximumf %21, %22 : vector<16x1024xf32>
    %24 = arith.truncf %23 : vector<16x1024xf32> to vector<16x1024xbf16>
    %c0_18 = arith.constant 0 : index
    %c0_19 = arith.constant 0 : index
    %25 = vector.load %arg8[%c0_18, %c0_19] : memref<1024x896xbf16, #tpu.memory_space<vmem>>, vector<1024x896xbf16>
    %cst_20 = arith.constant dense<0.000000e+00> : vector<16x896xf32>
    %26 = tpu.matmul %24, %25, %cst_20 {dimension_numbers = #tpu.dot_dimension_numbers<[1], [0], [0], [1], [0, 0, 1, 1], [], []>} : vector<16x1024xbf16>, vector<1024x896xbf16>, vector<16x896xf32> -> vector<16x896xf32>
    %c0_21 = arith.constant 0 : index
    %c0_22 = arith.constant 0 : index
    %27 = vector.load %arg9[%c0_21, %c0_22] : memref<1x896xf32, #tpu.memory_space<vmem>>, vector<1x896xf32>
    %28 = vector.broadcast %27 : vector<1x896xf32> to vector<16x896xf32>
    %29 = arith.addf %26, %28 : vector<16x896xf32>
    %30 = math.tanh %29 : vector<16x896xf32>
    %c0_23 = arith.constant 0 : index
    %c0_24 = arith.constant 0 : index
    %31 = vector.load %arg10[%c0_23, %c0_24] : memref<16x896xf32, #tpu.memory_space<vmem>>, vector<16x896xf32>
    tpu.vector_store %arg10[%c0_23, %c0_24], %30 {strides = array<i32>} : memref<16x896xf32, #tpu.memory_space<vmem>>, vector<16x896xf32>,
    return
  }
  func.func @transform_0(%arg0: i32) -> (i32, i32) {
    %c0_i32 = arith.constant 0 : i32
    %c0_i32_0 = arith.constant 0 : i32
    return %arg0, %c0_i32 : i32, i32
  }
  func.func @transform_1(%arg0: i32) -> (i32, i32) {
    %c0_i32 = arith.constant 0 : i32
    %c0_i32_0 = arith.constant 0 : i32
    %c0_i32_1 = arith.constant 0 : i32
    return %c0_i32, %c0_i32_0 : i32, i32
  }
  func.func @transform_2(%arg0: i32) -> (i32, i32) {
    %c0_i32 = arith.constant 0 : i32
    %c0_i32_0 = arith.constant 0 : i32
    %c0_i32_1 = arith.constant 0 : i32
    return %c0_i32, %c0_i32_0 : i32, i32
  }
  func.func @transform_3(%arg0: i32) -> (i32, i32) {
    %c0_i32 = arith.constant 0 : i32
    %c0_i32_0 = arith.constant 0 : i32
    %c0_i32_1 = arith.constant 0 : i32
    return %c0_i32, %c0_i32_0 : i32, i32
  }
  func.func @transform_4(%arg0: i32) -> (i32, i32) {
    %c0_i32 = arith.constant 0 : i32
    %c0_i32_0 = arith.constant 0 : i32
    %c0_i32_1 = arith.constant 0 : i32
    return %c0_i32, %c0_i32_0 : i32, i32
  }
  func.func @transform_5(%arg0: i32) -> (i32, i32) {
    %c0_i32 = arith.constant 0 : i32
    %c0_i32_0 = arith.constant 0 : i32
    %c0_i32_1 = arith.constant 0 : i32
    return %c0_i32, %c0_i32_0 : i32, i32
  }
  func.func @transform_6(%arg0: i32) -> (i32, i32) {
    %c0_i32 = arith.constant 0 : i32
    %c0_i32_0 = arith.constant 0 : i32
    %c0_i32_1 = arith.constant 0 : i32
    return %c0_i32, %c0_i32_0 : i32, i32
  }
  func.func @transform_7(%arg0: i32) -> (i32, i32) {
    %c0_i32 = arith.constant 0 : i32
    %c0_i32_0 = arith.constant 0 : i32
    %c0_i32_1 = arith.constant 0 : i32
    return %c0_i32, %c0_i32_0 : i32, i32
  }
  func.func @transform_8(%arg0: i32) -> (i32, i32) {
    %c0_i32 = arith.constant 0 : i32
    %c0_i32_0 = arith.constant 0 : i32
    %c0_i32_1 = arith.constant 0 : i32
    return %c0_i32, %c0_i32_0 : i32, i32
  }
  func.func @transform_9(%arg0: i32) -> (i32, i32) {
    %c0_i32 = arith.constant 0 : i32
    %c0_i32_0 = arith.constant 0 : i32
    return %arg0, %c0_i32 : i32, i32
  }
}

</mosaic_0001>

<bundles_post_ra>
// kernel: generator_forward.1
= control target key start
LH: loop header
LB: loop body
LE: loop exit
PB: predicated region body
PF: predicated region fallthrough
CT: control target
= control target key end

     0   :  { %14 = vsyncpa [#allocation3], 0  ;;  %s8451_s0 = inlined_call_operand.vmem [shape: bf16[16,128], index: 0, kind: input, shape index: {}]   ;;  %s8452_s1 = inlined_call_operand.hbm [shape: bf16[128,256], index: 1, kind: input, shape index: {}]   ;;  %s8453_s2 = inlined_call_operand.hbm [shape: f32[1,256], index: 2, kind: input, shape index: {}]   ;;  %s8454_s3 = inlined_call_operand.hbm [shape: bf16[256,512], index: 3, kind: input, shape index: {}]   ;;  %s8455_s4 = inlined_call_operand.hbm [shape: f32[1,512], index: 4, kind: input, shape index: {}]   ;;  %s8456_s5 = inlined_call_operand.hbm [shape: bf16[512,1024], index: 5, kind: input, shape index: {}]   ;;  %s8457_s6 = inlined_call_operand.hbm [shape: f32[1,1024], index: 6, kind: input, shape index: {}]   ;;  %s8458_s7 = inlined_call_operand.hbm [shape: bf16[1024,896], index: 7, kind: input, shape index: {}]   ;;  %s8459_s8 = inlined_call_operand.hbm [shape: f32[1,896], index: 8, kind: input, shape index: {}]   ;;  %s8460_s9 = inlined_call_operand.vmem [shape: f32[16,896], index: 9, kind: output, shape index: {}]  }
   0x1   :  { %15 = vsyncpa [#allocation5], 0 }
   0x2   :  { %16 = vsyncpa [#allocation8], 0 }
   0x3   :  { %17 = vsyncpa [#allocation11], 0 }
   0x4   :  { %18 = vsyncpa [#allocation14], 0  ;;  %s8168_s30 = smov [#allocation4]   ;;  %s8169_s11 = smov [#allocation7]  }
   0x5   :  { %s39_s10 = sshll.u32 %s8168_s30, 4  ;;  %s61_s12 = sshll.u32 %s8169_s11, 4  ;;  %s40_s10 = int_to_ptr.vmem [resolvable:$true] %s39_s10  ;;  %s62_s12 = int_to_ptr.vmem [resolvable:$true] %s61_s12 }
   0x6   :  { %s8006_s13 = scalar_lea.vmem %s40_s10, 32  ;;  %p8011_p1 = scmp.lt.s32.totalorder %s40_s10, %s40_s10 }
   0x7   :  { %p8007_p0 = scmp.ne.s32.totalorder %s40_s10, %s8006_s13  ;;  %p8012_p2 = scmp.lt.s32.totalorder %s8006_s13, %s8006_s13 }
   0x9   :  { %p8013_p3 = por %p8012_p2, %p8011_p1 }
   0xb   :  { %p8014_p4 = pnand %p8013_p3, %p8007_p0 }
   0xd   :  { %8017 = shalt.err (!%p8014_p4)
}
   0xe   :  { %42 = dma.hbm_to_vmem [thread:$0]  %s8453_s2, 32, %s40_s10, [#allocation5]  }
   0xf   :  { %s8026_s16 = scalar_lea.vmem %s62_s12, 64  ;;  %p8031_p6 = scmp.lt.s32.totalorder %s62_s12, %s62_s12 }
  0x10   :  { %p8027_p5 = scmp.ne.s32.totalorder %s62_s12, %s8026_s16  ;;  %p8032_p7 = scmp.lt.s32.totalorder %s8026_s16, %s8026_s16 }
  0x12   :  { %p8033_p8 = por %p8032_p7, %p8031_p6 }
  0x14   :  { %p8034_p9 = pnand %p8033_p8, %p8027_p5 }
  0x16   :  { %8037 = shalt.err (!%p8034_p9)
}
  0x17   :  { %64 = dma.hbm_to_vmem [thread:$0]  %s8455_s4, 64, %s62_s12, [#allocation8]  }
  0x18   :  { %s8170_s19 = smov [#allocation10]   ;;  %s8171_s21 = smov [#allocation2]  }
  0x19   :  { %s83_s20 = sshll.u32 %s8170_s19, 4  ;;  %s26_s22 = sshll.u32 %s8171_s21, 4  ;;  %s84_s20 = int_to_ptr.vmem [resolvable:$true] %s83_s20  ;;  %s27_s22 = int_to_ptr.vmem [resolvable:$true] %s26_s22 }
  0x1a   :  { %s8046_s23 = scalar_lea.vmem %s84_s20, 128  ;;  %p8051_p11 = scmp.lt.s32.totalorder %s84_s20, %s84_s20 }
  0x1b   :  { %p8047_p10 = scmp.ne.s32.totalorder %s84_s20, %s8046_s23  ;;  %p8052_p12 = scmp.lt.s32.totalorder %s8046_s23, %s8046_s23 }
  0x1d   :  { %p8053_p13 = por %p8052_p12, %p8051_p11 }
  0x1f   :  { %p8054_p0 = pnand %p8053_p13, %p8047_p10 }
  0x21   :  { %8057 = shalt.err (!%p8054_p0)
}
  0x22   :  { %86 = dma.hbm_to_vmem [thread:$0]  %s8457_s6, 128, %s84_s20, [#allocation11]  }
  0x23   :  { %s8066_s25 = scalar_lea.vmem %s27_s22, 2048  ;;  %p8071_p2 = scmp.lt.s32.totalorder %s27_s22, %s27_s22 }
  0x24   :  { %p8067_p1 = scmp.ne.s32.totalorder %s27_s22, %s8066_s25  ;;  %p8072_p3 = scmp.lt.s32.totalorder %s8066_s25, %s8066_s25 }
  0x26   :  { %p8073_p4 = por %p8072_p3, %p8071_p2 }
  0x28   :  { %p8074_p5 = pnand %p8073_p4, %p8067_p1 }
  0x2a   :  { %8077 = shalt.err (!%p8074_p5)
}
  0x2b   :  { %s8172_s4 = smov 128   ;;  %s8173_s26 = smov 8  }
  0x2c   :  { %32 = dma.hbm_to_vmem [thread:$0]  %s8452_s1, 2048, %s27_s22, [#allocation3], %s8172_s4, %s8172_s4, %s8173_s26  }
  0x2d   :  { %s8174_s29 = smov [#allocation6]  }
  0x2e   :  { %s48_s30 = sshll.u32 %s8174_s29, 4  ;;  %s49_s30 = int_to_ptr.vmem [resolvable:$true] %s48_s30 }
  0x2f   :  { %s8086_s10 = scalar_lea.vmem %s49_s30, 8192  ;;  %p8091_p7 = scmp.lt.s32.totalorder %s49_s30, %s49_s30 }
  0x30   :  { %p8087_p6 = scmp.ne.s32.totalorder %s49_s30, %s8086_s10  ;;  %p8092_p8 = scmp.lt.s32.totalorder %s8086_s10, %s8086_s10 }
  0x32   :  { %p8093_p9 = por %p8092_p8, %p8091_p7 }
  0x34   :  { %p8094_p10 = pnand %p8093_p9, %p8087_p6 }
  0x36   :  { %8097 = shalt.err (!%p8094_p10)
}
  0x37   :  { %s8175_s6 = smov 256   ;;  %s8176_s11 = smov 16  }
  0x38   :  { %54 = dma.hbm_to_vmem [thread:$0]  %s8454_s3, 8192, %s49_s30, [#allocation5], %s8175_s6, %s8175_s6, %s8176_s11  }
  0x39   :  { %s8177_s14 = smov [#allocation9]  }
  0x3a   :  { %s70_s15 = sshll.u32 %s8177_s14, 4  ;;  %s71_s15 = int_to_ptr.vmem [resolvable:$true] %s70_s15 }
  0x3b   :  { %s8106_s1 = scalar_lea.vmem %s71_s15, 32768  ;;  %p8111_p12 = scmp.lt.s32.totalorder %s71_s15, %s71_s15 }
  0x3c   :  { %p8107_p11 = scmp.ne.s32.totalorder %s71_s15, %s8106_s1  ;;  %p8112_p13 = scmp.lt.s32.totalorder %s8106_s1, %s8106_s1 }
  0x3e   :  { %p8113_p0 = por %p8112_p13, %p8111_p12 }
  0x40   :  { %p8114_p1 = pnand %p8113_p0, %p8107_p11 }
  0x42   :  { %8117 = shalt.err (!%p8114_p1)
}
  0x43   :  { %s8178_s16 = smov 512   ;;  %s8179_s17 = smov 32  }
  0x44   :  { %76 = dma.hbm_to_vmem [thread:$0]  %s8456_s5, 32768, %s71_s15, [#allocation8], %s8178_s16, %s8178_s16, %s8179_s17  }
  0x45   :  { %s8180_s20 = smov [#allocation12]  }
  0x46   :  { %s92_s21 = sshll.u32 %s8180_s20, 4  ;;  %s93_s21 = int_to_ptr.vmem [resolvable:$true] %s92_s21 }
  0x47   :  { %s8126_s3 = scalar_lea.vmem %s93_s21, 57344  ;;  %p8131_p3 = scmp.lt.s32.totalorder %s93_s21, %s93_s21 }
  0x48   :  { %p8127_p2 = scmp.ne.s32.totalorder %s93_s21, %s8126_s3  ;;  %p8132_p4 = scmp.lt.s32.totalorder %s8126_s3, %s8126_s3 }
  0x4a   :  { %p8133_p5 = por %p8132_p4, %p8131_p3 }
  0x4c   :  { %p8134_p6 = pnand %p8133_p5, %p8127_p2 }
  0x4e   :  { %8137 = shalt.err (!%p8134_p6)
}
  0x4f   :  { %s8181_s22 = smov 448   ;;  %s8182_s23 = smov 28  }
  0x50   :  { %98 = dma.hbm_to_vmem [thread:$0]  %s8458_s7, 57344, %s93_s21, [#allocation11], %s8181_s22, %s8181_s22, %s8182_s23  }
  0x51   :  { %s8183_s25 = smov [#allocation13]  }
  0x52   :  { %s105_s4 = sshll.u32 %s8183_s25, 4  ;;  %s106_s4 = int_to_ptr.vmem [resolvable:$true] %s105_s4 }
  0x53   :  { %s8146_s5 = scalar_lea.vmem %s106_s4, 112  ;;  %s8150_s26 = scalar_lea.vmem %s106_s4, 128 }
  0x54   :  { %p8147_p7 = scmp.ne.s32.totalorder %s106_s4, %s8146_s5  ;;  %p8151_p8 = scmp.lt.s32.totalorder %s106_s4, %s106_s4 }
  0x55   :  { %p8152_p9 = scmp.lt.s32.totalorder %s8150_s26, %s8146_s5 }
  0x57   :  { %p8153_p10 = por %p8152_p9, %p8151_p8 }
  0x59   :  { %p8154_p11 = pnand %p8153_p10, %p8147_p7 }
  0x5b   :  { %8157 = shalt.err (!%p8154_p11)
}
  0x5c   :  { %108 = dma.hbm_to_vmem [thread:$0]  %s8459_s8, 112, %s106_s4, [#allocation14]  }
  0x5d   :  { %8158 = dma.done.wait [#allocation3], 2048  }
  0x5e   :  { %8159 = vsyncadd [#allocation3], 4294965248 }
  0x5f   :  { %8160 = dma.done.wait [#allocation5], 8224  }
  0x60   :  { %8161 = vsyncadd [#allocation5], 4294959072 }
  0x61   :  { %8162 = dma.done.wait [#allocation8], 32832  }
  0x62   :  { %8163 = vsyncadd [#allocation8], 4294934464 }
  0x63   :  { %8164 = dma.done.wait [#allocation11], 57472  }
  0x64   :  { %8165 = vsyncadd [#allocation11], 4294909824 }
  0x65   :  { %8166 = dma.done.wait [#allocation14], 112  }
  0x66   :  { %8167 = vsyncadd [#allocation14], 4294967184  ;;  %v8184_v0 = vmov 0   ;;  %v7209_v1 = vld [vmem:[#allocation2 + $0x74] ss:$8 sps:$4 sm:$0xff]   ;;  %v7233_v29 = vld [vmem:[%s8451_s0] sm:$0xff]  }
  0x67   :  { %282 = vmatprep.mubr.bf16.mxu0 %v8184_v0  ;;  %v7211_v2 = vld [vmem:[#allocation2 + $0x70] ss:$8 sps:$4 sm:$0xff]   ;;  %250 = vmatprep.subr.bf16.mxu0 %v7209_v1  ;;  %v7212_v3 = vld [vmem:[#allocation2 + $0x64] ss:$8 sps:$4 sm:$0xff]   ;;  %v7214_v4 = vld [vmem:[#allocation2 + $0x60] ss:$8 sps:$4 sm:$0xff]  }
  0x68   :  { %251 = vmatpush1.bf16.msra.mxu0 %v7211_v2  ;;  %v7215_v5 = vld [vmem:[#allocation2 + $0x54] ss:$8 sps:$4 sm:$0xff]   ;;  %v7217_v6 = vld [vmem:[#allocation2 + $0x50] ss:$8 sps:$4 sm:$0xff]   ;;  %v7218_v7 = vld [vmem:[#allocation2 + $0x44] ss:$8 sps:$4 sm:$0xff]  }
  0x69   :  { %252 = vmatprep.subr.bf16.mxu0 %v7212_v3  ;;  %v7220_v8 = vld [vmem:[#allocation2 + $0x40] ss:$8 sps:$4 sm:$0xff]   ;;  %v7221_v9 = vld [vmem:[#allocation2 + $0x34] ss:$8 sps:$4 sm:$0xff]   ;;  %v7223_v11 = vld [vmem:[#allocation2 + $0x30] ss:$8 sps:$4 sm:$0xff]  }
  0x6a   :  { %v7234_v10 = vld [vmem:[#allocation6 + $0xe4] ss:$16 sps:$4 sm:$0xff]   ;;  %v7239_v12 = vld [vmem:[#allocation6 + $0xe0] ss:$16 sps:$4 sm:$0xff]   ;;  %v7238_v26 = vld [vmem:[#allocation6 + $0xec] ss:$16 sps:$4 sm:$0xff]  }
  0x6b   :  { %705 = vmatprep.subr.bf16.mxu1 %v7234_v10  ;;  %v7240_v13 = vld [vmem:[#allocation6 + $0xc4] ss:$16 sps:$4 sm:$0xff]   ;;  %v7245_v15 = vld [vmem:[#allocation6 + $0xc0] ss:$16 sps:$4 sm:$0xff]   ;;  %v7236_v30 = vld [vmem:[#allocation6 + $0xe8] ss:$16 sps:$4 sm:$0xff]  }
  0x6c   :  { %253 = vmatpush1.bf16.msra.mxu0 %v7214_v4  ;;  %v7224_v14 = vld [vmem:[#allocation2 + $0x24] ss:$8 sps:$4 sm:$0xff]   ;;  %706 = vmatpush1.bf16.msra.mxu1 %v7239_v12  ;;  %v7226_v17 = vld [vmem:[#allocation2 + $0x20] ss:$8 sps:$4 sm:$0xff]   ;;  %v7227_v18 = vld [vmem:[#allocation2 + $0x14] ss:$8 sps:$4 sm:$0xff]  }
  0x6d   :  { %254 = vmatprep.subr.bf16.mxu0 %v7215_v5  ;;  %707 = vmatprep.subr.bf16.mxu1 %v7240_v13  ;;  %v7246_v16 = vld [vmem:[#allocation6 + $0xa4] ss:$16 sps:$4 sm:$0xff]   ;;  %v7251_v19 = vld [vmem:[#allocation6 + $0xa0] ss:$16 sps:$4 sm:$0xff]   ;;  %v7244_v31 = vld [vmem:[#allocation6 + $0xcc] ss:$16 sps:$4 sm:$0xff]  }
  0x6e   :  { %v7252_v20 = vld [vmem:[#allocation6 + $0x84] ss:$16 sps:$4 sm:$0xff]   ;;  %v7257_v23 = vld [vmem:[#allocation6 + $0x80] ss:$16 sps:$4 sm:$0xff]   ;;  %v7242_v34 = vld [vmem:[#allocation6 + $0xc8] ss:$16 sps:$4 sm:$0xff]  }
  0x6f   :  { %v7229_v21 = vld [vmem:[#allocation2 + $0x10] ss:$8 sps:$4 sm:$0xff]   ;;  %v7230_v22 = vld [vmem:[#allocation2 + $0x4] ss:$8 sps:$4 sm:$0xff]   ;;  %v7232_v25 = vld [vmem:[#allocation2] ss:$8 sps:$4 sm:$0xff]  }
  0x70   :  { %255 = vmatpush1.bf16.msra.mxu0 %v7217_v6  ;;  %708 = vmatpush1.bf16.msra.mxu1 %v7245_v15  ;;  %v7258_v24 = vld [vmem:[#allocation6 + $0x64] ss:$16 sps:$4 sm:$0xff]   ;;  %v7263_v27 = vld [vmem:[#allocation6 + $0x60] ss:$16 sps:$4 sm:$0xff]   ;;  %v7250_v35 = vld [vmem:[#allocation6 + $0xac] ss:$16 sps:$4 sm:$0xff]  }
  0x71   :  { %256 = vmatprep.subr.bf16.mxu0 %v7218_v7  ;;  %709 = vmatprep.subr.bf16.mxu1 %v7246_v16  ;;  %v7264_v28 = vld [vmem:[#allocation6 + $0x44] ss:$16 sps:$4 sm:$0xff]   ;;  %v7269_v32 = vld [vmem:[#allocation6 + $0x40] ss:$16 sps:$4 sm:$0xff]   ;;  %v7248_v38 = vld [vmem:[#allocation6 + $0xa8] ss:$16 sps:$4 sm:$0xff]  }
  0x72   :  { %v7270_v33 = vld [vmem:[#allocation6 + $0x24] ss:$16 sps:$4 sm:$0xff]   ;;  %v7275_v36 = vld [vmem:[#allocation6 + $0x20] ss:$16 sps:$4 sm:$0xff]   ;;  %v7256_v39 = vld [vmem:[#allocation6 + $0x8c] ss:$16 sps:$4 sm:$0xff]  }
  0x73   :  { %v7276_v37 = vld [vmem:[#allocation6 + $0x4] ss:$16 sps:$4 sm:$0xff]   ;;  %v7281_v40 = vld [vmem:[#allocation6] ss:$16 sps:$4 sm:$0xff]   ;;  %v7254_v42 = vld [vmem:[#allocation6 + $0x88] ss:$16 sps:$4 sm:$0xff]  }
  0x74   :  { %257 = vmatpush1.bf16.msra.mxu0 %v7220_v8  ;;  %710 = vmatpush1.bf16.msra.mxu1 %v7251_v19  ;;  %v7282_v41 = vld [vmem:[#allocation6 + $0x1e4] ss:$16 sps:$4 sm:$0xff]   ;;  %v7262_v43 = vld [vmem:[#allocation6 + $0x6c] ss:$16 sps:$4 sm:$0xff]   ;;  %v7287_v44 = vld [vmem:[#allocation6 + $0x1e0] ss:$16 sps:$4 sm:$0xff]  }
  0x75   :  { %258 = vmatprep.subr.bf16.mxu0 %v7221_v9  ;;  %711 = vmatprep.subr.bf16.mxu1 %v7252_v20  ;;  %v7260_v45 = vld [vmem:[#allocation6 + $0x68] ss:$16 sps:$4 sm:$0xff]   ;;  %v7288_v46 = vld [vmem:[#allocation6 + $0x1c4] ss:$16 sps:$4 sm:$0xff]   ;;  %v7268_v47 = vld [vmem:[#allocation6 + $0x4c] ss:$16 sps:$4 sm:$0xff]  }
  0x76   :  { %v7293_v48 = vld [vmem:[#allocation6 + $0x1c0] ss:$16 sps:$4 sm:$0xff]   ;;  %v7294_v49 = vld [vmem:[#allocation6 + $0x1a4] ss:$16 sps:$4 sm:$0xff]   ;;  %v7266_v50 = vld [vmem:[#allocation6 + $0x48] ss:$16 sps:$4 sm:$0xff]  }
  0x77   :  { %v7274_v51 = vld [vmem:[#allocation6 + $0x2c] ss:$16 sps:$4 sm:$0xff]   ;;  %v7299_v52 = vld [vmem:[#allocation6 + $0x1a0] ss:$16 sps:$4 sm:$0xff]   ;;  %v7300_v53 = vld [vmem:[#allocation6 + $0x184] ss:$16 sps:$4 sm:$0xff]  }
  0x78   :  { %259 = vmatpush1.bf16.msra.mxu0 %v7223_v11  ;;  %712 = vmatpush1.bf16.msra.mxu1 %v7257_v23  ;;  %v7272_v54 = vld [vmem:[#allocation6 + $0x28] ss:$16 sps:$4 sm:$0xff]   ;;  %v7280_v55 = vld [vmem:[#allocation6 + $0xc] ss:$16 sps:$4 sm:$0xff]   ;;  %v7305_v56 = vld [vmem:[#allocation6 + $0x180] ss:$16 sps:$4 sm:$0xff]  }
  0x79   :  { %260 = vmatprep.subr.bf16.mxu0 %v7224_v14  ;;  %713 = vmatprep.subr.bf16.mxu1 %v7258_v24  ;;  %v7306_v57 = vld [vmem:[#allocation6 + $0x164] ss:$16 sps:$4 sm:$0xff]   ;;  %v7278_v58 = vld [vmem:[#allocation6 + $0x8] ss:$16 sps:$4 sm:$0xff]   ;;  %v7286_v59 = vld [vmem:[#allocation6 + $0x1ec] ss:$16 sps:$4 sm:$0xff]  }
  0x7a   :  { %v7311_v60 = vld [vmem:[#allocation6 + $0x160] ss:$16 sps:$4 sm:$0xff]   ;;  %v7284_v61 = vld [vmem:[#allocation6 + $0x1e8] ss:$16 sps:$4 sm:$0xff]   ;;  %v7292_v62 = vld [vmem:[#allocation6 + $0x1cc] ss:$16 sps:$4 sm:$0xff]  }
  0x7b   :  { %v7290_v63 = vld [vmem:[#allocation6 + $0x1c8] ss:$16 sps:$4 sm:$0xff]   ;;  %v7298_v0 = vld [vmem:[#allocation6 + $0x1ac] ss:$16 sps:$4 sm:$0xff]   ;;  %v7312_v6 = vld [vmem:[#allocation6 + $0x144] ss:$16 sps:$4 sm:$0xff]  }
  0x7c   :  { %261 = vmatpush1.bf16.msra.mxu0 %v7226_v17  ;;  %714 = vmatpush1.bf16.msra.mxu1 %v7263_v27  ;;  %v7296_v1 = vld [vmem:[#allocation6 + $0x1a8] ss:$16 sps:$4 sm:$0xff]   ;;  %v7304_v2 = vld [vmem:[#allocation6 + $0x18c] ss:$16 sps:$4 sm:$0xff]   ;;  %v7317_v9 = vld [vmem:[#allocation6 + $0x140] ss:$16 sps:$4 sm:$0xff]  }
  0x7d   :  { %262 = vmatprep.subr.bf16.mxu0 %v7227_v18  ;;  %715 = vmatprep.subr.bf16.mxu1 %v7264_v28  ;;  %v7302_v3 = vld [vmem:[#allocation6 + $0x188] ss:$16 sps:$4 sm:$0xff]   ;;  %v7310_v4 = vld [vmem:[#allocation6 + $0x16c] ss:$16 sps:$4 sm:$0xff]   ;;  %v7318_v10 = vld [vmem:[#allocation6 + $0x124] ss:$16 sps:$4 sm:$0xff]  }
  0x7e   :  { %v7308_v5 = vld [vmem:[#allocation6 + $0x168] ss:$16 sps:$4 sm:$0xff]   ;;  %v7316_v7 = vld [vmem:[#allocation6 + $0x14c] ss:$16 sps:$4 sm:$0xff]   ;;  %v7323_v13 = vld [vmem:[#allocation6 + $0x120] ss:$16 sps:$4 sm:$0xff]  }
  0x7f   :  { %v7314_v8 = vld [vmem:[#allocation6 + $0x148] ss:$16 sps:$4 sm:$0xff]   ;;  %v7322_v11 = vld [vmem:[#allocation6 + $0x12c] ss:$16 sps:$4 sm:$0xff]   ;;  %v7324_v14 = vld [vmem:[#allocation6 + $0x104] ss:$16 sps:$4 sm:$0xff]  }
  0x80   :  { %263 = vmatpush1.bf16.msra.mxu0 %v7229_v21  ;;  %716 = vmatpush1.bf16.msra.mxu1 %v7269_v32  ;;  %v7320_v12 = vld [vmem:[#allocation6 + $0x128] ss:$16 sps:$4 sm:$0xff]   ;;  %v7328_v15 = vld [vmem:[#allocation6 + $0x10c] ss:$16 sps:$4 sm:$0xff]   ;;  %v7329_v17 = vld [vmem:[#allocation6 + $0x100] ss:$16 sps:$4 sm:$0xff]  }
  0x81   :  { %264 = vmatprep.subr.bf16.mxu0 %v7230_v22  ;;  %717 = vmatprep.subr.bf16.mxu1 %v7270_v33  ;;  %v7326_v16 = vld [vmem:[#allocation6 + $0x108] ss:$16 sps:$4 sm:$0xff]  }
  0x82   :  { %v859_v18 = vld [vmem:[#allocation9 + $0x1c0] sm:$0xff] }
  0x83   :  { %v863_v19 = vld [vmem:[#allocation9 + $0x1e0] sm:$0xff] }
  0x84   :  { %265 = vmatpush1.bf16.msra.mxu0 %v7232_v25  ;;  %718 = vmatpush1.bf16.msra.mxu1 %v7275_v36  ;;  %v987_v20 = vld [vmem:[#allocation9 + $0x5c0] sm:$0xff]  ;;  %v6456_v21 = vcombine.low %v859_v18, %v863_v19  ;;  %v6457_v22 = vcombine.high %v859_v18, %v863_v19 }
  0x85   :  { %748 = vmatprep.subr.bf16.mxu0 %v7238_v26  ;;  %719 = vmatprep.subr.bf16.mxu1 %v7276_v37  ;;  %v991_v23 = vld [vmem:[#allocation9 + $0x5e0] sm:$0xff]  ;;  %v154_v26 = vlaneseq }
  0x86   :  { %v6584_v24 = vcombine.low %v987_v20, %v991_v23  ;;  %v6585_v25 = vcombine.high %v987_v20, %v991_v23  ;;  %v939_v23 = vld [vmem:[#allocation9 + $0x440] sm:$0xff] }
  0x87   :  { %283 = vmatmul.mubr.bf16.vlgmr.msra.gmra.mxu0 %v7233_v29  ;;  %v8262_v27 = vshrl.u32 %v154_v26, 7  ;;  %v152_v29 = vld [vmem:[#allocation4] sm:$0x3] }
  0x88   :  { %749 = vmatpush1.bf16.msra.mxu0 %v7236_v30  ;;  %720 = vmatpush1.bf16.msra.mxu1 %v7281_v40 }
  0x89   :  { %750 = vmatprep.subr.bf16.mxu0 %v7244_v31  ;;  %721 = vmatprep.subr.bf16.mxu1 %v7282_v41  ;;  %v8265_v28 = vsub.s32 0, %v8262_v27  ;;  %v8268_v30 = vsub.s32 1, %v8262_v27 }
  0x8b   :  { %v157_v31 = vrot.slane %v152_v29, %v8265_v28  ;;  %v161_v33 = vrot.slane %v152_v29, %v8268_v30 }
  0x8c   :  { %751 = vmatpush1.bf16.msra.mxu0 %v7242_v34  ;;  %722 = vmatpush2.bf16.msra.mxu1 %v7287_v44  ;;  %v855_v44 = vld [vmem:[#allocation9 + $0x1a0] sm:$0xff] }
  0x8d   :  { %752 = vmatprep.subr.bf16.mxu0 %v7250_v35  ;;  %723 = vmatprep.subr.bf16.mxu1 %v7288_v46  ;;  %v983_v46 = vld [vmem:[#allocation9 + $0x5a0] sm:$0xff] }
  0x90   :  { %753 = vmatpush1.bf16.msra.mxu0 %v7248_v38  ;;  %724 = vmatpush2.bf16.msra.mxu1 %v7293_v48 }
  0x91   :  { %754 = vmatprep.subr.bf16.mxu0 %v7256_v39  ;;  %725 = vmatprep.subr.bf16.mxu1 %v7294_v49 }
  0x94   :  { %755 = vmatpush1.bf16.msra.mxu0 %v7254_v42  ;;  %726 = vmatpush2.bf16.msra.mxu1 %v7299_v52  ;;  %v971_v52 = vld [vmem:[#allocation9 + $0x540] sm:$0xff] }
  0x95   :  { %756 = vmatprep.subr.bf16.mxu0 %v7262_v43  ;;  %727 = vmatprep.subr.bf16.mxu1 %v7300_v53  ;;  %v851_v43 = vld [vmem:[#allocation9 + $0x180] sm:$0xff] }
  0x96   :  { %v975_v53 = vld [vmem:[#allocation9 + $0x560] sm:$0xff] }
  0x98   :  { %757 = vmatpush1.bf16.msra.mxu0 %v7260_v45  ;;  %728 = vmatpush2.bf16.msra.mxu1 %v7305_v56  ;;  %v979_v45 = vld [vmem:[#allocation9 + $0x580] sm:$0xff] }
  0x99   :  { %758 = vmatprep.subr.bf16.mxu0 %v7268_v47  ;;  %729 = vmatprep.subr.bf16.mxu1 %v7306_v57  ;;  %v6577_v56 = vcombine.high %v979_v45, %v983_v46  ;;  %v6448_v57 = vcombine.low %v851_v43, %v855_v44 }
  0x9c   :  { %759 = vmatpush1.bf16.msra.mxu0 %v7266_v50  ;;  %730 = vmatpush2.bf16.msra.mxu1 %v7311_v60  ;;  %v843_v50 = vld [vmem:[#allocation9 + $0x140] sm:$0xff] }
  0x9d   :  { %760 = vmatprep.subr.bf16.mxu0 %v7274_v51  ;;  %731 = vmatprep.subr.bf16.mxu1 %v7312_v6  ;;  %v847_v51 = vld [vmem:[#allocation9 + $0x160] sm:$0xff] }
  0x9e   :  { %v839_v60 = vld [vmem:[#allocation9 + $0x120] sm:$0xff] }
  0x9f   :  { %v831_v6 = vld [vmem:[#allocation9 + $0xe0] sm:$0xff] }
  0xa0   :  { %761 = vmatpush1.bf16.msra.mxu0 %v7272_v54  ;;  %732 = vmatpush2.bf16.msra.mxu1 %v7317_v9 }
  0xa1   :  { %762 = vmatprep.subr.bf16.mxu0 %v7280_v55  ;;  %733 = vmatprep.subr.bf16.mxu1 %v7318_v10  ;;  %v6449_v55 = vcombine.high %v851_v43, %v855_v44  ;;  %v1055_v43 = vld [vmem:[#allocation9 + $0x7e0] sm:$0xff] }
  0xa4   :  { %763 = vmatpush1.bf16.msra.mxu0 %v7278_v58  ;;  %734 = vmatpush2.bf16.msra.mxu1 %v7323_v13  ;;  %v6576_v58 = vcombine.low %v979_v45, %v983_v46  ;;  %v819_v13 = vld [vmem:[#allocation9 + $0x80] sm:$0xff] }
  0xa5   :  { %764 = vmatprep.subr.bf16.mxu0 %v7286_v59  ;;  %735 = vmatprep.subr.bf16.mxu1 %v7324_v14  ;;  %v835_v59 = vld [vmem:[#allocation9 + $0x100] sm:$0xff] }
  0xa6   :  { %v6432_v9 = vcombine.low %v835_v59, %v839_v60  ;;  %v823_v14 = vld [vmem:[#allocation9 + $0xa0] sm:$0xff] }
  0xa7   :  { %v6417_v19 = vcombine.high %v819_v13, %v823_v14 }
  0xa8   :  { %765 = vmatpush2.bf16.msra.mxu0 %v7284_v61  ;;  %736 = vmatpush2.bf16.msra.mxu1 %v7329_v17  ;;  %v963_v61 = vld [vmem:[#allocation9 + $0x500] sm:$0xff] }
  0xa9   :  { %766 = vmatprep.subr.bf16.mxu0 %v7292_v62  ;;  %2381 = vmatprep.subr.bf16.mxu1 %v6457_v22  ;;  %v967_v62 = vld [vmem:[#allocation9 + $0x520] sm:$0xff] }
  0xaa   :  { %v6560_v10 = vcombine.low %v963_v61, %v967_v62  ;;  %v815_v22 = vld [vmem:[#allocation9 + $0x60] sm:$0xff] }
  0xac   :  { %767 = vmatpush2.bf16.msra.mxu0 %v7290_v63  ;;  %v6441_v63 = vcombine.high %v843_v50, %v847_v51 }
  0xad   :  { %768 = vmatprep.subr.bf16.mxu0 %v7298_v0  ;;  %v6569_v0 = vcombine.high %v971_v52, %v975_v53 }
  0xb0   :  { %769 = vmatpush2.bf16.msra.mxu0 %v7296_v1  ;;  %v6440_v1 = vcombine.low %v843_v50, %v847_v51  ;;  %v1043_v50 = vld [vmem:[#allocation9 + $0x780] sm:$0xff] }
  0xb1   :  { %770 = vmatprep.subr.bf16.mxu0 %v7304_v2  ;;  %v6568_v2 = vcombine.low %v971_v52, %v975_v53  ;;  %v1047_v51 = vld [vmem:[#allocation9 + $0x7a0] sm:$0xff] }
  0xb4   :  { %771 = vmatpush2.bf16.msra.mxu0 %v7302_v3  ;;  %v6433_v3 = vcombine.high %v835_v59, %v839_v60  ;;  %v1039_v59 = vld [vmem:[#allocation9 + $0x760] sm:$0xff] }
  0xb5   :  { %772 = vmatprep.subr.bf16.mxu0 %v7310_v4  ;;  %v6561_v4 = vcombine.high %v963_v61, %v967_v62  ;;  %v6640_v61 = vcombine.low %v1043_v50, %v1047_v51 }
  0xb8   :  { %773 = vmatpush2.bf16.msra.mxu0 %v7308_v5  ;;  %v827_v5 = vld [vmem:[#allocation9 + $0xc0] sm:$0xff] }
  0xb9   :  { %774 = vmatprep.subr.bf16.mxu0 %v7316_v7  ;;  %v955_v7 = vld [vmem:[#allocation9 + $0x4c0] sm:$0xff]  ;;  %v6424_v17 = vcombine.low %v827_v5, %v831_v6 }
  0xbc   :  { %775 = vmatpush2.bf16.msra.mxu0 %v7314_v8  ;;  %v959_v8 = vld [vmem:[#allocation9 + $0x4e0] sm:$0xff] }
  0xbd   :  { %776 = vmatprep.subr.bf16.mxu0 %v7322_v11  ;;  %v6425_v11 = vcombine.high %v827_v5, %v831_v6  ;;  %v6552_v18 = vcombine.low %v955_v7, %v959_v8 }
  0xc0   :  { %777 = vmatpush2.bf16.msra.mxu0 %v7320_v12  ;;  %v6553_v12 = vcombine.high %v955_v7, %v959_v8  ;;  %v891_v8 = vld [vmem:[#allocation9 + $0x2c0] sm:$0xff] }
  0xc1   :  { %778 = vmatprep.subr.bf16.mxu0 %v7328_v15  ;;  %v947_v15 = vld [vmem:[#allocation9 + $0x480] sm:$0xff] }
  0xc4   :  { %779 = vmatpush2.bf16.msra.mxu0 %v7326_v16  ;;  %v951_v16 = vld [vmem:[#allocation9 + $0x4a0] sm:$0xff] }
  0xc5   :  { %2424 = vmatprep.subr.bf16.mxu0 %v6585_v25  ;;  %v6545_v20 = vcombine.high %v947_v15, %v951_v16  ;;  %v6416_v25 = vcombine.low %v819_v13, %v823_v14  ;;  %v6544_v26 = vcombine.low %v947_v15, %v951_v16 }
 0x147   :  { %v284_v32 = vpop.f32.mrf.mxu0 }
 0x148   :  { %v285_v35 = vadd.f32 %v284_v32, %v157_v31  ;;  %v803_v32 = vld [vmem:[#allocation9] sm:$0xff] }
 0x149   :  { %v286_v34 = vpop.f32.mrf.mxu0 }
 0x14a   :  { %v287_v37 = vadd.f32 %v286_v34, %v161_v33  ;;  %v293_v40 = vmax.f32 %v285_v35, 0.0  ;;  %v931_v34 = vld [vmem:[#allocation9 + $0x400] sm:$0xff] }
 0x14b   :  { %v288_v36 = vpop.f32.mrf.mxu0  ;;  %v935_v35 = vld [vmem:[#allocation9 + $0x420] sm:$0xff] }
 0x14c   :  { %v289_v38 = vadd.f32 %v288_v36, %v157_v31  ;;  %v294_v47 = vmax.f32 %v287_v37, 0.0  ;;  %v6528_v45 = vcombine.low %v931_v34, %v935_v35 }
 0x14d   :  { %v290_v39 = vpop.f32.mrf.mxu0 }
 0x14e   :  { %v295_v41 = vmax.f32 %v289_v38, 0.0  ;;  %v291_v42 = vadd.f32 %v290_v39, %v161_v33  ;;  %v807_v33 = vld [vmem:[#allocation9 + $0x20] sm:$0xff]  ;;  %v6529_v39 = vcombine.high %v931_v34, %v935_v35 }
 0x14f   :  { %v6401_v38 = vcombine.high %v803_v32, %v807_v33  ;;  %v6400_v44 = vcombine.low %v803_v32, %v807_v33  ;;  %v1007_v33 = vld [vmem:[#allocation9 + $0x660] sm:$0xff] }
 0x150   :  { %v296_v48 = vmax.f32 %v291_v42, 0.0  ;;  %v297_v54 = vpack.c.bf16 %v295_v41, %v293_v40  ;;  %v923_v40 = vld [vmem:[#allocation9 + $0x3c0] sm:$0xff] }
 0x151   :  { %v927_v41 = vld [vmem:[#allocation9 + $0x3e0] sm:$0xff] }
 0x152   :  { %v298_v49 = vpack.c.bf16 %v296_v48, %v294_v47  ;;  %v1051_v42 = vld [vmem:[#allocation9 + $0x7c0] sm:$0xff]  ;;  %v6521_v46 = vcombine.high %v923_v40, %v927_v41  ;;  %v6520_v52 = vcombine.low %v923_v40, %v927_v41 }
 0x153   :  { %v6649_v47 = vcombine.high %v1051_v42, %v1055_v43  ;;  %v915_v48 = vld [vmem:[#allocation9 + $0x380] sm:$0xff]  ;;  %v6648_v53 = vcombine.low %v1051_v42, %v1055_v43 }
 0x154   :  { %737 = vmatprep.mubr.bf16.mxu1 %v298_v49  ;;  %780 = vmatprep.mubr.bf16.mxu0 %v298_v49  ;;  %v919_v49 = vld [vmem:[#allocation9 + $0x3a0] sm:$0xff] }
 0x155   :  { %738 = vmatmul.mubr.bf16.vlgmr.msra.gmra.mxu1 %v297_v54  ;;  %781 = vmatmul.mubr.bf16.vlgmr.msra.gmra.mxu0 %v297_v54  ;;  %v6513_v54 = vcombine.high %v915_v48, %v919_v49  ;;  %v6512_v60 = vcombine.low %v915_v48, %v919_v49  ;;  %v999_v41 = vld [vmem:[#allocation9 + $0x620] sm:$0xff]  ;;  %v992_v49 = vld [vmem:[#allocation9 + $0x5e8] sm:$0xff] }
 0x156   :  { %2382 = vmatpush1.bf16.msra.mxu1 %v6456_v21  ;;  %2425 = vmatpush1.bf16.msra.mxu0 %v6584_v24  ;;  %v811_v21 = vld [vmem:[#allocation9 + $0x40] sm:$0xff] }
 0x157   :  { %2383 = vmatprep.subr.bf16.mxu1 %v6449_v55  ;;  %2426 = vmatprep.subr.bf16.mxu0 %v6577_v56  ;;  %v943_v24 = vld [vmem:[#allocation9 + $0x460] sm:$0xff]  ;;  %v6409_v29 = vcombine.high %v811_v21, %v815_v22  ;;  %v6408_v36 = vcombine.low %v811_v21, %v815_v22  ;;  %v6641_v55 = vcombine.high %v1043_v50, %v1047_v51 }
 0x158   :  { %v6537_v31 = vcombine.high %v939_v23, %v943_v24  ;;  %v6536_v37 = vcombine.low %v939_v23, %v943_v24  ;;  %v907_v56 = vld [vmem:[#allocation9 + $0x340] sm:$0xff] }
 0x159   :  { %v1015_v22 = vld [vmem:[#allocation9 + $0x6a0] sm:$0xff] }
 0x15a   :  { %2384 = vmatpush1.bf16.msra.mxu1 %v6448_v57  ;;  %2427 = vmatpush1.bf16.msra.mxu0 %v6576_v58  ;;  %v911_v57 = vld [vmem:[#allocation9 + $0x360] sm:$0xff] }
 0x15b   :  { %2385 = vmatprep.subr.bf16.mxu1 %v6441_v63  ;;  %2428 = vmatprep.subr.bf16.mxu0 %v6569_v0  ;;  %v1035_v58 = vld [vmem:[#allocation9 + $0x740] sm:$0xff]  ;;  %v6505_v62 = vcombine.high %v907_v56, %v911_v57 }
 0x15c   :  { %v6633_v63 = vcombine.high %v1035_v58, %v1039_v59  ;;  %v899_v0 = vld [vmem:[#allocation9 + $0x300] sm:$0xff]  ;;  %v6632_v5 = vcombine.low %v1035_v58, %v1039_v59 }
 0x15e   :  { %2386 = vmatpush1.bf16.msra.mxu1 %v6440_v1  ;;  %2429 = vmatpush1.bf16.msra.mxu0 %v6568_v2  ;;  %v903_v1 = vld [vmem:[#allocation9 + $0x320] sm:$0xff] }
 0x15f   :  { %2387 = vmatprep.subr.bf16.mxu1 %v6433_v3  ;;  %2430 = vmatprep.subr.bf16.mxu0 %v6561_v4  ;;  %v1027_v2 = vld [vmem:[#allocation9 + $0x700] sm:$0xff]  ;;  %v6504_v4 = vcombine.low %v907_v56, %v911_v57  ;;  %v6497_v6 = vcombine.high %v899_v0, %v903_v1 }
 0x160   :  { %v1031_v3 = vld [vmem:[#allocation9 + $0x720] sm:$0xff] }
 0x161   :  { %v6625_v7 = vcombine.high %v1027_v2, %v1031_v3  ;;  %v6624_v13 = vcombine.low %v1027_v2, %v1031_v3 }
 0x162   :  { %2388 = vmatpush1.bf16.msra.mxu1 %v6432_v9  ;;  %2431 = vmatpush1.bf16.msra.mxu0 %v6560_v10  ;;  %v895_v9 = vld [vmem:[#allocation9 + $0x2e0] sm:$0xff] }
 0x163   :  { %2389 = vmatprep.subr.bf16.mxu1 %v6425_v11  ;;  %2432 = vmatprep.subr.bf16.mxu0 %v6553_v12  ;;  %v1019_v10 = vld [vmem:[#allocation9 + $0x6c0] sm:$0xff]  ;;  %v6496_v12 = vcombine.low %v899_v0, %v903_v1  ;;  %v6489_v14 = vcombine.high %v891_v8, %v895_v9  ;;  %v6488_v16 = vcombine.low %v891_v8, %v895_v9 }
 0x164   :  { %v1023_v11 = vld [vmem:[#allocation9 + $0x6e0] sm:$0xff] }
 0x165   :  { %v6617_v15 = vcombine.high %v1019_v10, %v1023_v11 }
 0x166   :  { %2390 = vmatpush1.bf16.msra.mxu1 %v6424_v17  ;;  %2433 = vmatpush1.bf16.msra.mxu0 %v6552_v18  ;;  %v6616_v17 = vcombine.low %v1019_v10, %v1023_v11  ;;  %v883_v18 = vld [vmem:[#allocation9 + $0x280] sm:$0xff] }
 0x167   :  { %2391 = vmatprep.subr.bf16.mxu1 %v6417_v19  ;;  %2434 = vmatprep.subr.bf16.mxu0 %v6545_v20  ;;  %v887_v19 = vld [vmem:[#allocation9 + $0x2a0] sm:$0xff] }
 0x168   :  { %v1011_v20 = vld [vmem:[#allocation9 + $0x680] sm:$0xff]  ;;  %v6481_v21 = vcombine.high %v883_v18, %v887_v19  ;;  %v6480_v23 = vcombine.low %v883_v18, %v887_v19  ;;  %v852_v18 = vld [vmem:[#allocation9 + $0x188] sm:$0xff] }
 0x169   :  { %v6608_v24 = vcombine.low %v1011_v20, %v1015_v22 }
 0x16a   :  { %2392 = vmatpush1.bf16.msra.mxu1 %v6416_v25  ;;  %2435 = vmatpush1.bf16.msra.mxu0 %v6544_v26  ;;  %v6609_v25 = vcombine.high %v1011_v20, %v1015_v22  ;;  %v875_v26 = vld [vmem:[#allocation9 + $0x240] sm:$0xff]  ;;  %v980_v22 = vld [vmem:[#allocation9 + $0x588] sm:$0xff] }
 0x16b   :  { %2393 = vmatprep.subr.bf16.mxu1 %v6409_v29  ;;  %2436 = vmatprep.subr.bf16.mxu0 %v6537_v31  ;;  %v879_v29 = vld [vmem:[#allocation9 + $0x260] sm:$0xff] }
 0x16c   :  { %v1003_v31 = vld [vmem:[#allocation9 + $0x640] sm:$0xff]  ;;  %v6473_v32 = vcombine.high %v875_v26, %v879_v29  ;;  %v6472_v34 = vcombine.low %v875_v26, %v879_v29 }
 0x16d   :  { %v6600_v35 = vcombine.low %v1003_v31, %v1007_v33 }
 0x16e   :  { %2394 = vmatpush1.bf16.msra.mxu1 %v6408_v36  ;;  %2437 = vmatpush1.bf16.msra.mxu0 %v6536_v37  ;;  %v6601_v36 = vcombine.high %v1003_v31, %v1007_v33  ;;  %v867_v37 = vld [vmem:[#allocation9 + $0x200] sm:$0xff]  ;;  %v844_v31 = vld [vmem:[#allocation9 + $0x148] sm:$0xff] }
 0x16f   :  { %2395 = vmatprep.subr.bf16.mxu1 %v6401_v38  ;;  %2438 = vmatprep.subr.bf16.mxu0 %v6529_v39  ;;  %v871_v38 = vld [vmem:[#allocation9 + $0x220] sm:$0xff] }
 0x170   :  { %v995_v39 = vld [vmem:[#allocation9 + $0x600] sm:$0xff]  ;;  %v6465_v40 = vcombine.high %v867_v37, %v871_v38  ;;  %v6464_v42 = vcombine.low %v867_v37, %v871_v38 }
 0x171   :  { %v6592_v43 = vcombine.low %v995_v39, %v999_v41 }
 0x172   :  { %2396 = vmatpush1.bf16.msra.mxu1 %v6400_v44  ;;  %2439 = vmatpush1.bf16.msra.mxu0 %v6528_v45  ;;  %v6593_v44 = vcombine.high %v995_v39, %v999_v41  ;;  %v860_v45 = vld [vmem:[#allocation9 + $0x1c8] sm:$0xff] }
 0x173   :  { %2397 = vmatprep.subr.bf16.mxu1 %v6521_v46  ;;  %2440 = vmatprep.subr.bf16.mxu0 %v6649_v47  ;;  %v864_v46 = vld [vmem:[#allocation9 + $0x1e8] sm:$0xff] }
 0x174   :  { %v988_v47 = vld [vmem:[#allocation9 + $0x5c8] sm:$0xff]  ;;  %v6459_v48 = vcombine.high %v860_v45, %v864_v46  ;;  %v6458_v50 = vcombine.low %v860_v45, %v864_v46 }
 0x175   :  { %v6586_v51 = vcombine.low %v988_v47, %v992_v49  ;;  %v836_v41 = vld [vmem:[#allocation9 + $0x108] sm:$0xff] }
 0x176   :  { %2398 = vmatpush2.bf16.msra.mxu1 %v6520_v52  ;;  %2441 = vmatpush2.bf16.msra.mxu0 %v6648_v53  ;;  %v6587_v52 = vcombine.high %v988_v47, %v992_v49  ;;  %v8273_v53 = vsub.s32 3, %v8262_v27  ;;  %v828_v49 = vld [vmem:[#allocation9 + $0xc8] sm:$0xff] }
 0x177   :  { %2399 = vmatprep.subr.bf16.mxu1 %v6513_v54  ;;  %2442 = vmatprep.subr.bf16.mxu0 %v6641_v55  ;;  %v8276_v54 = vsub.s32 2, %v8262_v27  ;;  %v363_v55 = vld [vmem:[#allocation7] sm:$0xf] }
 0x178   :  { %v372_v58 = vrot.slane %v363_v55, %v8268_v30  ;;  %v380_v59 = vrot.slane %v363_v55, %v8273_v53 }
 0x17a   :  { %2400 = vmatpush2.bf16.msra.mxu1 %v6512_v60  ;;  %2443 = vmatpush2.bf16.msra.mxu0 %v6640_v61  ;;  %v368_v60 = vrot.slane %v363_v55, %v8265_v28  ;;  %v376_v61 = vrot.slane %v363_v55, %v8276_v54 }
 0x17b   :  { %2401 = vmatprep.subr.bf16.mxu1 %v6505_v62  ;;  %2444 = vmatprep.subr.bf16.mxu0 %v6633_v63 }
 0x17e   :  { %2402 = vmatpush2.bf16.msra.mxu1 %v6504_v4  ;;  %2445 = vmatpush2.bf16.msra.mxu0 %v6632_v5 }
 0x17f   :  { %2403 = vmatprep.subr.bf16.mxu1 %v6497_v6  ;;  %2446 = vmatprep.subr.bf16.mxu0 %v6625_v7 }
 0x182   :  { %2404 = vmatpush2.bf16.msra.mxu1 %v6496_v12  ;;  %2447 = vmatpush2.bf16.msra.mxu0 %v6624_v13 }
 0x183   :  { %2405 = vmatprep.subr.bf16.mxu1 %v6489_v14  ;;  %2448 = vmatprep.subr.bf16.mxu0 %v6617_v15 }
 0x186   :  { %2406 = vmatpush2.bf16.msra.mxu1 %v6488_v16  ;;  %2449 = vmatpush2.bf16.msra.mxu0 %v6616_v17 }
 0x187   :  { %2407 = vmatprep.subr.bf16.mxu1 %v6481_v21  ;;  %2450 = vmatprep.subr.bf16.mxu0 %v6609_v25  ;;  %v856_v21 = vld [vmem:[#allocation9 + $0x1a8] sm:$0xff] }
 0x188   :  { %v6450_v37 = vcombine.low %v852_v18, %v856_v21 }
 0x18a   :  { %2408 = vmatpush2.bf16.msra.mxu1 %v6480_v23  ;;  %2451 = vmatpush2.bf16.msra.mxu0 %v6608_v24  ;;  %v984_v23 = vld [vmem:[#allocation9 + $0x5a8] sm:$0xff] }
 0x18b   :  { %2409 = vmatprep.subr.bf16.mxu1 %v6473_v32  ;;  %2452 = vmatprep.subr.bf16.mxu0 %v6601_v36  ;;  %v6451_v32 = vcombine.high %v852_v18, %v856_v21  ;;  %v6579_v33 = vcombine.high %v980_v22, %v984_v23  ;;  %v976_v36 = vld [vmem:[#allocation9 + $0x568] sm:$0xff]  ;;  %v6578_v38 = vcombine.low %v980_v22, %v984_v23 }
 0x18c   :  { %v1052_v21 = vld [vmem:[#allocation9 + $0x7c8] sm:$0xff] }
 0x18d   :  { %v1056_v22 = vld [vmem:[#allocation9 + $0x7e8] sm:$0xff] }
 0x18e   :  { %2410 = vmatpush2.bf16.msra.mxu1 %v6472_v34  ;;  %2453 = vmatpush2.bf16.msra.mxu0 %v6600_v35  ;;  %v848_v34 = vld [vmem:[#allocation9 + $0x168] sm:$0xff] }
 0x18f   :  { %2411 = vmatprep.subr.bf16.mxu1 %v6465_v40  ;;  %2454 = vmatprep.subr.bf16.mxu0 %v6593_v44  ;;  %v972_v35 = vld [vmem:[#allocation9 + $0x548] sm:$0xff]  ;;  %v6443_v39 = vcombine.high %v844_v31, %v848_v34  ;;  %v6442_v45 = vcombine.low %v844_v31, %v848_v34 }
 0x190   :  { %v6571_v40 = vcombine.high %v972_v35, %v976_v36  ;;  %v968_v44 = vld [vmem:[#allocation9 + $0x528] sm:$0xff]  ;;  %v6570_v46 = vcombine.low %v972_v35, %v976_v36 }
 0x191   :  { %v916_v34 = vld [vmem:[#allocation9 + $0x388] sm:$0xff] }
 0x192   :  { %2412 = vmatpush2.bf16.msra.mxu1 %v6464_v42  ;;  %2455 = vmatpush2.bf16.msra.mxu0 %v6592_v43  ;;  %v840_v42 = vld [vmem:[#allocation9 + $0x128] sm:$0xff] }
 0x193   :  { %2467 = vmatprep.subr.bf16.mxu1 %v6459_v48  ;;  %2510 = vmatprep.subr.bf16.mxu0 %v6587_v52  ;;  %v964_v43 = vld [vmem:[#allocation9 + $0x508] sm:$0xff]  ;;  %v6435_v47 = vcombine.high %v836_v41, %v840_v42  ;;  %v6434_v55 = vcombine.low %v836_v41, %v840_v42 }
 0x194   :  { %v6563_v48 = vcombine.high %v964_v43, %v968_v44  ;;  %v960_v52 = vld [vmem:[#allocation9 + $0x4e8] sm:$0xff] }
 0x195   :  { %v920_v35 = vld [vmem:[#allocation9 + $0x3a8] sm:$0xff] }
 0x196   :  { %v1044_v36 = vld [vmem:[#allocation9 + $0x788] sm:$0xff] }
 0x197   :  { %v908_v42 = vld [vmem:[#allocation9 + $0x348] sm:$0xff] }
 0x215   :  { %v739_v56 = vpop.f32.mrf.mxu1  ;;  %v782_v57 = vpop.f32.mrf.mxu0 }
 0x216   :  { %v740_v6 = vadd.f32 %v739_v56, %v368_v60  ;;  %v783_v7 = vadd.f32 %v782_v57, %v376_v61  ;;  %v6562_v56 = vcombine.low %v964_v43, %v968_v44  ;;  %v912_v43 = vld [vmem:[#allocation9 + $0x368] sm:$0xff] }
 0x217   :  { %v741_v62 = vpop.f32.mrf.mxu1  ;;  %v784_v63 = vpop.f32.mrf.mxu0  ;;  %v1036_v44 = vld [vmem:[#allocation9 + $0x748] sm:$0xff] }
 0x218   :  { %v742_v2 = vadd.f32 %v741_v62, %v372_v58  ;;  %v785_v3 = vadd.f32 %v784_v63, %v380_v59  ;;  %v791_v19 = vmax.f32 %v740_v6, 0.0  ;;  %v793_v20 = vmax.f32 %v783_v7, 0.0  ;;  %v952_v62 = vld [vmem:[#allocation9 + $0x4a8] sm:$0xff] }
 0x219   :  { %v743_v0 = vpop.f32.mrf.mxu1  ;;  %v786_v1 = vpop.f32.mrf.mxu0  ;;  %v944_v6 = vld [vmem:[#allocation9 + $0x468] sm:$0xff] }
 0x21a   :  { %v744_v4 = vadd.f32 %v743_v0, %v368_v60  ;;  %v787_v5 = vadd.f32 %v786_v1, %v376_v61  ;;  %v792_v14 = vmax.f32 %v742_v2, 0.0  ;;  %v794_v15 = vmax.f32 %v785_v3, 0.0  ;;  %v824_v60 = vld [vmem:[#allocation9 + $0xa8] sm:$0xff] }
 0x21b   :  { %v745_v8 = vpop.f32.mrf.mxu1  ;;  %v788_v9 = vpop.f32.mrf.mxu0  ;;  %v948_v61 = vld [vmem:[#allocation9 + $0x488] sm:$0xff] }
 0x21c   :  { %v746_v10 = vadd.f32 %v745_v8, %v372_v58  ;;  %v789_v11 = vadd.f32 %v788_v9, %v380_v59  ;;  %v795_v12 = vmax.f32 %v744_v4, 0.0  ;;  %v797_v13 = vmax.f32 %v787_v5, 0.0  ;;  %v820_v59 = vld [vmem:[#allocation9 + $0x88] sm:$0xff] }
 0x21d   :  { %v6419_v1 = vcombine.high %v820_v59, %v824_v60  ;;  %v6547_v2 = vcombine.high %v948_v61, %v952_v62  ;;  %v812_v3 = vld [vmem:[#allocation9 + $0x48] sm:$0xff]  ;;  %v6418_v7 = vcombine.low %v820_v59, %v824_v60  ;;  %v6546_v8 = vcombine.low %v948_v61, %v952_v62 }
 0x21e   :  { %v796_v16 = vmax.f32 %v746_v10, 0.0  ;;  %v798_v17 = vmax.f32 %v789_v11, 0.0  ;;  %v8286_v26 = vpack.c.bf16 %v795_v12, %v791_v19  ;;  %v8288_v29 = vpack.c.bf16 %v797_v13, %v793_v20  ;;  %v816_v4 = vld [vmem:[#allocation9 + $0x68] sm:$0xff] }
 0x21f   :  { %v940_v5 = vld [vmem:[#allocation9 + $0x448] sm:$0xff]  ;;  %v6411_v9 = vcombine.high %v812_v3, %v816_v4 }
 0x220   :  { %v8282_v24 = vpack.c.bf16 %v796_v16, %v792_v14  ;;  %v8284_v25 = vpack.c.bf16 %v798_v17, %v794_v15  ;;  %v6539_v10 = vcombine.high %v940_v5, %v944_v6  ;;  %v804_v11 = vld [vmem:[#allocation9 + $0x8] sm:$0xff]  ;;  %v6410_v15 = vcombine.low %v812_v3, %v816_v4 }
 0x221   :  { %v808_v12 = vld [vmem:[#allocation9 + $0x28] sm:$0xff]  ;;  %v6538_v16 = vcombine.low %v940_v5, %v944_v6 }
 0x222   :  { %2413 = vmatprep.mubr.bf16.mxu1 %v8282_v24  ;;  %2456 = vmatprep.mubr.bf16.mxu0 %v8284_v25  ;;  %v932_v13 = vld [vmem:[#allocation9 + $0x408] sm:$0xff]  ;;  %v6403_v17 = vcombine.high %v804_v11, %v808_v12  ;;  %v6402_v23 = vcombine.low %v804_v11, %v808_v12 }
 0x223   :  { %2414 = vmatmul.mubr.bf16.vlgmr.msra.gmra.mxu1 %v8286_v26  ;;  %2457 = vmatmul.mubr.bf16.vlgmr.msra.gmra.mxu0 %v8288_v29  ;;  %v936_v14 = vld [vmem:[#allocation9 + $0x428] sm:$0xff] }
 0x224   :  { %2468 = vmatpush1.bf16.msra.mxu1 %v6458_v50  ;;  %2511 = vmatpush1.bf16.msra.mxu0 %v6586_v51  ;;  %v832_v50 = vld [vmem:[#allocation9 + $0xe8] sm:$0xff]  ;;  %v6531_v18 = vcombine.high %v932_v13, %v936_v14  ;;  %v6530_v31 = vcombine.low %v932_v13, %v936_v14 }
 0x225   :  { %2499 = vmatprep.mubr.bf16.mxu1 %v8282_v24  ;;  %2542 = vmatprep.mubr.bf16.mxu0 %v8284_v25  ;;  %v956_v51 = vld [vmem:[#allocation9 + $0x4c8] sm:$0xff]  ;;  %v6427_v57 = vcombine.high %v828_v49, %v832_v50  ;;  %v6426_v63 = vcombine.low %v828_v49, %v832_v50 }
 0x226   :  { %2469 = vmatprep.subr.bf16.mxu1 %v6451_v32  ;;  %2512 = vmatprep.subr.bf16.mxu0 %v6579_v33  ;;  %v6555_v58 = vcombine.high %v956_v51, %v960_v52  ;;  %v6554_v0 = vcombine.low %v956_v51, %v960_v52  ;;  %v924_v19 = vld [vmem:[#allocation9 + $0x3c8] sm:$0xff]  ;;  %v6651_v33 = vcombine.high %v1052_v21, %v1056_v22 }
 0x227   :  { %v928_v20 = vld [vmem:[#allocation9 + $0x3e8] sm:$0xff] }
 0x228   :  { %2470 = vmatpush1.bf16.msra.mxu1 %v6450_v37  ;;  %2513 = vmatpush1.bf16.msra.mxu0 %v6578_v38  ;;  %v6523_v32 = vcombine.high %v924_v19, %v928_v20  ;;  %v1048_v37 = vld [vmem:[#allocation9 + $0x7a8] sm:$0xff]  ;;  %v6522_v38 = vcombine.low %v924_v19, %v928_v20 }
 0x229   :  { %2471 = vmatprep.subr.bf16.mxu1 %v6443_v39  ;;  %2514 = vmatprep.subr.bf16.mxu0 %v6571_v40  ;;  %v6650_v39 = vcombine.low %v1052_v21, %v1056_v22  ;;  %v6515_v40 = vcombine.high %v916_v34, %v920_v35  ;;  %v6643_v41 = vcombine.high %v1044_v36, %v1048_v37  ;;  %v900_v50 = vld [vmem:[#allocation9 + $0x308] sm:$0xff] }
 0x22a   :  { %v904_v51 = vld [vmem:[#allocation9 + $0x328] sm:$0xff] }
 0x22b   :  { %v1028_v52 = vld [vmem:[#allocation9 + $0x708] sm:$0xff] }
 0x22c   :  { %2472 = vmatpush1.bf16.msra.mxu1 %v6442_v45  ;;  %2515 = vmatpush1.bf16.msra.mxu0 %v6570_v46  ;;  %v1040_v45 = vld [vmem:[#allocation9 + $0x768] sm:$0xff]  ;;  %v6514_v46 = vcombine.low %v916_v34, %v920_v35  ;;  %v861_v35 = vld [vmem:[#allocation9 + $0x1d0] sm:$0xff] }
 0x22d   :  { %2473 = vmatprep.subr.bf16.mxu1 %v6435_v47  ;;  %2516 = vmatprep.subr.bf16.mxu0 %v6563_v48  ;;  %v6642_v47 = vcombine.low %v1044_v36, %v1048_v37  ;;  %v6507_v48 = vcombine.high %v908_v42, %v912_v43  ;;  %v6635_v49 = vcombine.high %v1036_v44, %v1040_v45  ;;  %v892_v60 = vld [vmem:[#allocation9 + $0x2c8] sm:$0xff]  ;;  %v865_v36 = vld [vmem:[#allocation9 + $0x1f0] sm:$0xff] }
 0x22e   :  { %v896_v61 = vld [vmem:[#allocation9 + $0x2e8] sm:$0xff]  ;;  %v989_v37 = vld [vmem:[#allocation9 + $0x5d0] sm:$0xff] }
 0x22f   :  { %v1020_v62 = vld [vmem:[#allocation9 + $0x6c8] sm:$0xff] }
 0x230   :  { %2474 = vmatpush1.bf16.msra.mxu1 %v6434_v55  ;;  %2517 = vmatpush1.bf16.msra.mxu0 %v6562_v56  ;;  %v1032_v55 = vld [vmem:[#allocation9 + $0x728] sm:$0xff]  ;;  %v6506_v56 = vcombine.low %v908_v42, %v912_v43  ;;  %v853_v43 = vld [vmem:[#allocation9 + $0x190] sm:$0xff] }
 0x231   :  { %2475 = vmatprep.subr.bf16.mxu1 %v6427_v57  ;;  %2518 = vmatprep.subr.bf16.mxu0 %v6555_v58  ;;  %v6634_v57 = vcombine.low %v1036_v44, %v1040_v45  ;;  %v6499_v58 = vcombine.high %v900_v50, %v904_v51  ;;  %v6627_v59 = vcombine.high %v1028_v52, %v1032_v55  ;;  %v884_v4 = vld [vmem:[#allocation9 + $0x288] sm:$0xff]  ;;  %v857_v44 = vld [vmem:[#allocation9 + $0x1b0] sm:$0xff] }
 0x232   :  { %v888_v5 = vld [vmem:[#allocation9 + $0x2a8] sm:$0xff]  ;;  %v981_v45 = vld [vmem:[#allocation9 + $0x590] sm:$0xff] }
 0x233   :  { %v1012_v6 = vld [vmem:[#allocation9 + $0x688] sm:$0xff] }
 0x234   :  { %2476 = vmatpush1.bf16.msra.mxu1 %v6426_v63  ;;  %2519 = vmatpush1.bf16.msra.mxu0 %v6554_v0  ;;  %v1024_v63 = vld [vmem:[#allocation9 + $0x6e8] sm:$0xff]  ;;  %v6498_v0 = vcombine.low %v900_v50, %v904_v51  ;;  %v845_v51 = vld [vmem:[#allocation9 + $0x150] sm:$0xff] }
 0x235   :  { %2477 = vmatprep.subr.bf16.mxu1 %v6419_v1  ;;  %2520 = vmatprep.subr.bf16.mxu0 %v6547_v2  ;;  %v6626_v1 = vcombine.low %v1028_v52, %v1032_v55  ;;  %v6491_v2 = vcombine.high %v892_v60, %v896_v61  ;;  %v6619_v3 = vcombine.high %v1020_v62, %v1024_v63  ;;  %v876_v12 = vld [vmem:[#allocation9 + $0x248] sm:$0xff]  ;;  %v849_v52 = vld [vmem:[#allocation9 + $0x170] sm:$0xff] }
 0x236   :  { %v880_v13 = vld [vmem:[#allocation9 + $0x268] sm:$0xff]  ;;  %v973_v55 = vld [vmem:[#allocation9 + $0x550] sm:$0xff] }
 0x237   :  { %v1004_v14 = vld [vmem:[#allocation9 + $0x648] sm:$0xff] }
 0x238   :  { %2478 = vmatpush1.bf16.msra.mxu1 %v6418_v7  ;;  %2521 = vmatpush1.bf16.msra.mxu0 %v6546_v8  ;;  %v1016_v7 = vld [vmem:[#allocation9 + $0x6a8] sm:$0xff]  ;;  %v6490_v8 = vcombine.low %v892_v60, %v896_v61  ;;  %v837_v61 = vld [vmem:[#allocation9 + $0x110] sm:$0xff] }
 0x239   :  { %2479 = vmatprep.subr.bf16.mxu1 %v6411_v9  ;;  %2522 = vmatprep.subr.bf16.mxu0 %v6539_v10  ;;  %v6618_v9 = vcombine.low %v1020_v62, %v1024_v63  ;;  %v6483_v10 = vcombine.high %v884_v4, %v888_v5  ;;  %v6611_v11 = vcombine.high %v1012_v6, %v1016_v7  ;;  %v868_v20 = vld [vmem:[#allocation9 + $0x208] sm:$0xff]  ;;  %v841_v62 = vld [vmem:[#allocation9 + $0x130] sm:$0xff] }
 0x23a   :  { %v872_v21 = vld [vmem:[#allocation9 + $0x228] sm:$0xff]  ;;  %v965_v63 = vld [vmem:[#allocation9 + $0x510] sm:$0xff] }
 0x23b   :  { %v996_v22 = vld [vmem:[#allocation9 + $0x608] sm:$0xff] }
 0x23c   :  { %2480 = vmatpush1.bf16.msra.mxu1 %v6410_v15  ;;  %2523 = vmatpush1.bf16.msra.mxu0 %v6538_v16  ;;  %v1008_v15 = vld [vmem:[#allocation9 + $0x668] sm:$0xff]  ;;  %v6482_v16 = vcombine.low %v884_v4, %v888_v5  ;;  %v829_v5 = vld [vmem:[#allocation9 + $0xd0] sm:$0xff] }
 0x23d   :  { %2481 = vmatprep.subr.bf16.mxu1 %v6403_v17  ;;  %2524 = vmatprep.subr.bf16.mxu0 %v6531_v18  ;;  %v6610_v17 = vcombine.low %v1012_v6, %v1016_v7  ;;  %v6475_v18 = vcombine.high %v876_v12, %v880_v13  ;;  %v6603_v19 = vcombine.high %v1004_v14, %v1008_v15  ;;  %v833_v6 = vld [vmem:[#allocation9 + $0xf0] sm:$0xff] }
 0x23e   :  { %v957_v7 = vld [vmem:[#allocation9 + $0x4d0] sm:$0xff] }
 0x240   :  { %2482 = vmatpush1.bf16.msra.mxu1 %v6402_v23  ;;  %2525 = vmatpush1.bf16.msra.mxu0 %v6530_v31  ;;  %v1000_v23 = vld [vmem:[#allocation9 + $0x628] sm:$0xff]  ;;  %v6474_v31 = vcombine.low %v876_v12, %v880_v13  ;;  %v821_v13 = vld [vmem:[#allocation9 + $0x90] sm:$0xff] }
 0x241   :  { %2483 = vmatprep.subr.bf16.mxu1 %v6523_v32  ;;  %2526 = vmatprep.subr.bf16.mxu0 %v6651_v33  ;;  %v6602_v32 = vcombine.low %v1004_v14, %v1008_v15  ;;  %v6467_v33 = vcombine.high %v868_v20, %v872_v21  ;;  %v6595_v34 = vcombine.high %v996_v22, %v1000_v23  ;;  %v825_v14 = vld [vmem:[#allocation9 + $0xb0] sm:$0xff] }
 0x242   :  { %v949_v15 = vld [vmem:[#allocation9 + $0x490] sm:$0xff] }
 0x244   :  { %2484 = vmatpush2.bf16.msra.mxu1 %v6522_v38  ;;  %2527 = vmatpush2.bf16.msra.mxu0 %v6650_v39  ;;  %v993_v38 = vld [vmem:[#allocation9 + $0x5f0] sm:$0xff]  ;;  %v6466_v39 = vcombine.low %v868_v20, %v872_v21 }
 0x245   :  { %2485 = vmatprep.subr.bf16.mxu1 %v6515_v40  ;;  %2528 = vmatprep.subr.bf16.mxu0 %v6643_v41  ;;  %v6594_v40 = vcombine.low %v996_v22, %v1000_v23  ;;  %v6461_v41 = vcombine.high %v861_v35, %v865_v36  ;;  %v6589_v42 = vcombine.high %v989_v37, %v993_v38  ;;  %v813_v21 = vld [vmem:[#allocation9 + $0x50] sm:$0xff] }
 0x246   :  { %v817_v22 = vld [vmem:[#allocation9 + $0x70] sm:$0xff] }
 0x247   :  { %v941_v23 = vld [vmem:[#allocation9 + $0x450] sm:$0xff] }
 0x248   :  { %2486 = vmatpush2.bf16.msra.mxu1 %v6514_v46  ;;  %2529 = vmatpush2.bf16.msra.mxu0 %v6642_v47  ;;  %v985_v46 = vld [vmem:[#allocation9 + $0x5b0] sm:$0xff]  ;;  %v6460_v47 = vcombine.low %v861_v35, %v865_v36 }
 0x249   :  { %2487 = vmatprep.subr.bf16.mxu1 %v6507_v48  ;;  %2530 = vmatprep.subr.bf16.mxu0 %v6635_v49  ;;  %v6588_v48 = vcombine.low %v989_v37, %v993_v38  ;;  %v6453_v49 = vcombine.high %v853_v43, %v857_v44  ;;  %v6581_v50 = vcombine.high %v981_v45, %v985_v46  ;;  %v805_v36 = vld [vmem:[#allocation9 + $0x10] sm:$0xff] }
 0x24a   :  { %v809_v37 = vld [vmem:[#allocation9 + $0x30] sm:$0xff] }
 0x24b   :  { %v933_v38 = vld [vmem:[#allocation9 + $0x410] sm:$0xff] }
 0x24c   :  { %2488 = vmatpush2.bf16.msra.mxu1 %v6506_v56  ;;  %2531 = vmatpush2.bf16.msra.mxu0 %v6634_v57  ;;  %v977_v56 = vld [vmem:[#allocation9 + $0x570] sm:$0xff]  ;;  %v6452_v57 = vcombine.low %v853_v43, %v857_v44 }
 0x24d   :  { %2489 = vmatprep.subr.bf16.mxu1 %v6499_v58  ;;  %2532 = vmatprep.subr.bf16.mxu0 %v6627_v59  ;;  %v6580_v58 = vcombine.low %v981_v45, %v985_v46  ;;  %v6445_v59 = vcombine.high %v845_v51, %v849_v52  ;;  %v6573_v60 = vcombine.high %v973_v55, %v977_v56  ;;  %v925_v44 = vld [vmem:[#allocation9 + $0x3d0] sm:$0xff] }
 0x24e   :  { %v929_v45 = vld [vmem:[#allocation9 + $0x3f0] sm:$0xff] }
 0x24f   :  { %v1053_v46 = vld [vmem:[#allocation9 + $0x7d0] sm:$0xff] }
 0x250   :  { %2490 = vmatpush2.bf16.msra.mxu1 %v6498_v0  ;;  %2533 = vmatpush2.bf16.msra.mxu0 %v6626_v1  ;;  %v969_v0 = vld [vmem:[#allocation9 + $0x530] sm:$0xff]  ;;  %v6444_v1 = vcombine.low %v845_v51, %v849_v52 }
 0x251   :  { %2491 = vmatprep.subr.bf16.mxu1 %v6491_v2  ;;  %2534 = vmatprep.subr.bf16.mxu0 %v6619_v3  ;;  %v6572_v2 = vcombine.low %v973_v55, %v977_v56  ;;  %v6437_v3 = vcombine.high %v837_v61, %v841_v62  ;;  %v6565_v4 = vcombine.high %v965_v63, %v969_v0  ;;  %v917_v52 = vld [vmem:[#allocation9 + $0x390] sm:$0xff] }
 0x252   :  { %v921_v55 = vld [vmem:[#allocation9 + $0x3b0] sm:$0xff] }
 0x253   :  { %v1045_v56 = vld [vmem:[#allocation9 + $0x790] sm:$0xff] }
 0x254   :  { %2492 = vmatpush2.bf16.msra.mxu1 %v6490_v8  ;;  %2535 = vmatpush2.bf16.msra.mxu0 %v6618_v9  ;;  %v961_v8 = vld [vmem:[#allocation9 + $0x4f0] sm:$0xff]  ;;  %v6436_v9 = vcombine.low %v837_v61, %v841_v62 }
 0x255   :  { %2493 = vmatprep.subr.bf16.mxu1 %v6483_v10  ;;  %2536 = vmatprep.subr.bf16.mxu0 %v6611_v11  ;;  %v6564_v10 = vcombine.low %v965_v63, %v969_v0  ;;  %v6429_v11 = vcombine.high %v829_v5, %v833_v6  ;;  %v6557_v12 = vcombine.high %v957_v7, %v961_v8  ;;  %v909_v62 = vld [vmem:[#allocation9 + $0x350] sm:$0xff] }
 0x256   :  { %v913_v63 = vld [vmem:[#allocation9 + $0x370] sm:$0xff] }
 0x257   :  { %v1037_v0 = vld [vmem:[#allocation9 + $0x750] sm:$0xff] }
 0x258   :  { %2494 = vmatpush2.bf16.msra.mxu1 %v6482_v16  ;;  %2537 = vmatpush2.bf16.msra.mxu0 %v6610_v17  ;;  %v953_v16 = vld [vmem:[#allocation9 + $0x4b0] sm:$0xff]  ;;  %v6428_v17 = vcombine.low %v829_v5, %v833_v6 }
 0x259   :  { %2495 = vmatprep.subr.bf16.mxu1 %v6475_v18  ;;  %2538 = vmatprep.subr.bf16.mxu0 %v6603_v19  ;;  %v6556_v18 = vcombine.low %v957_v7, %v961_v8  ;;  %v6421_v19 = vcombine.high %v821_v13, %v825_v14  ;;  %v6549_v20 = vcombine.high %v949_v15, %v953_v16  ;;  %v901_v6 = vld [vmem:[#allocation9 + $0x310] sm:$0xff] }
 0x25a   :  { %v905_v7 = vld [vmem:[#allocation9 + $0x330] sm:$0xff] }
 0x25b   :  { %v1029_v8 = vld [vmem:[#allocation9 + $0x710] sm:$0xff] }
 0x25c   :  { %2496 = vmatpush2.bf16.msra.mxu1 %v6474_v31  ;;  %2539 = vmatpush2.bf16.msra.mxu0 %v6602_v32  ;;  %v945_v31 = vld [vmem:[#allocation9 + $0x470] sm:$0xff]  ;;  %v6420_v32 = vcombine.low %v821_v13, %v825_v14 }
 0x25d   :  { %2497 = vmatprep.subr.bf16.mxu1 %v6467_v33  ;;  %2540 = vmatprep.subr.bf16.mxu0 %v6595_v34  ;;  %v6548_v33 = vcombine.low %v949_v15, %v953_v16  ;;  %v6413_v34 = vcombine.high %v813_v21, %v817_v22  ;;  %v6541_v35 = vcombine.high %v941_v23, %v945_v31  ;;  %v893_v14 = vld [vmem:[#allocation9 + $0x2d0] sm:$0xff] }
 0x25e   :  { %v897_v15 = vld [vmem:[#allocation9 + $0x2f0] sm:$0xff] }
 0x25f   :  { %v1021_v16 = vld [vmem:[#allocation9 + $0x6d0] sm:$0xff] }
 0x260   :  { %2498 = vmatpush2.bf16.msra.mxu1 %v6466_v39  ;;  %2541 = vmatpush2.bf16.msra.mxu0 %v6594_v40  ;;  %v937_v39 = vld [vmem:[#allocation9 + $0x430] sm:$0xff]  ;;  %v6412_v40 = vcombine.low %v813_v21, %v817_v22 }
 0x261   :  { %2553 = vmatprep.subr.bf16.mxu1 %v6461_v41  ;;  %2596 = vmatprep.subr.bf16.mxu0 %v6589_v42  ;;  %v6540_v41 = vcombine.low %v941_v23, %v945_v31  ;;  %v6405_v42 = vcombine.high %v805_v36, %v809_v37  ;;  %v6533_v43 = vcombine.high %v933_v38, %v937_v39  ;;  %v885_v22 = vld [vmem:[#allocation9 + $0x290] sm:$0xff] }
 0x262   :  { %v889_v23 = vld [vmem:[#allocation9 + $0x2b0] sm:$0xff] }
 0x263   :  { %2500 = vmatmul.mubr.bf16.vlgmr.msra.gmra.mxu1 %v8286_v26  ;;  %2543 = vmatmul.mubr.bf16.vlgmr.msra.gmra.mxu0 %v8288_v29  ;;  %v1013_v31 = vld [vmem:[#allocation9 + $0x690] sm:$0xff] }
 0x264   :  { %2554 = vmatpush1.bf16.msra.mxu1 %v6460_v47  ;;  %2585 = vmatprep.mubr.bf16.mxu1 %v8282_v24  ;;  %v1057_v47 = vld [vmem:[#allocation9 + $0x7f0] sm:$0xff] }
 0x265   :  { %2597 = vmatpush1.bf16.msra.mxu0 %v6588_v48  ;;  %2628 = vmatprep.mubr.bf16.mxu0 %v8284_v25  ;;  %v6404_v48 = vcombine.low %v805_v36, %v809_v37  ;;  %v6653_v51 = vcombine.high %v1053_v46, %v1057_v47  ;;  %v877_v37 = vld [vmem:[#allocation9 + $0x250] sm:$0xff] }
 0x266   :  { %2555 = vmatprep.subr.bf16.mxu1 %v6453_v49  ;;  %2598 = vmatprep.subr.bf16.mxu0 %v6581_v50  ;;  %v6532_v49 = vcombine.low %v933_v38, %v937_v39  ;;  %v6525_v50 = vcombine.high %v925_v44, %v929_v45  ;;  %v881_v38 = vld [vmem:[#allocation9 + $0x270] sm:$0xff] }
 0x267   :  { %v1005_v39 = vld [vmem:[#allocation9 + $0x650] sm:$0xff] }
 0x268   :  { %2556 = vmatpush1.bf16.msra.mxu1 %v6452_v57  ;;  %v1049_v57 = vld [vmem:[#allocation9 + $0x7b0] sm:$0xff] }
 0x269   :  { %2599 = vmatpush1.bf16.msra.mxu0 %v6580_v58  ;;  %2557 = vmatprep.subr.bf16.mxu1 %v6445_v59  ;;  %v6524_v58 = vcombine.low %v925_v44, %v929_v45  ;;  %v6652_v59 = vcombine.low %v1053_v46, %v1057_v47  ;;  %v6645_v61 = vcombine.high %v1045_v56, %v1049_v57  ;;  %v869_v45 = vld [vmem:[#allocation9 + $0x210] sm:$0xff] }
 0x26a   :  { %2600 = vmatprep.subr.bf16.mxu0 %v6573_v60  ;;  %v6517_v60 = vcombine.high %v917_v52, %v921_v55  ;;  %v873_v46 = vld [vmem:[#allocation9 + $0x230] sm:$0xff] }
 0x26b   :  { %v997_v47 = vld [vmem:[#allocation9 + $0x610] sm:$0xff] }
 0x26c   :  { %2558 = vmatpush1.bf16.msra.mxu1 %v6444_v1  ;;  %v1041_v1 = vld [vmem:[#allocation9 + $0x770] sm:$0xff] }
 0x26d   :  { %2601 = vmatpush1.bf16.msra.mxu0 %v6572_v2  ;;  %2559 = vmatprep.subr.bf16.mxu1 %v6437_v3  ;;  %v6516_v2 = vcombine.low %v917_v52, %v921_v55  ;;  %v6644_v3 = vcombine.low %v1045_v56, %v1049_v57  ;;  %v6637_v5 = vcombine.high %v1037_v0, %v1041_v1  ;;  %v862_v55 = vld [vmem:[#allocation9 + $0x1d8] sm:$0xff] }
 0x26e   :  { %2602 = vmatprep.subr.bf16.mxu0 %v6565_v4  ;;  %v6509_v4 = vcombine.high %v909_v62, %v913_v63  ;;  %v866_v56 = vld [vmem:[#allocation9 + $0x1f8] sm:$0xff] }
 0x26f   :  { %v990_v57 = vld [vmem:[#allocation9 + $0x5d8] sm:$0xff] }
 0x270   :  { %2560 = vmatpush1.bf16.msra.mxu1 %v6436_v9  ;;  %v1033_v9 = vld [vmem:[#allocation9 + $0x730] sm:$0xff] }
 0x271   :  { %2603 = vmatpush1.bf16.msra.mxu0 %v6564_v10  ;;  %2561 = vmatprep.subr.bf16.mxu1 %v6429_v11  ;;  %v6508_v10 = vcombine.low %v909_v62, %v913_v63  ;;  %v6636_v11 = vcombine.low %v1037_v0, %v1041_v1  ;;  %v6629_v13 = vcombine.high %v1029_v8, %v1033_v9  ;;  %v854_v63 = vld [vmem:[#allocation9 + $0x198] sm:$0xff] }
 0x272   :  { %2604 = vmatprep.subr.bf16.mxu0 %v6557_v12  ;;  %v6501_v12 = vcombine.high %v901_v6, %v905_v7  ;;  %v858_v0 = vld [vmem:[#allocation9 + $0x1b8] sm:$0xff]  ;;  %v6462_v1 = vcombine.low %v862_v55, %v866_v56 }
 0x274   :  { %2562 = vmatpush1.bf16.msra.mxu1 %v6428_v17  ;;  %v1025_v17 = vld [vmem:[#allocation9 + $0x6f0] sm:$0xff] }
 0x275   :  { %2605 = vmatpush1.bf16.msra.mxu0 %v6556_v18  ;;  %2563 = vmatprep.subr.bf16.mxu1 %v6421_v19  ;;  %v6500_v18 = vcombine.low %v901_v6, %v905_v7  ;;  %v6628_v19 = vcombine.low %v1029_v8, %v1033_v9  ;;  %v6621_v21 = vcombine.high %v1021_v16, %v1025_v17  ;;  %v846_v6 = vld [vmem:[#allocation9 + $0x158] sm:$0xff] }
 0x276   :  { %2606 = vmatprep.subr.bf16.mxu0 %v6549_v20  ;;  %v6493_v20 = vcombine.high %v893_v14, %v897_v15  ;;  %v850_v7 = vld [vmem:[#allocation9 + $0x178] sm:$0xff] }
 0x277   :  { %v974_v9 = vld [vmem:[#allocation9 + $0x558] sm:$0xff] }
 0x278   :  { %2564 = vmatpush1.bf16.msra.mxu1 %v6420_v32  ;;  %v1017_v32 = vld [vmem:[#allocation9 + $0x6b0] sm:$0xff] }
 0x279   :  { %2607 = vmatpush1.bf16.msra.mxu0 %v6548_v33  ;;  %2565 = vmatprep.subr.bf16.mxu1 %v6413_v34  ;;  %v6492_v33 = vcombine.low %v893_v14, %v897_v15  ;;  %v6620_v34 = vcombine.low %v1021_v16, %v1025_v17  ;;  %v6613_v36 = vcombine.high %v1013_v31, %v1017_v32  ;;  %v838_v15 = vld [vmem:[#allocation9 + $0x118] sm:$0xff] }
 0x27a   :  { %2608 = vmatprep.subr.bf16.mxu0 %v6541_v35  ;;  %v6485_v35 = vcombine.high %v885_v22, %v889_v23  ;;  %v842_v16 = vld [vmem:[#allocation9 + $0x138] sm:$0xff] }
 0x27b   :  { %v966_v17 = vld [vmem:[#allocation9 + $0x518] sm:$0xff] }
 0x27c   :  { %2566 = vmatpush1.bf16.msra.mxu1 %v6412_v40  ;;  %v1009_v40 = vld [vmem:[#allocation9 + $0x670] sm:$0xff] }
 0x27d   :  { %2609 = vmatpush1.bf16.msra.mxu0 %v6540_v41  ;;  %2567 = vmatprep.subr.bf16.mxu1 %v6405_v42  ;;  %v6484_v41 = vcombine.low %v885_v22, %v889_v23  ;;  %v6612_v42 = vcombine.low %v1013_v31, %v1017_v32  ;;  %v6605_v44 = vcombine.high %v1005_v39, %v1009_v40  ;;  %v830_v22 = vld [vmem:[#allocation9 + $0xd8] sm:$0xff] }
 0x27e   :  { %2610 = vmatprep.subr.bf16.mxu0 %v6533_v43  ;;  %v6477_v43 = vcombine.high %v877_v37, %v881_v38  ;;  %v834_v23 = vld [vmem:[#allocation9 + $0xf8] sm:$0xff] }
 0x27f   :  { %v958_v31 = vld [vmem:[#allocation9 + $0x4d8] sm:$0xff] }
 0x280   :  { %2568 = vmatpush1.bf16.msra.mxu1 %v6404_v48  ;;  %v1001_v48 = vld [vmem:[#allocation9 + $0x630] sm:$0xff]  ;;  %v962_v32 = vld [vmem:[#allocation9 + $0x4f8] sm:$0xff] }
 0x281   :  { %2611 = vmatpush1.bf16.msra.mxu0 %v6532_v49  ;;  %2569 = vmatprep.subr.bf16.mxu1 %v6525_v50  ;;  %v6476_v49 = vcombine.low %v877_v37, %v881_v38  ;;  %v6604_v50 = vcombine.low %v1005_v39, %v1009_v40  ;;  %v6597_v52 = vcombine.high %v997_v47, %v1001_v48  ;;  %v826_v37 = vld [vmem:[#allocation9 + $0xb8] sm:$0xff] }
 0x282   :  { %2612 = vmatprep.subr.bf16.mxu0 %v6653_v51  ;;  %v6469_v51 = vcombine.high %v869_v45, %v873_v46  ;;  %v950_v38 = vld [vmem:[#allocation9 + $0x498] sm:$0xff]  ;;  %v6430_v40 = vcombine.low %v830_v22, %v834_v23 }
 0x283   :  { %v954_v39 = vld [vmem:[#allocation9 + $0x4b8] sm:$0xff] }
 0x284   :  { %2570 = vmatpush2.bf16.msra.mxu1 %v6524_v58  ;;  %v994_v58 = vld [vmem:[#allocation9 + $0x5f8] sm:$0xff] }
 0x285   :  { %2613 = vmatpush2.bf16.msra.mxu0 %v6652_v59  ;;  %2571 = vmatprep.subr.bf16.mxu1 %v6517_v60  ;;  %v6468_v59 = vcombine.low %v869_v45, %v873_v46  ;;  %v6596_v60 = vcombine.low %v997_v47, %v1001_v48  ;;  %v6591_v62 = vcombine.high %v990_v57, %v994_v58  ;;  %v818_v45 = vld [vmem:[#allocation9 + $0x78] sm:$0xff] }
 0x286   :  { %2614 = vmatprep.subr.bf16.mxu0 %v6645_v61  ;;  %v6463_v61 = vcombine.high %v862_v55, %v866_v56  ;;  %v942_v46 = vld [vmem:[#allocation9 + $0x458] sm:$0xff] }
 0x287   :  { %v946_v47 = vld [vmem:[#allocation9 + $0x478] sm:$0xff] }
 0x288   :  { %2572 = vmatpush2.bf16.msra.mxu1 %v6516_v2  ;;  %v982_v2 = vld [vmem:[#allocation9 + $0x598] sm:$0xff] }
 0x289   :  { %2615 = vmatpush2.bf16.msra.mxu0 %v6644_v3  ;;  %2573 = vmatprep.subr.bf16.mxu1 %v6509_v4  ;;  %v986_v3 = vld [vmem:[#allocation9 + $0x5b8] sm:$0xff]  ;;  %v6590_v4 = vcombine.low %v990_v57, %v994_v58 }
 0x28a   :  { %2616 = vmatprep.subr.bf16.mxu0 %v6637_v5  ;;  %v6455_v5 = vcombine.high %v854_v63, %v858_v0  ;;  %v6583_v8 = vcombine.high %v982_v2, %v986_v3  ;;  %v810_v55 = vld [vmem:[#allocation9 + $0x38] sm:$0xff] }
 0x28b   :  { %v934_v56 = vld [vmem:[#allocation9 + $0x418] sm:$0xff] }
 0x28c   :  { %2574 = vmatpush2.bf16.msra.mxu1 %v6508_v10  ;;  %v978_v10 = vld [vmem:[#allocation9 + $0x578] sm:$0xff] }
 0x28d   :  { %2617 = vmatpush2.bf16.msra.mxu0 %v6636_v11  ;;  %2575 = vmatprep.subr.bf16.mxu1 %v6501_v12  ;;  %v6454_v11 = vcombine.low %v854_v63, %v858_v0  ;;  %v6582_v12 = vcombine.low %v982_v2, %v986_v3  ;;  %v6575_v14 = vcombine.high %v974_v9, %v978_v10  ;;  %v938_v57 = vld [vmem:[#allocation9 + $0x438] sm:$0xff] }
 0x28e   :  { %2618 = vmatprep.subr.bf16.mxu0 %v6629_v13  ;;  %v6447_v13 = vcombine.high %v846_v6, %v850_v7  ;;  %v930_v63 = vld [vmem:[#allocation9 + $0x3f8] sm:$0xff]  ;;  %v6534_v3 = vcombine.low %v934_v56, %v938_v57 }
 0x28f   :  { %v1054_v0 = vld [vmem:[#allocation9 + $0x7d8] sm:$0xff] }
 0x290   :  { %2576 = vmatpush2.bf16.msra.mxu1 %v6500_v18  ;;  %v970_v18 = vld [vmem:[#allocation9 + $0x538] sm:$0xff] }
 0x291   :  { %2619 = vmatpush2.bf16.msra.mxu0 %v6628_v19  ;;  %2577 = vmatprep.subr.bf16.mxu1 %v6493_v20  ;;  %v6446_v19 = vcombine.low %v846_v6, %v850_v7  ;;  %v6574_v20 = vcombine.low %v974_v9, %v978_v10  ;;  %v918_v6 = vld [vmem:[#allocation9 + $0x398] sm:$0xff] }
 0x292   :  { %2620 = vmatprep.subr.bf16.mxu0 %v6621_v21  ;;  %v6439_v21 = vcombine.high %v838_v15, %v842_v16  ;;  %v922_v7 = vld [vmem:[#allocation9 + $0x3b8] sm:$0xff] }
 0x293   :  { %v1050_v9 = vld [vmem:[#allocation9 + $0x7b8] sm:$0xff] }
 0x294   :  { %2578 = vmatpush2.bf16.msra.mxu1 %v6492_v33  ;;  %v6566_v33 = vcombine.low %v966_v17, %v970_v18 }
 0x295   :  { %2621 = vmatpush2.bf16.msra.mxu0 %v6620_v34  ;;  %2579 = vmatprep.subr.bf16.mxu1 %v6485_v35  ;;  %v6431_v34 = vcombine.high %v830_v22, %v834_v23  ;;  %v6559_v35 = vcombine.high %v958_v31, %v962_v32  ;;  %v906_v22 = vld [vmem:[#allocation9 + $0x338] sm:$0xff] }
 0x296   :  { %2622 = vmatprep.subr.bf16.mxu0 %v6613_v36  ;;  %v822_v36 = vld [vmem:[#allocation9 + $0x98] sm:$0xff] }
 0x297   :  { %v6422_v48 = vcombine.low %v822_v36, %v826_v37  ;;  %v1030_v23 = vld [vmem:[#allocation9 + $0x718] sm:$0xff] }
 0x298   :  { %2580 = vmatpush2.bf16.msra.mxu1 %v6484_v41  ;;  %v6558_v41 = vcombine.low %v958_v31, %v962_v32  ;;  %v1034_v31 = vld [vmem:[#allocation9 + $0x738] sm:$0xff] }
 0x299   :  { %2623 = vmatpush2.bf16.msra.mxu0 %v6612_v42  ;;  %2581 = vmatprep.subr.bf16.mxu1 %v6477_v43  ;;  %v6423_v42 = vcombine.high %v822_v36, %v826_v37  ;;  %v6551_v43 = vcombine.high %v950_v38, %v954_v39  ;;  %v898_v36 = vld [vmem:[#allocation9 + $0x2f8] sm:$0xff] }
 0x29a   :  { %2624 = vmatprep.subr.bf16.mxu0 %v6605_v44  ;;  %v814_v44 = vld [vmem:[#allocation9 + $0x58] sm:$0xff] }
 0x29b   :  { %v6414_v58 = vcombine.low %v814_v44, %v818_v45  ;;  %v1022_v37 = vld [vmem:[#allocation9 + $0x6d8] sm:$0xff] }
 0x29c   :  { %2582 = vmatpush2.bf16.msra.mxu1 %v6476_v49  ;;  %v6550_v49 = vcombine.low %v950_v38, %v954_v39  ;;  %v1026_v38 = vld [vmem:[#allocation9 + $0x6f8] sm:$0xff] }
 0x29d   :  { %2625 = vmatpush2.bf16.msra.mxu0 %v6604_v50  ;;  %2583 = vmatprep.subr.bf16.mxu1 %v6469_v51  ;;  %v6415_v50 = vcombine.high %v814_v44, %v818_v45  ;;  %v6543_v51 = vcombine.high %v942_v46, %v946_v47  ;;  %v890_v44 = vld [vmem:[#allocation9 + $0x2b8] sm:$0xff] }
 0x29e   :  { %2626 = vmatprep.subr.bf16.mxu0 %v6597_v52  ;;  %v806_v52 = vld [vmem:[#allocation9 + $0x18] sm:$0xff] }
 0x29f   :  { %v6406_v2 = vcombine.low %v806_v52, %v810_v55  ;;  %v1014_v45 = vld [vmem:[#allocation9 + $0x698] sm:$0xff] }
 0x2a0   :  { %2584 = vmatpush2.bf16.msra.mxu1 %v6468_v59  ;;  %v6542_v59 = vcombine.low %v942_v46, %v946_v47  ;;  %v1018_v46 = vld [vmem:[#allocation9 + $0x6b8] sm:$0xff] }
 0x2a1   :  { %2627 = vmatpush2.bf16.msra.mxu0 %v6596_v60  ;;  %2639 = vmatprep.subr.bf16.mxu1 %v6463_v61  ;;  %v6407_v60 = vcombine.high %v806_v52, %v810_v55  ;;  %v6535_v61 = vcombine.high %v934_v56, %v938_v57  ;;  %v882_v52 = vld [vmem:[#allocation9 + $0x278] sm:$0xff] }
 0x2a2   :  { %2682 = vmatprep.subr.bf16.mxu0 %v6591_v62  ;;  %v926_v62 = vld [vmem:[#allocation9 + $0x3d8] sm:$0xff] }
 0x2a3   :  { %2586 = vmatmul.mubr.bf16.vlgmr.msra.gmra.mxu1 %v8286_v26  ;;  %v6526_v10 = vcombine.low %v926_v62, %v930_v63  ;;  %v1006_v55 = vld [vmem:[#allocation9 + $0x658] sm:$0xff] }
 0x2a4   :  { %2629 = vmatmul.mubr.bf16.vlgmr.msra.gmra.mxu0 %v8288_v29  ;;  %2640 = vmatpush1.bf16.msra.mxu1 %v6462_v1  ;;  %v1058_v1 = vld [vmem:[#allocation9 + $0x7f8] sm:$0xff] }
 0x2a5   :  { %2671 = vmatprep.mubr.bf16.mxu1 %v8282_v24  ;;  %2683 = vmatpush1.bf16.msra.mxu0 %v6590_v4  ;;  %v6567_v24 = vcombine.high %v966_v17, %v970_v18  ;;  %v6527_v4 = vcombine.high %v926_v62, %v930_v63  ;;  %v1042_v17 = vld [vmem:[#allocation9 + $0x778] sm:$0xff]  ;;  %v6518_v18 = vcombine.low %v918_v6, %v922_v7 }
 0x2a6   :  { %2714 = vmatprep.mubr.bf16.mxu0 %v8284_v25  ;;  %2641 = vmatprep.subr.bf16.mxu1 %v6455_v5  ;;  %v6438_v25 = vcombine.low %v838_v15, %v842_v16  ;;  %v6655_v5 = vcombine.high %v1054_v0, %v1058_v1  ;;  %v914_v15 = vld [vmem:[#allocation9 + $0x378] sm:$0xff] }
 0x2a7   :  { %2684 = vmatprep.subr.bf16.mxu0 %v6583_v8  ;;  %v1046_v8 = vld [vmem:[#allocation9 + $0x798] sm:$0xff] }
 0x2a8   :  { %2642 = vmatpush1.bf16.msra.mxu1 %v6454_v11  ;;  %v6654_v11 = vcombine.low %v1054_v0, %v1058_v1  ;;  %v1038_v16 = vld [vmem:[#allocation9 + $0x758] sm:$0xff] }
 0x2a9   :  { %2685 = vmatpush1.bf16.msra.mxu0 %v6582_v12  ;;  %2643 = vmatprep.subr.bf16.mxu1 %v6447_v13  ;;  %v6519_v12 = vcombine.high %v918_v6, %v922_v7  ;;  %v6647_v13 = vcombine.high %v1046_v8, %v1050_v9  ;;  %v1010_v56 = vld [vmem:[#allocation9 + $0x678] sm:$0xff]  ;;  %v7332_v7 = vld [vmem:[#allocation12 + $0x18c] ss:$28 sps:$4 sm:$0xff]  }
 0x2aa   :  { %2686 = vmatprep.subr.bf16.mxu0 %v6575_v14  ;;  %v910_v14 = vld [vmem:[#allocation9 + $0x358] sm:$0xff] }
 0x2ab   :  { %v6510_v32 = vcombine.low %v910_v14, %v914_v15  ;;  %v874_v62 = vld [vmem:[#allocation9 + $0x238] sm:$0xff] }
 0x2ac   :  { %2644 = vmatpush1.bf16.msra.mxu1 %v6446_v19  ;;  %v6646_v19 = vcombine.low %v1046_v8, %v1050_v9  ;;  %v998_v63 = vld [vmem:[#allocation9 + $0x618] sm:$0xff]  ;;  %v7347_v8 = vld [vmem:[#allocation12 + $0x50c] ss:$28 sps:$4 sm:$0xff]  }
 0x2ad   :  { %2687 = vmatpush1.bf16.msra.mxu0 %v6574_v20  ;;  %2645 = vmatprep.subr.bf16.mxu1 %v6439_v21  ;;  %v6511_v20 = vcombine.high %v910_v14, %v914_v15  ;;  %v6639_v21 = vcombine.high %v1038_v16, %v1042_v17  ;;  %v1002_v0 = vld [vmem:[#allocation9 + $0x638] sm:$0xff]  ;;  %v7330_v9 = vld [vmem:[#allocation12 + $0x188] ss:$28 sps:$4 sm:$0xff]  }
 0x2ae   :  { %2688 = vmatprep.subr.bf16.mxu0 %v6567_v24  ;;  %v902_v24 = vld [vmem:[#allocation9 + $0x318] sm:$0xff]  ;;  %v6598_v6 = vcombine.low %v998_v63, %v1002_v0 }
 0x2af   :  { %v6502_v39 = vcombine.low %v902_v24, %v906_v22  ;;  %v7353_v14 = vld [vmem:[#allocation12 + $0x4d4] ss:$28 sps:$4 sm:$0xff]  }
 0x2b0   :  { %2646 = vmatpush1.bf16.msra.mxu1 %v6438_v25  ;;  %v6638_v25 = vcombine.low %v1038_v16, %v1042_v17  ;;  %v7333_v17 = vld [vmem:[#allocation12 + $0x150] ss:$28 sps:$4 sm:$0xff]  }
 0x2b1   :  { %2689 = vmatpush1.bf16.msra.mxu0 %v6566_v33  ;;  %2647 = vmatprep.subr.bf16.mxu1 %v6431_v34  ;;  %v6503_v33 = vcombine.high %v902_v24, %v906_v22  ;;  %v6631_v34 = vcombine.high %v1030_v23, %v1034_v31  ;;  %v7359_v22 = vld [vmem:[#allocation12 + $0x49c] ss:$28 sps:$4 sm:$0xff]  }
 0x2b2   :  { %2690 = vmatprep.subr.bf16.mxu0 %v6559_v35  ;;  %v894_v35 = vld [vmem:[#allocation9 + $0x2d8] sm:$0xff] }
 0x2b3   :  { %v6494_v47 = vcombine.low %v894_v35, %v898_v36 }
 0x2b4   :  { %2648 = vmatpush1.bf16.msra.mxu1 %v6430_v40  ;;  %v6630_v40 = vcombine.low %v1030_v23, %v1034_v31  ;;  %v7336_v31 = vld [vmem:[#allocation12 + $0x118] ss:$28 sps:$4 sm:$0xff]  }
 0x2b5   :  { %2691 = vmatpush1.bf16.msra.mxu0 %v6558_v41  ;;  %2649 = vmatprep.subr.bf16.mxu1 %v6423_v42  ;;  %v6495_v41 = vcombine.high %v894_v35, %v898_v36  ;;  %v6623_v42 = vcombine.high %v1022_v37, %v1026_v38  ;;  %v7365_v35 = vld [vmem:[#allocation12 + $0x464] ss:$28 sps:$4 sm:$0xff]  }
 0x2b6   :  { %2692 = vmatprep.subr.bf16.mxu0 %v6551_v43  ;;  %v886_v43 = vld [vmem:[#allocation9 + $0x298] sm:$0xff] }
 0x2b7   :  { %v6486_v57 = vcombine.low %v886_v43, %v890_v44 }
 0x2b8   :  { %2650 = vmatpush1.bf16.msra.mxu1 %v6422_v48  ;;  %v6622_v48 = vcombine.low %v1022_v37, %v1026_v38  ;;  %v7339_v38 = vld [vmem:[#allocation12 + $0xe0] ss:$28 sps:$4 sm:$0xff]  }
 0x2b9   :  { %2693 = vmatpush1.bf16.msra.mxu0 %v6550_v49  ;;  %2651 = vmatprep.subr.bf16.mxu1 %v6415_v50  ;;  %v6487_v49 = vcombine.high %v886_v43, %v890_v44  ;;  %v6615_v50 = vcombine.high %v1014_v45, %v1018_v46  ;;  %v7371_v43 = vld [vmem:[#allocation12 + $0x42c] ss:$28 sps:$4 sm:$0xff]  }
 0x2ba   :  { %2694 = vmatprep.subr.bf16.mxu0 %v6543_v51  ;;  %v878_v51 = vld [vmem:[#allocation9 + $0x258] sm:$0xff] }
 0x2bb   :  { %v6478_v1 = vcombine.low %v878_v51, %v882_v52 }
 0x2bc   :  { %2652 = vmatpush1.bf16.msra.mxu1 %v6414_v58  ;;  %v6614_v58 = vcombine.low %v1014_v45, %v1018_v46  ;;  %v7342_v45 = vld [vmem:[#allocation12 + $0xa8] ss:$28 sps:$4 sm:$0xff]   ;;  %v7350_v46 = vld [vmem:[#allocation12 + $0x74] ss:$28 sps:$4 sm:$0xff]  }
 0x2bd   :  { %2695 = vmatpush1.bf16.msra.mxu0 %v6542_v59  ;;  %2653 = vmatprep.subr.bf16.mxu1 %v6407_v60  ;;  %v6479_v59 = vcombine.high %v878_v51, %v882_v52  ;;  %v6607_v60 = vcombine.high %v1006_v55, %v1010_v56  ;;  %v7375_v51 = vld [vmem:[#allocation12 + $0x3f0] ss:$28 sps:$4 sm:$0xff]   ;;  %v7383_v52 = vld [vmem:[#allocation12 + $0x3bc] ss:$28 sps:$4 sm:$0xff]  }
 0x2be   :  { %2696 = vmatprep.subr.bf16.mxu0 %v6535_v61  ;;  %v870_v61 = vld [vmem:[#allocation9 + $0x218] sm:$0xff] }
 0x2c0   :  { %2654 = vmatpush1.bf16.msra.mxu1 %v6406_v2  ;;  %v6606_v2 = vcombine.low %v1006_v55, %v1010_v56  ;;  %v7354_v55 = vld [vmem:[#allocation12 + $0x38] ss:$28 sps:$4 sm:$0xff]   ;;  %v7362_v56 = vld [vmem:[#allocation12 + $0x4] ss:$28 sps:$4 sm:$0xff]  }
 0x2c1   :  { %2697 = vmatpush1.bf16.msra.mxu0 %v6534_v3  ;;  %2655 = vmatprep.subr.bf16.mxu1 %v6527_v4  ;;  %v6471_v3 = vcombine.high %v870_v61, %v874_v62  ;;  %v6599_v4 = vcombine.high %v998_v63, %v1002_v0  ;;  %v7366_v63 = vld [vmem:[#allocation12 + $0x348] ss:$28 sps:$4 sm:$0xff]   ;;  %v7374_v0 = vld [vmem:[#allocation12 + $0x314] ss:$28 sps:$4 sm:$0xff]  }
 0x2c2   :  { %2698 = vmatprep.subr.bf16.mxu0 %v6655_v5  ;;  %v6470_v5 = vcombine.low %v870_v61, %v874_v62  ;;  %v7387_v61 = vld [vmem:[#allocation12 + $0x380] ss:$28 sps:$4 sm:$0xff]   ;;  %v7395_v62 = vld [vmem:[#allocation12 + $0x6cc] ss:$28 sps:$4 sm:$0xff]  }
 0x2c4   :  { %2656 = vmatpush2.bf16.msra.mxu1 %v6526_v10  ;;  %v8304_v10 = vld [vmem:[#allocation10] sm:$0xff] }
 0x2c5   :  { %2699 = vmatpush2.bf16.msra.mxu0 %v6654_v11  ;;  %2657 = vmatprep.subr.bf16.mxu1 %v6519_v12  ;;  %v7335_v11 = vld [vmem:[#allocation12 + $0x154] ss:$28 sps:$4 sm:$0xff]   ;;  %v7345_v12 = vld [vmem:[#allocation12 + $0x508] ss:$28 sps:$4 sm:$0xff]  }
 0x2c6   :  { %2700 = vmatprep.subr.bf16.mxu0 %v6647_v13  ;;  %v1068_v13 = vrot.slane %v8304_v10, %v8268_v30 }
 0x2c8   :  { %2658 = vmatpush2.bf16.msra.mxu1 %v6518_v18 }
 0x2c9   :  { %2701 = vmatpush2.bf16.msra.mxu0 %v6646_v19  ;;  %2659 = vmatprep.subr.bf16.mxu1 %v6511_v20  ;;  %v7338_v20 = vld [vmem:[#allocation12 + $0x11c] ss:$28 sps:$4 sm:$0xff]  }
 0x2ca   :  { %2702 = vmatprep.subr.bf16.mxu0 %v6639_v21  ;;  %v7351_v21 = vld [vmem:[#allocation12 + $0x4d0] ss:$28 sps:$4 sm:$0xff]  }
 0x2cc   :  { %2660 = vmatpush2.bf16.msra.mxu1 %v6510_v32 }
 0x2cd   :  { %2703 = vmatpush2.bf16.msra.mxu0 %v6638_v25  ;;  %2661 = vmatprep.subr.bf16.mxu1 %v6503_v33  ;;  %v7357_v25 = vld [vmem:[#allocation12 + $0x498] ss:$28 sps:$4 sm:$0xff]  }
 0x2ce   :  { %2704 = vmatprep.subr.bf16.mxu0 %v6631_v34 }
 0x2d0   :  { %2662 = vmatpush2.bf16.msra.mxu1 %v6502_v39  ;;  %v7344_v39 = vld [vmem:[#allocation12 + $0xac] ss:$28 sps:$4 sm:$0xff]  }
 0x2d1   :  { %2705 = vmatpush2.bf16.msra.mxu0 %v6630_v40  ;;  %2663 = vmatprep.subr.bf16.mxu1 %v6495_v41  ;;  %v7363_v40 = vld [vmem:[#allocation12 + $0x460] ss:$28 sps:$4 sm:$0xff]  }
 0x2d2   :  { %2706 = vmatprep.subr.bf16.mxu0 %v6623_v42 }
 0x2d4   :  { %2664 = vmatpush2.bf16.msra.mxu1 %v6494_v47  ;;  %v7369_v47 = vld [vmem:[#allocation12 + $0x428] ss:$28 sps:$4 sm:$0xff]  }
 0x2d5   :  { %2707 = vmatpush2.bf16.msra.mxu0 %v6622_v48  ;;  %2665 = vmatprep.subr.bf16.mxu1 %v6487_v49  ;;  %v7377_v48 = vld [vmem:[#allocation12 + $0x3f4] ss:$28 sps:$4 sm:$0xff]  }
 0x2d6   :  { %2708 = vmatprep.subr.bf16.mxu0 %v6615_v50  ;;  %v7348_v49 = vld [vmem:[#allocation12 + $0x70] ss:$28 sps:$4 sm:$0xff]   ;;  %v7356_v50 = vld [vmem:[#allocation12 + $0x3c] ss:$28 sps:$4 sm:$0xff]  }
 0x2d8   :  { %2666 = vmatpush2.bf16.msra.mxu1 %v6486_v57  ;;  %v7381_v57 = vld [vmem:[#allocation12 + $0x3b8] ss:$28 sps:$4 sm:$0xff]  }
 0x2d9   :  { %2709 = vmatpush2.bf16.msra.mxu0 %v6614_v58  ;;  %2667 = vmatprep.subr.bf16.mxu1 %v6479_v59  ;;  %v7389_v58 = vld [vmem:[#allocation12 + $0x384] ss:$28 sps:$4 sm:$0xff]  }
 0x2da   :  { %2710 = vmatprep.subr.bf16.mxu0 %v6607_v60  ;;  %v7360_v59 = vld [vmem:[#allocation12] ss:$28 sps:$4 sm:$0xff]   ;;  %v7368_v60 = vld [vmem:[#allocation12 + $0x34c] ss:$28 sps:$4 sm:$0xff]  }
 0x2dc   :  { %2668 = vmatpush2.bf16.msra.mxu1 %v6478_v1  ;;  %v7393_v1 = vld [vmem:[#allocation12 + $0x6c8] ss:$28 sps:$4 sm:$0xff]  }
 0x2dd   :  { %2711 = vmatpush2.bf16.msra.mxu0 %v6606_v2  ;;  %2669 = vmatprep.subr.bf16.mxu1 %v6471_v3  ;;  %v7401_v2 = vld [vmem:[#allocation12 + $0x694] ss:$28 sps:$4 sm:$0xff]  }
 0x2de   :  { %2712 = vmatprep.subr.bf16.mxu0 %v6599_v4  ;;  %v7372_v3 = vld [vmem:[#allocation12 + $0x310] ss:$28 sps:$4 sm:$0xff]   ;;  %v7380_v4 = vld [vmem:[#allocation12 + $0x2dc] ss:$28 sps:$4 sm:$0xff]  }
 0x2e0   :  { %2670 = vmatpush2.bf16.msra.mxu1 %v6470_v5  ;;  %v7399_v5 = vld [vmem:[#allocation12 + $0x690] ss:$28 sps:$4 sm:$0xff]  }
 0x2e1   :  { %2713 = vmatpush2.bf16.msra.mxu0 %v6598_v6  ;;  %5602 = vmatprep.subr.bf16.mxu1 %v7332_v7  ;;  %v7407_v6 = vld [vmem:[#allocation12 + $0x65c] ss:$28 sps:$4 sm:$0xff]  }
 0x2e2   :  { %5645 = vmatprep.subr.bf16.mxu0 %v7347_v8  ;;  %v7378_v7 = vld [vmem:[#allocation12 + $0x2d8] ss:$28 sps:$4 sm:$0xff]   ;;  %v7386_v8 = vld [vmem:[#allocation12 + $0x2a4] ss:$28 sps:$4 sm:$0xff]  }
 0x2e3   :  { %2672 = vmatmul.mubr.bf16.vlgmr.msra.gmra.mxu1 %v8286_v26  ;;  %v8309_v15 = vpop.f32.mrf.mxu1  ;;  %v8311_v16 = vpop.f32.mrf.mxu0 }
 0x2e4   :  { %2715 = vmatmul.mubr.bf16.vlgmr.msra.gmra.mxu0 %v8288_v29  ;;  %5603 = vmatpush1.bf16.msra.mxu1 %v7330_v9  ;;  %v7341_v29 = vld [vmem:[#allocation12 + $0xe4] ss:$28 sps:$4 sm:$0xff]   ;;  %v7405_v9 = vld [vmem:[#allocation12 + $0x658] ss:$28 sps:$4 sm:$0xff]  }
 0x2e5   :  { %v2417_v18 = vpop.f32.mrf.mxu1  ;;  %v2460_v19 = vpop.f32.mrf.mxu0  ;;  %5604 = vmatprep.subr.bf16.mxu1 %v7335_v11  ;;  %5646 = vmatpush1.bf16.msra.mxu0 %v7345_v12  ;;  %v7413_v11 = vld [vmem:[#allocation12 + $0x624] ss:$28 sps:$4 sm:$0xff]  }
 0x2e6   :  { %v2418_v24 = vadd.f32 %v2417_v18, %v1068_v13  ;;  %5647 = vmatprep.subr.bf16.mxu0 %v7353_v14  ;;  %v7384_v12 = vld [vmem:[#allocation12 + $0x2a0] ss:$28 sps:$4 sm:$0xff]   ;;  %v7390_v18 = vld [vmem:[#allocation12 + $0x268] ss:$28 sps:$4 sm:$0xff]  }
 0x2e7   :  { %v8314_v23 = vpop.f32.mrf.mxu1  ;;  %v8316_v26 = vpop.f32.mrf.mxu0  ;;  %v7411_v14 = vld [vmem:[#allocation12 + $0x620] ss:$28 sps:$4 sm:$0xff]  }
 0x2e8   :  { %5605 = vmatpush1.bf16.msra.mxu1 %v7333_v17  ;;  %v2461_v33 = vadd.f32 %v2460_v19, %v2418_v24  ;;  %v7416_v17 = vld [vmem:[#allocation12 + $0x5ec] ss:$28 sps:$4 sm:$0xff]   ;;  %v7398_v19 = vld [vmem:[#allocation12 + $0x234] ss:$28 sps:$4 sm:$0xff]   ;;  %v1064_v24 = vrot.slane %v8304_v10, %v8265_v28 }
 0x2e9   :  { %v2421_v32 = vpop.f32.mrf.mxu1  ;;  %5606 = vmatprep.subr.bf16.mxu1 %v7338_v20  ;;  %5648 = vmatpush1.bf16.msra.mxu0 %v7351_v21  ;;  %v2464_v36 = vpop.f32.mrf.mxu0  ;;  %v7414_v20 = vld [vmem:[#allocation12 + $0x5e8] ss:$28 sps:$4 sm:$0xff]   ;;  %v7419_v21 = vld [vmem:[#allocation12 + $0x5b4] ss:$28 sps:$4 sm:$0xff]  }
 0x2ea   :  { %v2422_v34 = vadd.f32 %v2421_v32, %v1068_v13  ;;  %5649 = vmatprep.subr.bf16.mxu0 %v7359_v22  ;;  %v2726_v41 = vmax.f32 %v2461_v33, 0.0  ;;  %v7392_v13 = vld [vmem:[#allocation12 + $0x26c] ss:$28 sps:$4 sm:$0xff]   ;;  %v7404_v32 = vld [vmem:[#allocation12 + $0x1fc] ss:$28 sps:$4 sm:$0xff]   ;;  %v2416_v33 = vadd.f32 %v8309_v15, %v1064_v24 }
 0x2eb   :  { %v7396_v22 = vld [vmem:[#allocation12 + $0x230] ss:$28 sps:$4 sm:$0xff]  }
 0x2ec   :  { %v2465_v37 = vadd.f32 %v2464_v36, %v2422_v34  ;;  %5607 = vmatpush1.bf16.msra.mxu1 %v7336_v31  ;;  %v2420_v31 = vadd.f32 %v8314_v23, %v1064_v24  ;;  %v7402_v34 = vld [vmem:[#allocation12 + $0x1f8] ss:$28 sps:$4 sm:$0xff]   ;;  %v7410_v36 = vld [vmem:[#allocation12 + $0x1c4] ss:$28 sps:$4 sm:$0xff]   ;;  %v2459_v23 = vadd.f32 %v8311_v16, %v2416_v33  ;;  %v7476_v15 = vld [vmem:[#allocation12 + $0xc0c] ss:$28 sps:$4 sm:$0xff]   ;;  %v1076_v16 = vrot.slane %v8304_v10, %v8273_v53 }
 0x2ed   :  { %5608 = vmatprep.subr.bf16.mxu1 %v7341_v29  ;;  %5650 = vmatpush1.bf16.msra.mxu0 %v7357_v25  ;;  %v7417_v29 = vld [vmem:[#allocation12 + $0x5b0] ss:$28 sps:$4 sm:$0xff]   ;;  %v7422_v25 = vld [vmem:[#allocation12 + $0x57c] ss:$28 sps:$4 sm:$0xff]   ;;  %v7494_v33 = vld [vmem:[#allocation12 + $0xb64] ss:$28 sps:$4 sm:$0xff]  }
 0x2ee   :  { %v2734_v42 = vmax.f32 %v2465_v37, 0.0  ;;  %5651 = vmatprep.subr.bf16.mxu0 %v7365_v35  ;;  %v2463_v35 = vadd.f32 %v8316_v26, %v2420_v31  ;;  %v7420_v37 = vld [vmem:[#allocation12 + $0x578] ss:$28 sps:$4 sm:$0xff]   ;;  %v7426_v26 = vld [vmem:[#allocation12 + $0x888] ss:$28 sps:$4 sm:$0xff]  }
 0x2ef   :  { %v7480_v24 = vld [vmem:[#allocation12 + $0xbd0] ss:$28 sps:$4 sm:$0xff]   ;;  %v7488_v31 = vld [vmem:[#allocation12 + $0xb9c] ss:$28 sps:$4 sm:$0xff]  }
 0x2f0   :  { %v8318_v44 = vpack.c.bf16 %v2734_v42, %v2726_v41  ;;  %5609 = vmatpush1.bf16.msra.mxu1 %v7339_v38  ;;  %v7425_v38 = vld [vmem:[#allocation12 + $0x544] ss:$28 sps:$4 sm:$0xff]   ;;  %v7428_v42 = vld [vmem:[#allocation12 + $0x88c] ss:$28 sps:$4 sm:$0xff]  }
 0x2f1   :  { %5610 = vmatprep.subr.bf16.mxu1 %v7344_v39  ;;  %5652 = vmatpush1.bf16.msra.mxu0 %v7363_v40  ;;  %v7408_v39 = vld [vmem:[#allocation12 + $0x1c0] ss:$28 sps:$4 sm:$0xff]   ;;  %v2733_v40 = vmax.f32 %v2463_v35, 0.0 }
 0x2f2   :  { %5634 = vmatprep.mubr.bf16.mxu1 %v8318_v44  ;;  %5653 = vmatprep.subr.bf16.mxu0 %v7371_v43  ;;  %v7423_v41 = vld [vmem:[#allocation12 + $0x540] ss:$28 sps:$4 sm:$0xff]   ;;  %v2725_v43 = vmax.f32 %v2459_v23, 0.0  ;;  %v7498_v23 = vld [vmem:[#allocation12 + $0xb28] ss:$28 sps:$4 sm:$0xff]  }
 0x2f3   :  { %v7492_v35 = vld [vmem:[#allocation12 + $0xb60] ss:$28 sps:$4 sm:$0xff]  }
 0x2f4   :  { %5611 = vmatpush1.bf16.msra.mxu1 %v7342_v45  ;;  %v8327_v45 = vpack.c.bf16 %v2733_v40, %v2725_v43  ;;  %v7506_v40 = vld [vmem:[#allocation12 + $0xaf4] ss:$28 sps:$4 sm:$0xff]   ;;  %v7512_v43 = vld [vmem:[#allocation12 + $0xabc] ss:$28 sps:$4 sm:$0xff]  }
 0x2f5   :  { %5612 = vmatprep.subr.bf16.mxu1 %v7350_v46  ;;  %5654 = vmatpush1.bf16.msra.mxu0 %v7369_v47  ;;  %v7431_v46 = vld [vmem:[#allocation12 + $0x854] ss:$28 sps:$4 sm:$0xff]   ;;  %v1072_v47 = vrot.slane %v8304_v10, %v8276_v54 }
 0x2f6   :  { %5655 = vmatprep.subr.bf16.mxu0 %v7377_v48 }
 0x2f8   :  { %5613 = vmatpush1.bf16.msra.mxu1 %v7348_v49 }
 0x2f9   :  { %5614 = vmatprep.subr.bf16.mxu1 %v7356_v50  ;;  %5656 = vmatpush1.bf16.msra.mxu0 %v7375_v51  ;;  %v7429_v50 = vld [vmem:[#allocation12 + $0x850] ss:$28 sps:$4 sm:$0xff]  }
 0x2fa   :  { %5657 = vmatprep.subr.bf16.mxu0 %v7383_v52 }
 0x2fc   :  { %5615 = vmatpush1.bf16.msra.mxu1 %v7354_v55  ;;  %v7434_v55 = vld [vmem:[#allocation12 + $0x81c] ss:$28 sps:$4 sm:$0xff]  }
 0x2fd   :  { %5616 = vmatprep.subr.bf16.mxu1 %v7362_v56  ;;  %5658 = vmatpush1.bf16.msra.mxu0 %v7381_v57 }
 0x2fe   :  { %5659 = vmatprep.subr.bf16.mxu0 %v7389_v58 }
 0x300   :  { %5617 = vmatpush1.bf16.msra.mxu1 %v7360_v59 }
 0x301   :  { %5618 = vmatprep.subr.bf16.mxu1 %v7368_v60  ;;  %5660 = vmatpush1.bf16.msra.mxu0 %v7387_v61  ;;  %v7432_v61 = vld [vmem:[#allocation12 + $0x818] ss:$28 sps:$4 sm:$0xff]  }
 0x302   :  { %5661 = vmatprep.subr.bf16.mxu0 %v7395_v62 }
 0x304   :  { %5619 = vmatpush2.bf16.msra.mxu1 %v7366_v63  ;;  %v7437_v63 = vld [vmem:[#allocation12 + $0x7e4] ss:$28 sps:$4 sm:$0xff]  }
 0x305   :  { %5620 = vmatprep.subr.bf16.mxu1 %v7374_v0  ;;  %5662 = vmatpush2.bf16.msra.mxu0 %v7393_v1 }
 0x306   :  { %5663 = vmatprep.subr.bf16.mxu0 %v7401_v2 }
 0x308   :  { %5621 = vmatpush2.bf16.msra.mxu1 %v7372_v3 }
 0x309   :  { %5622 = vmatprep.subr.bf16.mxu1 %v7380_v4  ;;  %5664 = vmatpush2.bf16.msra.mxu0 %v7399_v5 }
 0x30a   :  { %5665 = vmatprep.subr.bf16.mxu0 %v7407_v6  ;;  %v7435_v6 = vld [vmem:[#allocation12 + $0x7e0] ss:$28 sps:$4 sm:$0xff]  }
 0x30c   :  { %5623 = vmatpush2.bf16.msra.mxu1 %v7378_v7 }
 0x30d   :  { %5624 = vmatprep.subr.bf16.mxu1 %v7386_v8  ;;  %5666 = vmatpush2.bf16.msra.mxu0 %v7405_v9  ;;  %v7440_v8 = vld [vmem:[#allocation12 + $0x7ac] ss:$28 sps:$4 sm:$0xff]  }
 0x30e   :  { %5667 = vmatprep.subr.bf16.mxu0 %v7413_v11 }
 0x310   :  { %5625 = vmatpush2.bf16.msra.mxu1 %v7384_v12 }
 0x311   :  { %5626 = vmatprep.subr.bf16.mxu1 %v7392_v13  ;;  %5668 = vmatpush2.bf16.msra.mxu0 %v7411_v14  ;;  %v7438_v14 = vld [vmem:[#allocation12 + $0x7a8] ss:$28 sps:$4 sm:$0xff]  }
 0x312   :  { %5669 = vmatprep.subr.bf16.mxu0 %v7416_v17  ;;  %v7474_v17 = vld [vmem:[#allocation12 + $0xc08] ss:$28 sps:$4 sm:$0xff]  }
 0x314   :  { %5627 = vmatpush2.bf16.msra.mxu1 %v7390_v18 }
 0x315   :  { %5628 = vmatprep.subr.bf16.mxu1 %v7398_v19  ;;  %5670 = vmatpush2.bf16.msra.mxu0 %v7414_v20  ;;  %v7443_v19 = vld [vmem:[#allocation12 + $0x774] ss:$28 sps:$4 sm:$0xff]  }
 0x316   :  { %5671 = vmatprep.subr.bf16.mxu0 %v7419_v21  ;;  %v7482_v20 = vld [vmem:[#allocation12 + $0xbd4] ss:$28 sps:$4 sm:$0xff]  }
 0x317   :  { %v7441_v21 = vld [vmem:[#allocation12 + $0x770] ss:$28 sps:$4 sm:$0xff]  }
 0x318   :  { %5629 = vmatpush2.bf16.msra.mxu1 %v7396_v22  ;;  %v7446_v22 = vld [vmem:[#allocation12 + $0x73c] ss:$28 sps:$4 sm:$0xff]  }
 0x319   :  { %5630 = vmatprep.subr.bf16.mxu1 %v7404_v32  ;;  %5672 = vmatpush2.bf16.msra.mxu0 %v7417_v29  ;;  %v7444_v32 = vld [vmem:[#allocation12 + $0x738] ss:$28 sps:$4 sm:$0xff]  }
 0x31a   :  { %5673 = vmatprep.subr.bf16.mxu0 %v7422_v25  ;;  %v7486_v29 = vld [vmem:[#allocation12 + $0xb98] ss:$28 sps:$4 sm:$0xff]   ;;  %v7449_v25 = vld [vmem:[#allocation12 + $0x704] ss:$28 sps:$4 sm:$0xff]  }
 0x31c   :  { %5631 = vmatpush2.bf16.msra.mxu1 %v7402_v34  ;;  %v7447_v34 = vld [vmem:[#allocation12 + $0x700] ss:$28 sps:$4 sm:$0xff]  }
 0x31d   :  { %5632 = vmatprep.subr.bf16.mxu1 %v7410_v36  ;;  %5674 = vmatpush2.bf16.msra.mxu0 %v7420_v37  ;;  %v7452_v36 = vld [vmem:[#allocation12 + $0xa4c] ss:$28 sps:$4 sm:$0xff]  }
 0x31e   :  { %5675 = vmatprep.subr.bf16.mxu0 %v7425_v38  ;;  %v7500_v37 = vld [vmem:[#allocation12 + $0xb2c] ss:$28 sps:$4 sm:$0xff]  }
 0x31f   :  { %v7450_v38 = vld [vmem:[#allocation12 + $0xa48] ss:$28 sps:$4 sm:$0xff]  }
 0x320   :  { %5633 = vmatpush2.bf16.msra.mxu1 %v7408_v39  ;;  %v7455_v39 = vld [vmem:[#allocation12 + $0xa14] ss:$28 sps:$4 sm:$0xff]  }
 0x321   :  { %5676 = vmatpush2.bf16.msra.mxu0 %v7423_v41  ;;  %5688 = vmatprep.subr.bf16.mxu1 %v7428_v42  ;;  %v7453_v41 = vld [vmem:[#allocation12 + $0xa10] ss:$28 sps:$4 sm:$0xff]  }
 0x322   :  { %5731 = vmatprep.subr.bf16.mxu0 %v7476_v15  ;;  %v7504_v42 = vld [vmem:[#allocation12 + $0xaf0] ss:$28 sps:$4 sm:$0xff]   ;;  %v7458_v15 = vld [vmem:[#allocation12 + $0x9dc] ss:$28 sps:$4 sm:$0xff]  }
 0x323   :  { %v2501_v48 = vpop.f32.mrf.mxu1  ;;  %v2544_v49 = vpop.f32.mrf.mxu0  ;;  %5635 = vmatmul.mubr.bf16.vlgmr.msra.gmra.mxu1 %v8327_v45 }
 0x324   :  { %5689 = vmatpush1.bf16.msra.mxu1 %v7426_v26  ;;  %v2502_v57 = vadd.f32 %v2501_v48, %v1072_v47  ;;  %v7456_v26 = vld [vmem:[#allocation12 + $0x9d8] ss:$28 sps:$4 sm:$0xff]   ;;  %v7459_v48 = vld [vmem:[#allocation12 + $0x9a0] ss:$28 sps:$4 sm:$0xff]  }
 0x325   :  { %v2503_v51 = vpop.f32.mrf.mxu1  ;;  %v2546_v52 = vpop.f32.mrf.mxu0  ;;  %5690 = vmatprep.subr.bf16.mxu1 %v7431_v46  ;;  %v7510_v46 = vld [vmem:[#allocation12 + $0xab8] ss:$28 sps:$4 sm:$0xff]  }
 0x326   :  { %v2504_v56 = vadd.f32 %v2503_v51, %v1076_v16  ;;  %v2545_v3 = vadd.f32 %v2544_v49, %v2502_v57  ;;  %v7516_v49 = vld [vmem:[#allocation12 + $0xa80] ss:$28 sps:$4 sm:$0xff]   ;;  %v7524_v51 = vld [vmem:[#allocation12 + $0xdcc] ss:$28 sps:$4 sm:$0xff]   ;;  %v7530_v57 = vld [vmem:[#allocation12 + $0xd94] ss:$28 sps:$4 sm:$0xff]  }
 0x327   :  { %v2505_v58 = vpop.f32.mrf.mxu1  ;;  %v2548_v59 = vpop.f32.mrf.mxu0 }
 0x328   :  { %v2506_v60 = vadd.f32 %v2505_v58, %v1072_v47  ;;  %5691 = vmatpush1.bf16.msra.mxu1 %v7429_v50  ;;  %v2547_v0 = vadd.f32 %v2546_v52, %v2504_v56  ;;  %v2727_v12 = vmax.f32 %v2545_v3, 0.0  ;;  %v7518_v47 = vld [vmem:[#allocation12 + $0xa84] ss:$28 sps:$4 sm:$0xff]   ;;  %v7464_v50 = vld [vmem:[#allocation12 + $0x96c] ss:$28 sps:$4 sm:$0xff]  }
 0x329   :  { %v2507_v62 = vpop.f32.mrf.mxu1  ;;  %5692 = vmatprep.subr.bf16.mxu1 %v7434_v55  ;;  %v2550_v4 = vpop.f32.mrf.mxu0  ;;  %v7462_v52 = vld [vmem:[#allocation12 + $0x968] ss:$28 sps:$4 sm:$0xff]   ;;  %v7467_v56 = vld [vmem:[#allocation12 + $0x934] ss:$28 sps:$4 sm:$0xff]   ;;  %v7540_v3 = vld [vmem:[#allocation12 + $0xd20] ss:$28 sps:$4 sm:$0xff]  }
 0x32a   :  { %v2549_v1 = vadd.f32 %v2548_v59, %v2506_v60  ;;  %v2508_v2 = vadd.f32 %v2507_v62, %v1076_v16  ;;  %v2728_v9 = vmax.f32 %v2547_v0, 0.0  ;;  %v7461_v16 = vld [vmem:[#allocation12 + $0x9a4] ss:$28 sps:$4 sm:$0xff]   ;;  %v7465_v58 = vld [vmem:[#allocation12 + $0x930] ss:$28 sps:$4 sm:$0xff]  }
 0x32b   :  { %v7522_v55 = vld [vmem:[#allocation12 + $0xdc8] ss:$28 sps:$4 sm:$0xff]   ;;  %v7528_v59 = vld [vmem:[#allocation12 + $0xd90] ss:$28 sps:$4 sm:$0xff]   ;;  %v7470_v60 = vld [vmem:[#allocation12 + $0x8fc] ss:$28 sps:$4 sm:$0xff]  }
 0x32c   :  { %v2551_v5 = vadd.f32 %v2550_v4, %v2508_v2  ;;  %5693 = vmatpush1.bf16.msra.mxu1 %v7432_v61  ;;  %v2735_v7 = vmax.f32 %v2549_v1, 0.0  ;;  %v7536_v61 = vld [vmem:[#allocation12 + $0xd5c] ss:$28 sps:$4 sm:$0xff]   ;;  %v7473_v0 = vld [vmem:[#allocation12 + $0x8c4] ss:$28 sps:$4 sm:$0xff]  }
 0x32d   :  { %5694 = vmatprep.subr.bf16.mxu1 %v7437_v63  ;;  %v7468_v62 = vld [vmem:[#allocation12 + $0x8f8] ss:$28 sps:$4 sm:$0xff]   ;;  %v7542_v1 = vld [vmem:[#allocation12 + $0xd24] ss:$28 sps:$4 sm:$0xff]  }
 0x32e   :  { %v2736_v11 = vmax.f32 %v2551_v5, 0.0  ;;  %v8336_v18 = vpack.c.bf16 %v2735_v7, %v2727_v12  ;;  %v7534_v63 = vld [vmem:[#allocation12 + $0xd58] ss:$28 sps:$4 sm:$0xff]   ;;  %v7471_v2 = vld [vmem:[#allocation12 + $0x8c0] ss:$28 sps:$4 sm:$0xff]   ;;  %v1079_v7 = vsub.s32 4, %v8262_v27 }
 0x32f   :  { %v7479_v4 = vld [vmem:[#allocation12 + $0x194] ss:$28 sps:$4 sm:$0xff]   ;;  %v7548_v5 = vld [vmem:[#allocation12 + $0xcec] ss:$28 sps:$4 sm:$0xff]  }
 0x330   :  { %v8334_v13 = vpack.c.bf16 %v2736_v11, %v2728_v9  ;;  %5695 = vmatpush1.bf16.msra.mxu1 %v7435_v6  ;;  %v1083_v6 = vsub.s32 5, %v8262_v27  ;;  %v7554_v9 = vld [vmem:[#allocation12 + $0xcb4] ss:$28 sps:$4 sm:$0xff]   ;;  %v1080_v12 = vrot.slane %v8304_v10, %v1079_v7 }
 0x331   :  { %5696 = vmatprep.subr.bf16.mxu1 %v7440_v8  ;;  %v7546_v8 = vld [vmem:[#allocation12 + $0xce8] ss:$28 sps:$4 sm:$0xff]  }
 0x332   :  { %5677 = vmatprep.mubr.bf16.mxu0 %v8334_v13  ;;  %v1084_v11 = vrot.slane %v8304_v10, %v1083_v6 }
 0x333   :  { %5678 = vmatmul.mubr.bf16.vlgmr.msra.gmra.mxu0 %v8336_v18 }
 0x334   :  { %5697 = vmatpush1.bf16.msra.mxu1 %v7438_v14  ;;  %5732 = vmatpush1.bf16.msra.mxu0 %v7474_v17 }
 0x335   :  { %5698 = vmatprep.subr.bf16.mxu1 %v7443_v19  ;;  %5733 = vmatprep.subr.bf16.mxu0 %v7482_v20  ;;  %v7552_v19 = vld [vmem:[#allocation12 + $0xcb0] ss:$28 sps:$4 sm:$0xff]  }
 0x338   :  { %5699 = vmatpush1.bf16.msra.mxu1 %v7441_v21  ;;  %5734 = vmatpush1.bf16.msra.mxu0 %v7480_v24  ;;  %v7560_v21 = vld [vmem:[#allocation12 + $0xc7c] ss:$28 sps:$4 sm:$0xff]  }
 0x339   :  { %5700 = vmatprep.subr.bf16.mxu1 %v7446_v22  ;;  %5735 = vmatprep.subr.bf16.mxu0 %v7488_v31 }
 0x33c   :  { %5701 = vmatpush1.bf16.msra.mxu1 %v7444_v32  ;;  %5736 = vmatpush1.bf16.msra.mxu0 %v7486_v29 }
 0x33d   :  { %5702 = vmatprep.subr.bf16.mxu1 %v7449_v25  ;;  %5737 = vmatprep.subr.bf16.mxu0 %v7494_v33  ;;  %v7558_v33 = vld [vmem:[#allocation12 + $0xc78] ss:$28 sps:$4 sm:$0xff]  }
 0x340   :  { %5703 = vmatpush1.bf16.msra.mxu1 %v7447_v34  ;;  %5738 = vmatpush1.bf16.msra.mxu0 %v7492_v35  ;;  %v7566_v35 = vld [vmem:[#allocation12 + $0xc44] ss:$28 sps:$4 sm:$0xff]  }
 0x341   :  { %5704 = vmatprep.subr.bf16.mxu1 %v7452_v36  ;;  %5739 = vmatprep.subr.bf16.mxu0 %v7500_v37 }
 0x344   :  { %5705 = vmatpush2.bf16.msra.mxu1 %v7450_v38  ;;  %5740 = vmatpush1.bf16.msra.mxu0 %v7498_v23 }
 0x345   :  { %5706 = vmatprep.subr.bf16.mxu1 %v7455_v39  ;;  %5741 = vmatprep.subr.bf16.mxu0 %v7506_v40 }
 0x348   :  { %5707 = vmatpush2.bf16.msra.mxu1 %v7453_v41  ;;  %5742 = vmatpush1.bf16.msra.mxu0 %v7504_v42  ;;  %v7564_v41 = vld [vmem:[#allocation12 + $0xc40] ss:$28 sps:$4 sm:$0xff]  }
 0x349   :  { %5708 = vmatprep.subr.bf16.mxu1 %v7458_v15  ;;  %5743 = vmatprep.subr.bf16.mxu0 %v7512_v43  ;;  %v7572_v15 = vld [vmem:[#allocation12 + $0x514] ss:$28 sps:$4 sm:$0xff]  }
 0x34c   :  { %5709 = vmatpush2.bf16.msra.mxu1 %v7456_v26  ;;  %5744 = vmatpush1.bf16.msra.mxu0 %v7510_v46 }
 0x34d   :  { %5710 = vmatprep.subr.bf16.mxu1 %v7461_v16  ;;  %5745 = vmatprep.subr.bf16.mxu0 %v7518_v47  ;;  %v7477_v47 = vld [vmem:[#allocation12 + $0x190] ss:$28 sps:$4 sm:$0xff]  }
 0x350   :  { %5711 = vmatpush2.bf16.msra.mxu1 %v7459_v48  ;;  %5746 = vmatpush1.bf16.msra.mxu0 %v7516_v49  ;;  %v7485_v49 = vld [vmem:[#allocation12 + $0x15c] ss:$28 sps:$4 sm:$0xff]  }
 0x351   :  { %5712 = vmatprep.subr.bf16.mxu1 %v7464_v50  ;;  %5747 = vmatprep.subr.bf16.mxu0 %v7524_v51  ;;  %v7483_v50 = vld [vmem:[#allocation12 + $0x158] ss:$28 sps:$4 sm:$0xff]   ;;  %v7491_v51 = vld [vmem:[#allocation12 + $0x124] ss:$28 sps:$4 sm:$0xff]  }
 0x354   :  { %5713 = vmatpush2.bf16.msra.mxu1 %v7462_v52  ;;  %5748 = vmatpush2.bf16.msra.mxu0 %v7522_v55  ;;  %v7489_v52 = vld [vmem:[#allocation12 + $0x120] ss:$28 sps:$4 sm:$0xff]   ;;  %v7497_v55 = vld [vmem:[#allocation12 + $0xec] ss:$28 sps:$4 sm:$0xff]  }
 0x355   :  { %5714 = vmatprep.subr.bf16.mxu1 %v7467_v56  ;;  %5749 = vmatprep.subr.bf16.mxu0 %v7530_v57  ;;  %v7495_v56 = vld [vmem:[#allocation12 + $0xe8] ss:$28 sps:$4 sm:$0xff]   ;;  %v7503_v57 = vld [vmem:[#allocation12 + $0xb4] ss:$28 sps:$4 sm:$0xff]  }
 0x358   :  { %5715 = vmatpush2.bf16.msra.mxu1 %v7465_v58  ;;  %5750 = vmatpush2.bf16.msra.mxu0 %v7528_v59  ;;  %v7501_v58 = vld [vmem:[#allocation12 + $0xb0] ss:$28 sps:$4 sm:$0xff]   ;;  %v7509_v59 = vld [vmem:[#allocation12 + $0x7c] ss:$28 sps:$4 sm:$0xff]  }
 0x359   :  { %5716 = vmatprep.subr.bf16.mxu1 %v7470_v60  ;;  %5751 = vmatprep.subr.bf16.mxu0 %v7536_v61  ;;  %v7507_v60 = vld [vmem:[#allocation12 + $0x78] ss:$28 sps:$4 sm:$0xff]   ;;  %v7515_v61 = vld [vmem:[#allocation12 + $0x44] ss:$28 sps:$4 sm:$0xff]  }
 0x35c   :  { %5717 = vmatpush2.bf16.msra.mxu1 %v7468_v62  ;;  %5752 = vmatpush2.bf16.msra.mxu0 %v7534_v63  ;;  %v7513_v62 = vld [vmem:[#allocation12 + $0x40] ss:$28 sps:$4 sm:$0xff]   ;;  %v7521_v63 = vld [vmem:[#allocation12 + $0xc] ss:$28 sps:$4 sm:$0xff]  }
 0x35d   :  { %5718 = vmatprep.subr.bf16.mxu1 %v7473_v0  ;;  %5753 = vmatprep.subr.bf16.mxu0 %v7542_v1  ;;  %v7519_v0 = vld [vmem:[#allocation12 + $0x8] ss:$28 sps:$4 sm:$0xff]   ;;  %v7527_v1 = vld [vmem:[#allocation12 + $0x354] ss:$28 sps:$4 sm:$0xff]  }
 0x360   :  { %5719 = vmatpush2.bf16.msra.mxu1 %v7471_v2  ;;  %5754 = vmatpush2.bf16.msra.mxu0 %v7540_v3  ;;  %v7525_v2 = vld [vmem:[#allocation12 + $0x350] ss:$28 sps:$4 sm:$0xff]   ;;  %v7533_v3 = vld [vmem:[#allocation12 + $0x31c] ss:$28 sps:$4 sm:$0xff]  }
 0x361   :  { %5774 = vmatprep.subr.bf16.mxu1 %v7479_v4  ;;  %5755 = vmatprep.subr.bf16.mxu0 %v7548_v5  ;;  %v7531_v4 = vld [vmem:[#allocation12 + $0x318] ss:$28 sps:$4 sm:$0xff]   ;;  %v7539_v5 = vld [vmem:[#allocation12 + $0x2e4] ss:$28 sps:$4 sm:$0xff]  }
 0x363   :  { %v2587_v14 = vpop.f32.mrf.mxu1 }
 0x364   :  { %v2630_v17 = vpop.f32.mrf.mxu0  ;;  %5756 = vmatpush2.bf16.msra.mxu0 %v7546_v8  ;;  %v2588_v31 = vadd.f32 %v2587_v14, %v1080_v12  ;;  %v7537_v8 = vld [vmem:[#allocation12 + $0x2e0] ss:$28 sps:$4 sm:$0xff]   ;;  %v1091_v14 = vsub.s32 7, %v8262_v27 }
 0x365   :  { %v2589_v20 = vpop.f32.mrf.mxu1  ;;  %5757 = vmatprep.subr.bf16.mxu0 %v7554_v9  ;;  %v7545_v9 = vld [vmem:[#allocation12 + $0x2ac] ss:$28 sps:$4 sm:$0xff]  }
 0x366   :  { %v2590_v24 = vadd.f32 %v2589_v20, %v1084_v11  ;;  %v2632_v22 = vpop.f32.mrf.mxu0  ;;  %v2631_v23 = vadd.f32 %v2630_v17, %v2588_v31  ;;  %v1087_v17 = vsub.s32 6, %v8262_v27  ;;  %v7557_v20 = vld [vmem:[#allocation12 + $0x23c] ss:$28 sps:$4 sm:$0xff]  }
 0x367   :  { %v2591_v32 = vpop.f32.mrf.mxu1 }
 0x368   :  { %v2592_v29 = vadd.f32 %v2591_v32, %v1080_v12  ;;  %v2634_v25 = vpop.f32.mrf.mxu0  ;;  %5758 = vmatpush2.bf16.msra.mxu0 %v7552_v19  ;;  %v2633_v36 = vadd.f32 %v2632_v22, %v2590_v24  ;;  %v2729_v46 = vmax.f32 %v2631_v23, 0.0  ;;  %v7551_v12 = vld [vmem:[#allocation12 + $0x274] ss:$28 sps:$4 sm:$0xff]   ;;  %v1088_v24 = vrot.slane %v8304_v10, %v1087_v17  ;;  %v7561_v23 = vld [vmem:[#allocation12 + $0x200] ss:$28 sps:$4 sm:$0xff]  }
 0x369   :  { %v2593_v34 = vpop.f32.mrf.mxu1  ;;  %5759 = vmatprep.subr.bf16.mxu0 %v7560_v21  ;;  %v7549_v19 = vld [vmem:[#allocation12 + $0x270] ss:$28 sps:$4 sm:$0xff]   ;;  %v1092_v21 = vrot.slane %v8304_v10, %v1091_v14  ;;  %v7555_v32 = vld [vmem:[#allocation12 + $0x238] ss:$28 sps:$4 sm:$0xff]  }
 0x36a   :  { %v2635_v37 = vadd.f32 %v2634_v25, %v2592_v29  ;;  %v2594_v38 = vadd.f32 %v2593_v34, %v1084_v11  ;;  %v2636_v39 = vpop.f32.mrf.mxu0  ;;  %v2730_v43 = vmax.f32 %v2633_v36, 0.0  ;;  %v7543_v11 = vld [vmem:[#allocation12 + $0x2a8] ss:$28 sps:$4 sm:$0xff]   ;;  %v7597_v14 = vld [vmem:[#allocation12 + $0x7b0] ss:$28 sps:$4 sm:$0xff]  }
 0x36b   :  { %v7563_v25 = vld [vmem:[#allocation12 + $0x204] ss:$28 sps:$4 sm:$0xff]  }
 0x36c   :  { %v2637_v40 = vadd.f32 %v2636_v39, %v2594_v38  ;;  %5760 = vmatpush2.bf16.msra.mxu0 %v7558_v33  ;;  %v2737_v42 = vmax.f32 %v2635_v37, 0.0 }
 0x36d   :  { %5761 = vmatprep.subr.bf16.mxu0 %v7566_v35 }
 0x36e   :  { %v2738_v26 = vmax.f32 %v2637_v40, 0.0  ;;  %v8350_v48 = vpack.c.bf16 %v2737_v42, %v2729_v46  ;;  %v7569_v40 = vld [vmem:[#allocation12 + $0x1cc] ss:$28 sps:$4 sm:$0xff]  }
 0x36f   :  { %v7567_v46 = vld [vmem:[#allocation12 + $0x1c8] ss:$28 sps:$4 sm:$0xff]  }
 0x370   :  { %v8348_v16 = vpack.c.bf16 %v2738_v26, %v2730_v43  ;;  %5762 = vmatpush2.bf16.msra.mxu0 %v7564_v41 }
 0x371   :  { %5817 = vmatprep.subr.bf16.mxu0 %v7572_v15 }
 0x372   :  { %5720 = vmatprep.mubr.bf16.mxu1 %v8348_v16 }
 0x373   :  { %5721 = vmatmul.mubr.bf16.vlgmr.msra.gmra.mxu1 %v8350_v48 }
 0x374   :  { %5775 = vmatpush1.bf16.msra.mxu1 %v7477_v47  ;;  %5806 = vmatprep.mubr.bf16.mxu1 %v8318_v44 }
 0x375   :  { %5776 = vmatprep.subr.bf16.mxu1 %v7485_v49  ;;  %v7575_v49 = vld [vmem:[#allocation12 + $0x894] ss:$28 sps:$4 sm:$0xff]  }
 0x378   :  { %5777 = vmatpush1.bf16.msra.mxu1 %v7483_v50 }
 0x379   :  { %5778 = vmatprep.subr.bf16.mxu1 %v7491_v51 }
 0x37c   :  { %5779 = vmatpush1.bf16.msra.mxu1 %v7489_v52 }
 0x37d   :  { %5780 = vmatprep.subr.bf16.mxu1 %v7497_v55 }
 0x380   :  { %5781 = vmatpush1.bf16.msra.mxu1 %v7495_v56  ;;  %v7570_v56 = vld [vmem:[#allocation12 + $0x510] ss:$28 sps:$4 sm:$0xff]  }
 0x381   :  { %5782 = vmatprep.subr.bf16.mxu1 %v7503_v57  ;;  %v7573_v57 = vld [vmem:[#allocation12 + $0x890] ss:$28 sps:$4 sm:$0xff]  }
 0x384   :  { %5783 = vmatpush1.bf16.msra.mxu1 %v7501_v58 }
 0x385   :  { %5784 = vmatprep.subr.bf16.mxu1 %v7509_v59  ;;  %v7578_v59 = vld [vmem:[#allocation12 + $0x4dc] ss:$28 sps:$4 sm:$0xff]  }
 0x388   :  { %5785 = vmatpush1.bf16.msra.mxu1 %v7507_v60  ;;  %v7581_v60 = vld [vmem:[#allocation12 + $0x85c] ss:$28 sps:$4 sm:$0xff]  }
 0x389   :  { %5786 = vmatprep.subr.bf16.mxu1 %v7515_v61  ;;  %v7576_v61 = vld [vmem:[#allocation12 + $0x4d8] ss:$28 sps:$4 sm:$0xff]  }
 0x38c   :  { %5787 = vmatpush1.bf16.msra.mxu1 %v7513_v62  ;;  %v7579_v62 = vld [vmem:[#allocation12 + $0x858] ss:$28 sps:$4 sm:$0xff]  }
 0x38d   :  { %5788 = vmatprep.subr.bf16.mxu1 %v7521_v63  ;;  %v7584_v63 = vld [vmem:[#allocation12 + $0x4a4] ss:$28 sps:$4 sm:$0xff]  }
 0x390   :  { %5789 = vmatpush1.bf16.msra.mxu1 %v7519_v0  ;;  %v7587_v0 = vld [vmem:[#allocation12 + $0x824] ss:$28 sps:$4 sm:$0xff]  }
 0x391   :  { %5790 = vmatprep.subr.bf16.mxu1 %v7527_v1  ;;  %v7582_v1 = vld [vmem:[#allocation12 + $0x4a0] ss:$28 sps:$4 sm:$0xff]  }
 0x394   :  { %5791 = vmatpush2.bf16.msra.mxu1 %v7525_v2  ;;  %v7585_v2 = vld [vmem:[#allocation12 + $0x820] ss:$28 sps:$4 sm:$0xff]  }
 0x395   :  { %5792 = vmatprep.subr.bf16.mxu1 %v7533_v3  ;;  %v7590_v3 = vld [vmem:[#allocation12 + $0x46c] ss:$28 sps:$4 sm:$0xff]  }
 0x398   :  { %5793 = vmatpush2.bf16.msra.mxu1 %v7531_v4  ;;  %v7593_v4 = vld [vmem:[#allocation12 + $0x7ec] ss:$28 sps:$4 sm:$0xff]  }
 0x399   :  { %5794 = vmatprep.subr.bf16.mxu1 %v7539_v5  ;;  %v7588_v5 = vld [vmem:[#allocation12 + $0x468] ss:$28 sps:$4 sm:$0xff]  }
 0x39c   :  { %5795 = vmatpush2.bf16.msra.mxu1 %v7537_v8  ;;  %v7591_v8 = vld [vmem:[#allocation12 + $0x7e8] ss:$28 sps:$4 sm:$0xff]  }
 0x39d   :  { %5796 = vmatprep.subr.bf16.mxu1 %v7545_v9  ;;  %v7596_v9 = vld [vmem:[#allocation12 + $0x434] ss:$28 sps:$4 sm:$0xff]  }
 0x3a0   :  { %5797 = vmatpush2.bf16.msra.mxu1 %v7543_v11  ;;  %v7599_v11 = vld [vmem:[#allocation12 + $0x7b4] ss:$28 sps:$4 sm:$0xff]  }
 0x3a1   :  { %5798 = vmatprep.subr.bf16.mxu1 %v7551_v12  ;;  %v7594_v12 = vld [vmem:[#allocation12 + $0x430] ss:$28 sps:$4 sm:$0xff]  }
 0x3a3   :  { %v2673_v22 = vpop.f32.mrf.mxu1 }
 0x3a4   :  { %v2716_v31 = vpop.f32.mrf.mxu0  ;;  %5799 = vmatpush2.bf16.msra.mxu1 %v7549_v19  ;;  %v2674_v35 = vadd.f32 %v2673_v22, %v1088_v24  ;;  %v7602_v19 = vld [vmem:[#allocation12 + $0x3fc] ss:$28 sps:$4 sm:$0xff]   ;;  %v7608_v22 = vld [vmem:[#allocation12 + $0x3c4] ss:$28 sps:$4 sm:$0xff]  }
 0x3a5   :  { %v2675_v29 = vpop.f32.mrf.mxu1  ;;  %5800 = vmatprep.subr.bf16.mxu1 %v7557_v20  ;;  %v7605_v20 = vld [vmem:[#allocation12 + $0x77c] ss:$28 sps:$4 sm:$0xff]  }
 0x3a6   :  { %v2676_v33 = vadd.f32 %v2675_v29, %v1092_v21  ;;  %v2718_v34 = vpop.f32.mrf.mxu0  ;;  %v2717_v15 = vadd.f32 %v2716_v31, %v2674_v35  ;;  %v7611_v31 = vld [vmem:[#allocation12 + $0x744] ss:$28 sps:$4 sm:$0xff]  }
 0x3a7   :  { %v2677_v36 = vpop.f32.mrf.mxu1  ;;  %v7609_v29 = vld [vmem:[#allocation12 + $0x740] ss:$28 sps:$4 sm:$0xff]   ;;  %v7615_v35 = vld [vmem:[#allocation12 + $0x708] ss:$28 sps:$4 sm:$0xff]  }
 0x3a8   :  { %v2678_v37 = vadd.f32 %v2677_v36, %v1088_v24  ;;  %v2720_v38 = vpop.f32.mrf.mxu0  ;;  %5801 = vmatpush2.bf16.msra.mxu1 %v7555_v32  ;;  %v2719_v41 = vadd.f32 %v2718_v34, %v2676_v33  ;;  %v2731_v52 = vmax.f32 %v2717_v15, 0.0  ;;  %v7603_v24 = vld [vmem:[#allocation12 + $0x778] ss:$28 sps:$4 sm:$0xff]   ;;  %v7606_v32 = vld [vmem:[#allocation12 + $0x3c0] ss:$28 sps:$4 sm:$0xff]  }
 0x3a9   :  { %v2679_v39 = vpop.f32.mrf.mxu1  ;;  %5802 = vmatprep.subr.bf16.mxu1 %v7563_v25  ;;  %v7614_v25 = vld [vmem:[#allocation12 + $0x38c] ss:$28 sps:$4 sm:$0xff]   ;;  %v7620_v36 = vld [vmem:[#allocation12 + $0x6d4] ss:$28 sps:$4 sm:$0xff]   ;;  %v7635_v15 = vld [vmem:[#allocation12 + $0x9e4] ss:$28 sps:$4 sm:$0xff]  }
 0x3aa   :  { %v2721_v10 = vadd.f32 %v2720_v38, %v2678_v37  ;;  %v2680_v42 = vadd.f32 %v2679_v39, %v1092_v21  ;;  %v2722_v43 = vpop.f32.mrf.mxu0  ;;  %v2732_v50 = vmax.f32 %v2719_v41, 0.0  ;;  %v7600_v21 = vld [vmem:[#allocation12 + $0x3f8] ss:$28 sps:$4 sm:$0xff]   ;;  %v7617_v33 = vld [vmem:[#allocation12 + $0x70c] ss:$28 sps:$4 sm:$0xff]  }
 0x3ab   :  { %v7612_v34 = vld [vmem:[#allocation12 + $0x388] ss:$28 sps:$4 sm:$0xff]   ;;  %v7623_v37 = vld [vmem:[#allocation12 + $0xa54] ss:$28 sps:$4 sm:$0xff]   ;;  %v7626_v39 = vld [vmem:[#allocation12 + $0x69c] ss:$28 sps:$4 sm:$0xff]  }
 0x3ac   :  { %v2723_v26 = vadd.f32 %v2722_v43, %v2680_v42  ;;  %5803 = vmatpush2.bf16.msra.mxu1 %v7561_v23  ;;  %v2739_v47 = vmax.f32 %v2721_v10, 0.0  ;;  %v7618_v38 = vld [vmem:[#allocation12 + $0x6d0] ss:$28 sps:$4 sm:$0xff]   ;;  %v7624_v41 = vld [vmem:[#allocation12 + $0x698] ss:$28 sps:$4 sm:$0xff]  }
 0x3ad   :  { %5804 = vmatprep.subr.bf16.mxu1 %v7569_v40  ;;  %v7621_v23 = vld [vmem:[#allocation12 + $0xa50] ss:$28 sps:$4 sm:$0xff]   ;;  %v7629_v40 = vld [vmem:[#allocation12 + $0xa1c] ss:$28 sps:$4 sm:$0xff]   ;;  %v7632_v42 = vld [vmem:[#allocation12 + $0x664] ss:$28 sps:$4 sm:$0xff]  }
 0x3ae   :  { %v2740_v51 = vmax.f32 %v2723_v26, 0.0  ;;  %v8363_v58 = vpack.c.bf16 %v2739_v47, %v2731_v52  ;;  %v7627_v10 = vld [vmem:[#allocation12 + $0xa18] ss:$28 sps:$4 sm:$0xff]   ;;  %v7630_v43 = vld [vmem:[#allocation12 + $0x660] ss:$28 sps:$4 sm:$0xff]  }
 0x3af   :  { %v7633_v26 = vld [vmem:[#allocation12 + $0x9e0] ss:$28 sps:$4 sm:$0xff]   ;;  %v7641_v47 = vld [vmem:[#allocation12 + $0x9ac] ss:$28 sps:$4 sm:$0xff]   ;;  %v7647_v52 = vld [vmem:[#allocation12 + $0x974] ss:$28 sps:$4 sm:$0xff]  }
 0x3b0   :  { %v8361_v55 = vpack.c.bf16 %v2740_v51, %v2732_v50  ;;  %5805 = vmatpush2.bf16.msra.mxu1 %v7567_v46  ;;  %v7638_v46 = vld [vmem:[#allocation12 + $0x62c] ss:$28 sps:$4 sm:$0xff]   ;;  %v7644_v51 = vld [vmem:[#allocation12 + $0x5f4] ss:$28 sps:$4 sm:$0xff]  }
 0x3b1   :  { %5860 = vmatprep.subr.bf16.mxu1 %v7575_v49  ;;  %v7636_v49 = vld [vmem:[#allocation12 + $0x628] ss:$28 sps:$4 sm:$0xff]  }
 0x3b2   :  { %5763 = vmatprep.mubr.bf16.mxu0 %v8361_v55  ;;  %v7639_v50 = vld [vmem:[#allocation12 + $0x9a8] ss:$28 sps:$4 sm:$0xff]  }
 0x3b3   :  { %5807 = vmatmul.mubr.bf16.vlgmr.msra.gmra.mxu1 %v8327_v45  ;;  %5764 = vmatmul.mubr.bf16.vlgmr.msra.gmra.mxu0 %v8363_v58 }
 0x3b4   :  { %5818 = vmatpush1.bf16.msra.mxu0 %v7570_v56  ;;  %5861 = vmatpush1.bf16.msra.mxu1 %v7573_v57  ;;  %v7642_v56 = vld [vmem:[#allocation12 + $0x5f0] ss:$28 sps:$4 sm:$0xff]  }
 0x3b5   :  { %5892 = vmatprep.mubr.bf16.mxu1 %v8348_v16  ;;  %5849 = vmatprep.mubr.bf16.mxu0 %v8334_v13  ;;  %v7645_v57 = vld [vmem:[#allocation12 + $0x970] ss:$28 sps:$4 sm:$0xff]  }
 0x3b6   :  { %5819 = vmatprep.subr.bf16.mxu0 %v7578_v59  ;;  %5862 = vmatprep.subr.bf16.mxu1 %v7581_v60  ;;  %v7650_v59 = vld [vmem:[#allocation12 + $0x5bc] ss:$28 sps:$4 sm:$0xff]  }
 0x3b7   :  { %v7653_v60 = vld [vmem:[#allocation12 + $0x93c] ss:$28 sps:$4 sm:$0xff]  }
 0x3b8   :  { %5820 = vmatpush1.bf16.msra.mxu0 %v7576_v61  ;;  %5863 = vmatpush1.bf16.msra.mxu1 %v7579_v62  ;;  %v7648_v61 = vld [vmem:[#allocation12 + $0x5b8] ss:$28 sps:$4 sm:$0xff]  }
 0x3b9   :  { %5821 = vmatprep.subr.bf16.mxu0 %v7584_v63  ;;  %5864 = vmatprep.subr.bf16.mxu1 %v7587_v0  ;;  %v7651_v62 = vld [vmem:[#allocation12 + $0x938] ss:$28 sps:$4 sm:$0xff]   ;;  %v7656_v63 = vld [vmem:[#allocation12 + $0x584] ss:$28 sps:$4 sm:$0xff]  }
 0x3ba   :  { %v7659_v0 = vld [vmem:[#allocation12 + $0x904] ss:$28 sps:$4 sm:$0xff]  }
 0x3bc   :  { %5822 = vmatpush1.bf16.msra.mxu0 %v7582_v1  ;;  %5865 = vmatpush1.bf16.msra.mxu1 %v7585_v2  ;;  %v7654_v1 = vld [vmem:[#allocation12 + $0x580] ss:$28 sps:$4 sm:$0xff]  }
 0x3bd   :  { %5823 = vmatprep.subr.bf16.mxu0 %v7590_v3  ;;  %5866 = vmatprep.subr.bf16.mxu1 %v7593_v4  ;;  %v7657_v2 = vld [vmem:[#allocation12 + $0x900] ss:$28 sps:$4 sm:$0xff]   ;;  %v7662_v3 = vld [vmem:[#allocation12 + $0x54c] ss:$28 sps:$4 sm:$0xff]  }
 0x3be   :  { %v7665_v4 = vld [vmem:[#allocation12 + $0x8cc] ss:$28 sps:$4 sm:$0xff]  }
 0x3c0   :  { %5824 = vmatpush1.bf16.msra.mxu0 %v7588_v5  ;;  %5867 = vmatpush1.bf16.msra.mxu1 %v7591_v8  ;;  %v7660_v5 = vld [vmem:[#allocation12 + $0x548] ss:$28 sps:$4 sm:$0xff]  }
 0x3c1   :  { %5825 = vmatprep.subr.bf16.mxu0 %v7596_v9  ;;  %5868 = vmatprep.subr.bf16.mxu1 %v7599_v11  ;;  %v7663_v8 = vld [vmem:[#allocation12 + $0x8c8] ss:$28 sps:$4 sm:$0xff]   ;;  %v7668_v9 = vld [vmem:[#allocation12 + $0xc14] ss:$28 sps:$4 sm:$0xff]   ;;  %v7671_v11 = vld [vmem:[#allocation12 + $0x19c] ss:$28 sps:$4 sm:$0xff]  }
 0x3c4   :  { %5826 = vmatpush1.bf16.msra.mxu0 %v7594_v12  ;;  %5869 = vmatpush1.bf16.msra.mxu1 %v7597_v14  ;;  %v7666_v12 = vld [vmem:[#allocation12 + $0xc10] ss:$28 sps:$4 sm:$0xff]   ;;  %v7669_v14 = vld [vmem:[#allocation12 + $0x198] ss:$28 sps:$4 sm:$0xff]  }
 0x3c5   :  { %5827 = vmatprep.subr.bf16.mxu0 %v7602_v19  ;;  %5870 = vmatprep.subr.bf16.mxu1 %v7605_v20  ;;  %v7674_v19 = vld [vmem:[#allocation12 + $0xbdc] ss:$28 sps:$4 sm:$0xff]   ;;  %v7677_v20 = vld [vmem:[#allocation12 + $0x164] ss:$28 sps:$4 sm:$0xff]  }
 0x3c8   :  { %5828 = vmatpush1.bf16.msra.mxu0 %v7600_v21  ;;  %5871 = vmatpush1.bf16.msra.mxu1 %v7603_v24  ;;  %v7672_v21 = vld [vmem:[#allocation12 + $0xbd8] ss:$28 sps:$4 sm:$0xff]   ;;  %v7675_v24 = vld [vmem:[#allocation12 + $0x160] ss:$28 sps:$4 sm:$0xff]  }
 0x3c9   :  { %5829 = vmatprep.subr.bf16.mxu0 %v7608_v22  ;;  %5872 = vmatprep.subr.bf16.mxu1 %v7611_v31  ;;  %v7680_v22 = vld [vmem:[#allocation12 + $0xba4] ss:$28 sps:$4 sm:$0xff]   ;;  %v7683_v31 = vld [vmem:[#allocation12 + $0x12c] ss:$28 sps:$4 sm:$0xff]  }
 0x3cc   :  { %5830 = vmatpush1.bf16.msra.mxu0 %v7606_v32  ;;  %5873 = vmatpush1.bf16.msra.mxu1 %v7609_v29  ;;  %v7678_v32 = vld [vmem:[#allocation12 + $0xba0] ss:$28 sps:$4 sm:$0xff]   ;;  %v7681_v29 = vld [vmem:[#allocation12 + $0x128] ss:$28 sps:$4 sm:$0xff]  }
 0x3cd   :  { %5831 = vmatprep.subr.bf16.mxu0 %v7614_v25  ;;  %5874 = vmatprep.subr.bf16.mxu1 %v7617_v33  ;;  %v7686_v25 = vld [vmem:[#allocation12 + $0xb6c] ss:$28 sps:$4 sm:$0xff]   ;;  %v7689_v33 = vld [vmem:[#allocation12 + $0xf4] ss:$28 sps:$4 sm:$0xff]  }
 0x3d0   :  { %5832 = vmatpush1.bf16.msra.mxu0 %v7612_v34  ;;  %5875 = vmatpush1.bf16.msra.mxu1 %v7615_v35  ;;  %v7684_v34 = vld [vmem:[#allocation12 + $0xb68] ss:$28 sps:$4 sm:$0xff]   ;;  %v7687_v35 = vld [vmem:[#allocation12 + $0xf0] ss:$28 sps:$4 sm:$0xff]  }
 0x3d1   :  { %5833 = vmatprep.subr.bf16.mxu0 %v7620_v36  ;;  %5876 = vmatprep.subr.bf16.mxu1 %v7623_v37  ;;  %v7692_v36 = vld [vmem:[#allocation12 + $0xb34] ss:$28 sps:$4 sm:$0xff]   ;;  %v7695_v37 = vld [vmem:[#allocation12 + $0xbc] ss:$28 sps:$4 sm:$0xff]  }
 0x3d4   :  { %5834 = vmatpush2.bf16.msra.mxu0 %v7618_v38  ;;  %5877 = vmatpush2.bf16.msra.mxu1 %v7621_v23  ;;  %v7690_v38 = vld [vmem:[#allocation12 + $0xb30] ss:$28 sps:$4 sm:$0xff]   ;;  %v7693_v23 = vld [vmem:[#allocation12 + $0xb8] ss:$28 sps:$4 sm:$0xff]  }
 0x3d5   :  { %5835 = vmatprep.subr.bf16.mxu0 %v7626_v39  ;;  %5878 = vmatprep.subr.bf16.mxu1 %v7629_v40  ;;  %v7698_v39 = vld [vmem:[#allocation12 + $0xafc] ss:$28 sps:$4 sm:$0xff]   ;;  %v7701_v40 = vld [vmem:[#allocation12 + $0x84] ss:$28 sps:$4 sm:$0xff]  }
 0x3d8   :  { %5836 = vmatpush2.bf16.msra.mxu0 %v7624_v41  ;;  %5879 = vmatpush2.bf16.msra.mxu1 %v7627_v10  ;;  %v7696_v41 = vld [vmem:[#allocation12 + $0xaf8] ss:$28 sps:$4 sm:$0xff]   ;;  %v7699_v10 = vld [vmem:[#allocation12 + $0x80] ss:$28 sps:$4 sm:$0xff]  }
 0x3d9   :  { %5837 = vmatprep.subr.bf16.mxu0 %v7632_v42  ;;  %5880 = vmatprep.subr.bf16.mxu1 %v7635_v15  ;;  %v7704_v42 = vld [vmem:[#allocation12 + $0xac4] ss:$28 sps:$4 sm:$0xff]   ;;  %v7707_v15 = vld [vmem:[#allocation12 + $0x4c] ss:$28 sps:$4 sm:$0xff]  }
 0x3dc   :  { %5838 = vmatpush2.bf16.msra.mxu0 %v7630_v43  ;;  %5881 = vmatpush2.bf16.msra.mxu1 %v7633_v26  ;;  %v7702_v43 = vld [vmem:[#allocation12 + $0xac0] ss:$28 sps:$4 sm:$0xff]   ;;  %v7705_v26 = vld [vmem:[#allocation12 + $0x48] ss:$28 sps:$4 sm:$0xff]  }
 0x3dd   :  { %5839 = vmatprep.subr.bf16.mxu0 %v7638_v46  ;;  %5882 = vmatprep.subr.bf16.mxu1 %v7641_v47  ;;  %v7710_v46 = vld [vmem:[#allocation12 + $0xa8c] ss:$28 sps:$4 sm:$0xff]   ;;  %v7713_v47 = vld [vmem:[#allocation12 + $0x14] ss:$28 sps:$4 sm:$0xff]  }
 0x3e0   :  { %5840 = vmatpush2.bf16.msra.mxu0 %v7636_v49  ;;  %5883 = vmatpush2.bf16.msra.mxu1 %v7639_v50  ;;  %v7708_v49 = vld [vmem:[#allocation12 + $0xa88] ss:$28 sps:$4 sm:$0xff]   ;;  %v7711_v50 = vld [vmem:[#allocation12 + $0x10] ss:$28 sps:$4 sm:$0xff]  }
 0x3e1   :  { %5841 = vmatprep.subr.bf16.mxu0 %v7644_v51  ;;  %5884 = vmatprep.subr.bf16.mxu1 %v7647_v52  ;;  %v7716_v51 = vld [vmem:[#allocation12 + $0xdd4] ss:$28 sps:$4 sm:$0xff]   ;;  %v7719_v52 = vld [vmem:[#allocation12 + $0x35c] ss:$28 sps:$4 sm:$0xff]  }
 0x3e4   :  { %5842 = vmatpush2.bf16.msra.mxu0 %v7642_v56  ;;  %5885 = vmatpush2.bf16.msra.mxu1 %v7645_v57  ;;  %v7714_v56 = vld [vmem:[#allocation12 + $0xdd0] ss:$28 sps:$4 sm:$0xff]   ;;  %v7717_v57 = vld [vmem:[#allocation12 + $0x358] ss:$28 sps:$4 sm:$0xff]  }
 0x3e5   :  { %5843 = vmatprep.subr.bf16.mxu0 %v7650_v59  ;;  %5886 = vmatprep.subr.bf16.mxu1 %v7653_v60  ;;  %v7722_v59 = vld [vmem:[#allocation12 + $0xd9c] ss:$28 sps:$4 sm:$0xff]   ;;  %v7725_v60 = vld [vmem:[#allocation12 + $0x324] ss:$28 sps:$4 sm:$0xff]  }
 0x3e8   :  { %5844 = vmatpush2.bf16.msra.mxu0 %v7648_v61  ;;  %5887 = vmatpush2.bf16.msra.mxu1 %v7651_v62  ;;  %v7720_v61 = vld [vmem:[#allocation12 + $0xd98] ss:$28 sps:$4 sm:$0xff]   ;;  %v7723_v62 = vld [vmem:[#allocation12 + $0x320] ss:$28 sps:$4 sm:$0xff]  }
 0x3e9   :  { %5845 = vmatprep.subr.bf16.mxu0 %v7656_v63  ;;  %5888 = vmatprep.subr.bf16.mxu1 %v7659_v0  ;;  %v7728_v63 = vld [vmem:[#allocation12 + $0xd64] ss:$28 sps:$4 sm:$0xff]   ;;  %v7731_v0 = vld [vmem:[#allocation12 + $0x2ec] ss:$28 sps:$4 sm:$0xff]  }
 0x3ec   :  { %5846 = vmatpush2.bf16.msra.mxu0 %v7654_v1  ;;  %5889 = vmatpush2.bf16.msra.mxu1 %v7657_v2  ;;  %v7726_v1 = vld [vmem:[#allocation12 + $0xd60] ss:$28 sps:$4 sm:$0xff]   ;;  %v7729_v2 = vld [vmem:[#allocation12 + $0x2e8] ss:$28 sps:$4 sm:$0xff]  }
 0x3ed   :  { %5847 = vmatprep.subr.bf16.mxu0 %v7662_v3  ;;  %5890 = vmatprep.subr.bf16.mxu1 %v7665_v4  ;;  %v7734_v3 = vld [vmem:[#allocation12 + $0xd2c] ss:$28 sps:$4 sm:$0xff]   ;;  %v7737_v4 = vld [vmem:[#allocation12 + $0x2b4] ss:$28 sps:$4 sm:$0xff]  }
 0x3f0   :  { %5848 = vmatpush2.bf16.msra.mxu0 %v7660_v5  ;;  %5891 = vmatpush2.bf16.msra.mxu1 %v7663_v8  ;;  %v7732_v5 = vld [vmem:[#allocation12 + $0xd28] ss:$28 sps:$4 sm:$0xff]   ;;  %v7735_v8 = vld [vmem:[#allocation12 + $0x2b0] ss:$28 sps:$4 sm:$0xff]  }
 0x3f1   :  { %5903 = vmatprep.subr.bf16.mxu0 %v7668_v9  ;;  %5946 = vmatprep.subr.bf16.mxu1 %v7671_v11  ;;  %v7740_v9 = vld [vmem:[#allocation12 + $0xcf4] ss:$28 sps:$4 sm:$0xff]   ;;  %v7743_v11 = vld [vmem:[#allocation12 + $0x27c] ss:$28 sps:$4 sm:$0xff]  }
 0x3f3   :  { %5850 = vmatmul.mubr.bf16.vlgmr.msra.gmra.mxu0 %v8336_v18  ;;  %5893 = vmatmul.mubr.bf16.vlgmr.msra.gmra.mxu1 %v8350_v48 }
 0x3f4   :  { %5904 = vmatpush1.bf16.msra.mxu0 %v7666_v12  ;;  %5935 = vmatprep.mubr.bf16.mxu0 %v8361_v55  ;;  %v7738_v12 = vld [vmem:[#allocation12 + $0xcf0] ss:$28 sps:$4 sm:$0xff]  }
 0x3f5   :  { %5947 = vmatpush1.bf16.msra.mxu1 %v7669_v14  ;;  %5978 = vmatprep.mubr.bf16.mxu1 %v8318_v44  ;;  %v7741_v14 = vld [vmem:[#allocation12 + $0x278] ss:$28 sps:$4 sm:$0xff]  }
 0x3f6   :  { %5905 = vmatprep.subr.bf16.mxu0 %v7674_v19  ;;  %5948 = vmatprep.subr.bf16.mxu1 %v7677_v20  ;;  %v7746_v19 = vld [vmem:[#allocation12 + $0xcbc] ss:$28 sps:$4 sm:$0xff]   ;;  %v7749_v20 = vld [vmem:[#allocation12 + $0x244] ss:$28 sps:$4 sm:$0xff]  }
 0x3f8   :  { %5906 = vmatpush1.bf16.msra.mxu0 %v7672_v21  ;;  %v7744_v21 = vld [vmem:[#allocation12 + $0xcb8] ss:$28 sps:$4 sm:$0xff]  }
 0x3f9   :  { %5949 = vmatpush1.bf16.msra.mxu1 %v7675_v24  ;;  %5907 = vmatprep.subr.bf16.mxu0 %v7680_v22  ;;  %v7747_v24 = vld [vmem:[#allocation12 + $0x240] ss:$28 sps:$4 sm:$0xff]  }
 0x3fa   :  { %5950 = vmatprep.subr.bf16.mxu1 %v7683_v31  ;;  %v7752_v22 = vld [vmem:[#allocation12 + $0xc84] ss:$28 sps:$4 sm:$0xff]   ;;  %v7755_v31 = vld [vmem:[#allocation12 + $0x20c] ss:$28 sps:$4 sm:$0xff]  }
 0x3fc   :  { %5908 = vmatpush1.bf16.msra.mxu0 %v7678_v32  ;;  %v7750_v32 = vld [vmem:[#allocation12 + $0xc80] ss:$28 sps:$4 sm:$0xff]  }
 0x3fd   :  { %5951 = vmatpush1.bf16.msra.mxu1 %v7681_v29  ;;  %5909 = vmatprep.subr.bf16.mxu0 %v7686_v25  ;;  %v7753_v29 = vld [vmem:[#allocation12 + $0x208] ss:$28 sps:$4 sm:$0xff]  }
 0x3fe   :  { %5952 = vmatprep.subr.bf16.mxu1 %v7689_v33  ;;  %v7758_v25 = vld [vmem:[#allocation12 + $0xc4c] ss:$28 sps:$4 sm:$0xff]   ;;  %v7761_v33 = vld [vmem:[#allocation12 + $0x1d4] ss:$28 sps:$4 sm:$0xff]  }
 0x400   :  { %5910 = vmatpush1.bf16.msra.mxu0 %v7684_v34  ;;  %v7756_v34 = vld [vmem:[#allocation12 + $0xc48] ss:$28 sps:$4 sm:$0xff]  }
 0x401   :  { %5953 = vmatpush1.bf16.msra.mxu1 %v7687_v35  ;;  %5911 = vmatprep.subr.bf16.mxu0 %v7692_v36  ;;  %v7759_v35 = vld [vmem:[#allocation12 + $0x1d0] ss:$28 sps:$4 sm:$0xff]   ;;  %v7764_v36 = vld [vmem:[#allocation12 + $0x51c] ss:$28 sps:$4 sm:$0xff]  }
 0x402   :  { %5954 = vmatprep.subr.bf16.mxu1 %v7695_v37  ;;  %v7767_v37 = vld [vmem:[#allocation12 + $0x89c] ss:$28 sps:$4 sm:$0xff]  }
 0x404   :  { %5912 = vmatpush1.bf16.msra.mxu0 %v7690_v38  ;;  %v7762_v38 = vld [vmem:[#allocation12 + $0x518] ss:$28 sps:$4 sm:$0xff]  }
 0x405   :  { %5955 = vmatpush1.bf16.msra.mxu1 %v7693_v23  ;;  %5913 = vmatprep.subr.bf16.mxu0 %v7698_v39  ;;  %v7765_v23 = vld [vmem:[#allocation12 + $0x898] ss:$28 sps:$4 sm:$0xff]   ;;  %v7770_v39 = vld [vmem:[#allocation12 + $0x4e4] ss:$28 sps:$4 sm:$0xff]  }
 0x406   :  { %5956 = vmatprep.subr.bf16.mxu1 %v7701_v40  ;;  %v7773_v40 = vld [vmem:[#allocation12 + $0x864] ss:$28 sps:$4 sm:$0xff]  }
 0x408   :  { %5914 = vmatpush1.bf16.msra.mxu0 %v7696_v41  ;;  %v7768_v41 = vld [vmem:[#allocation12 + $0x4e0] ss:$28 sps:$4 sm:$0xff]  }
 0x409   :  { %5957 = vmatpush1.bf16.msra.mxu1 %v7699_v10  ;;  %5915 = vmatprep.subr.bf16.mxu0 %v7704_v42  ;;  %v7771_v10 = vld [vmem:[#allocation12 + $0x860] ss:$28 sps:$4 sm:$0xff]   ;;  %v7776_v42 = vld [vmem:[#allocation12 + $0x4ac] ss:$28 sps:$4 sm:$0xff]  }
 0x40a   :  { %5958 = vmatprep.subr.bf16.mxu1 %v7707_v15  ;;  %v7779_v15 = vld [vmem:[#allocation12 + $0x82c] ss:$28 sps:$4 sm:$0xff]  }
 0x40c   :  { %5916 = vmatpush1.bf16.msra.mxu0 %v7702_v43  ;;  %v7774_v43 = vld [vmem:[#allocation12 + $0x4a8] ss:$28 sps:$4 sm:$0xff]  }
 0x40d   :  { %5959 = vmatpush1.bf16.msra.mxu1 %v7705_v26  ;;  %5917 = vmatprep.subr.bf16.mxu0 %v7710_v46  ;;  %v7777_v26 = vld [vmem:[#allocation12 + $0x828] ss:$28 sps:$4 sm:$0xff]   ;;  %v7782_v46 = vld [vmem:[#allocation12 + $0x474] ss:$28 sps:$4 sm:$0xff]  }
 0x40e   :  { %5960 = vmatprep.subr.bf16.mxu1 %v7713_v47  ;;  %v7785_v47 = vld [vmem:[#allocation12 + $0x7f4] ss:$28 sps:$4 sm:$0xff]  }
 0x410   :  { %5918 = vmatpush1.bf16.msra.mxu0 %v7708_v49  ;;  %v7780_v49 = vld [vmem:[#allocation12 + $0x470] ss:$28 sps:$4 sm:$0xff]  }
 0x411   :  { %5961 = vmatpush1.bf16.msra.mxu1 %v7711_v50  ;;  %5919 = vmatprep.subr.bf16.mxu0 %v7716_v51  ;;  %v7783_v50 = vld [vmem:[#allocation12 + $0x7f0] ss:$28 sps:$4 sm:$0xff]   ;;  %v7788_v51 = vld [vmem:[#allocation12 + $0x43c] ss:$28 sps:$4 sm:$0xff]  }
 0x412   :  { %5962 = vmatprep.subr.bf16.mxu1 %v7719_v52  ;;  %v7791_v52 = vld [vmem:[#allocation12 + $0x7bc] ss:$28 sps:$4 sm:$0xff]  }
 0x414   :  { %5920 = vmatpush2.bf16.msra.mxu0 %v7714_v56  ;;  %v7786_v56 = vld [vmem:[#allocation12 + $0x438] ss:$28 sps:$4 sm:$0xff]  }
 0x415   :  { %5963 = vmatpush2.bf16.msra.mxu1 %v7717_v57  ;;  %5921 = vmatprep.subr.bf16.mxu0 %v7722_v59  ;;  %v7789_v57 = vld [vmem:[#allocation12 + $0x7b8] ss:$28 sps:$4 sm:$0xff]   ;;  %v7794_v59 = vld [vmem:[#allocation12 + $0x404] ss:$28 sps:$4 sm:$0xff]  }
 0x416   :  { %5964 = vmatprep.subr.bf16.mxu1 %v7725_v60  ;;  %v7797_v60 = vld [vmem:[#allocation12 + $0x784] ss:$28 sps:$4 sm:$0xff]  }
 0x418   :  { %5922 = vmatpush2.bf16.msra.mxu0 %v7720_v61  ;;  %v7792_v61 = vld [vmem:[#allocation12 + $0x400] ss:$28 sps:$4 sm:$0xff]  }
 0x419   :  { %5965 = vmatpush2.bf16.msra.mxu1 %v7723_v62  ;;  %5923 = vmatprep.subr.bf16.mxu0 %v7728_v63  ;;  %v7795_v62 = vld [vmem:[#allocation12 + $0x780] ss:$28 sps:$4 sm:$0xff]   ;;  %v7800_v63 = vld [vmem:[#allocation12 + $0x3cc] ss:$28 sps:$4 sm:$0xff]  }
 0x41a   :  { %5966 = vmatprep.subr.bf16.mxu1 %v7731_v0  ;;  %v7803_v0 = vld [vmem:[#allocation12 + $0x74c] ss:$28 sps:$4 sm:$0xff]  }
 0x41c   :  { %5924 = vmatpush2.bf16.msra.mxu0 %v7726_v1  ;;  %v7798_v1 = vld [vmem:[#allocation12 + $0x3c8] ss:$28 sps:$4 sm:$0xff]  }
 0x41d   :  { %5967 = vmatpush2.bf16.msra.mxu1 %v7729_v2  ;;  %5925 = vmatprep.subr.bf16.mxu0 %v7734_v3  ;;  %v7801_v2 = vld [vmem:[#allocation12 + $0x748] ss:$28 sps:$4 sm:$0xff]   ;;  %v7806_v3 = vld [vmem:[#allocation12 + $0x394] ss:$28 sps:$4 sm:$0xff]  }
 0x41e   :  { %5968 = vmatprep.subr.bf16.mxu1 %v7737_v4  ;;  %v7809_v4 = vld [vmem:[#allocation12 + $0x714] ss:$28 sps:$4 sm:$0xff]  }
 0x420   :  { %5926 = vmatpush2.bf16.msra.mxu0 %v7732_v5  ;;  %v7804_v5 = vld [vmem:[#allocation12 + $0x390] ss:$28 sps:$4 sm:$0xff]  }
 0x421   :  { %5969 = vmatpush2.bf16.msra.mxu1 %v7735_v8  ;;  %5927 = vmatprep.subr.bf16.mxu0 %v7740_v9  ;;  %v7807_v8 = vld [vmem:[#allocation12 + $0x710] ss:$28 sps:$4 sm:$0xff]   ;;  %v7812_v9 = vld [vmem:[#allocation12 + $0x6dc] ss:$28 sps:$4 sm:$0xff]  }
 0x422   :  { %5970 = vmatprep.subr.bf16.mxu1 %v7743_v11  ;;  %v7815_v11 = vld [vmem:[#allocation12 + $0xa5c] ss:$28 sps:$4 sm:$0xff]  }
 0x424   :  { %5928 = vmatpush2.bf16.msra.mxu0 %v7738_v12  ;;  %v7810_v12 = vld [vmem:[#allocation12 + $0x6d8] ss:$28 sps:$4 sm:$0xff]  }
 0x425   :  { %5971 = vmatpush2.bf16.msra.mxu1 %v7741_v14  ;;  %5929 = vmatprep.subr.bf16.mxu0 %v7746_v19  ;;  %v7813_v14 = vld [vmem:[#allocation12 + $0xa58] ss:$28 sps:$4 sm:$0xff]   ;;  %v7818_v19 = vld [vmem:[#allocation12 + $0x6a4] ss:$28 sps:$4 sm:$0xff]  }
 0x426   :  { %5972 = vmatprep.subr.bf16.mxu1 %v7749_v20  ;;  %v7821_v20 = vld [vmem:[#allocation12 + $0xa24] ss:$28 sps:$4 sm:$0xff]  }
 0x428   :  { %5930 = vmatpush2.bf16.msra.mxu0 %v7744_v21  ;;  %v7816_v21 = vld [vmem:[#allocation12 + $0x6a0] ss:$28 sps:$4 sm:$0xff]  }
 0x429   :  { %5973 = vmatpush2.bf16.msra.mxu1 %v7747_v24  ;;  %5931 = vmatprep.subr.bf16.mxu0 %v7752_v22  ;;  %v7819_v24 = vld [vmem:[#allocation12 + $0xa20] ss:$28 sps:$4 sm:$0xff]   ;;  %v7824_v22 = vld [vmem:[#allocation12 + $0x66c] ss:$28 sps:$4 sm:$0xff]  }
 0x42a   :  { %5974 = vmatprep.subr.bf16.mxu1 %v7755_v31  ;;  %v7827_v31 = vld [vmem:[#allocation12 + $0x9ec] ss:$28 sps:$4 sm:$0xff]  }
 0x42c   :  { %5932 = vmatpush2.bf16.msra.mxu0 %v7750_v32  ;;  %v7822_v32 = vld [vmem:[#allocation12 + $0x668] ss:$28 sps:$4 sm:$0xff]  }
 0x42d   :  { %5975 = vmatpush2.bf16.msra.mxu1 %v7753_v29  ;;  %5933 = vmatprep.subr.bf16.mxu0 %v7758_v25  ;;  %v7825_v29 = vld [vmem:[#allocation12 + $0x9e8] ss:$28 sps:$4 sm:$0xff]   ;;  %v7830_v25 = vld [vmem:[#allocation12 + $0x634] ss:$28 sps:$4 sm:$0xff]  }
 0x42e   :  { %5976 = vmatprep.subr.bf16.mxu1 %v7761_v33  ;;  %v7833_v33 = vld [vmem:[#allocation12 + $0x9b4] ss:$28 sps:$4 sm:$0xff]  }
 0x430   :  { %5934 = vmatpush2.bf16.msra.mxu0 %v7756_v34  ;;  %v5636_v34 = vpop.f32.mrf.mxu1 }
 0x431   :  { %5977 = vmatpush2.bf16.msra.mxu1 %v7759_v35  ;;  %5989 = vmatprep.subr.bf16.mxu0 %v7764_v36  ;;  %v7828_v35 = vld [vmem:[#allocation12 + $0x630] ss:$28 sps:$4 sm:$0xff]  }
 0x432   :  { %6032 = vmatprep.subr.bf16.mxu1 %v7767_v37  ;;  %v7831_v36 = vld [vmem:[#allocation12 + $0x9b0] ss:$28 sps:$4 sm:$0xff]   ;;  %v7836_v37 = vld [vmem:[#allocation12 + $0x5fc] ss:$28 sps:$4 sm:$0xff]  }
 0x433   :  { %5936 = vmatmul.mubr.bf16.vlgmr.msra.gmra.mxu0 %v8363_v58 }
 0x434   :  { %5979 = vmatmul.mubr.bf16.vlgmr.msra.gmra.mxu1 %v8327_v45  ;;  %5990 = vmatpush1.bf16.msra.mxu0 %v7762_v38  ;;  %v7839_v38 = vld [vmem:[#allocation12 + $0x97c] ss:$28 sps:$4 sm:$0xff]  }
 0x435   :  { %6021 = vmatprep.mubr.bf16.mxu0 %v8334_v13  ;;  %6033 = vmatpush1.bf16.msra.mxu1 %v7765_v23  ;;  %v5638_v23 = vpop.f32.mrf.mxu1 }
 0x436   :  { %6064 = vmatprep.mubr.bf16.mxu1 %v8348_v16  ;;  %5991 = vmatprep.subr.bf16.mxu0 %v7770_v39  ;;  %v7834_v39 = vld [vmem:[#allocation12 + $0x5f8] ss:$28 sps:$4 sm:$0xff]  }
 0x437   :  { %6034 = vmatprep.subr.bf16.mxu1 %v7773_v40  ;;  %v7837_v40 = vld [vmem:[#allocation12 + $0x978] ss:$28 sps:$4 sm:$0xff]  }
 0x438   :  { %5992 = vmatpush1.bf16.msra.mxu0 %v7768_v41  ;;  %v7842_v41 = vld [vmem:[#allocation12 + $0x5c4] ss:$28 sps:$4 sm:$0xff]  }
 0x439   :  { %6035 = vmatpush1.bf16.msra.mxu1 %v7771_v10  ;;  %5993 = vmatprep.subr.bf16.mxu0 %v7776_v42  ;;  %v7845_v10 = vld [vmem:[#allocation12 + $0x944] ss:$28 sps:$4 sm:$0xff]   ;;  %v5640_v42 = vpop.f32.mrf.mxu1 }
 0x43a   :  { %6036 = vmatprep.subr.bf16.mxu1 %v7779_v15  ;;  %v7840_v15 = vld [vmem:[#allocation12 + $0x5c0] ss:$28 sps:$4 sm:$0xff]  }
 0x43c   :  { %5994 = vmatpush1.bf16.msra.mxu0 %v7774_v43  ;;  %v5679_v43 = vpop.f32.mrf.mxu0 }
 0x43d   :  { %6037 = vmatpush1.bf16.msra.mxu1 %v7777_v26  ;;  %5995 = vmatprep.subr.bf16.mxu0 %v7782_v46  ;;  %v7843_v26 = vld [vmem:[#allocation12 + $0x940] ss:$28 sps:$4 sm:$0xff]   ;;  %v7848_v46 = vld [vmem:[#allocation12 + $0x58c] ss:$28 sps:$4 sm:$0xff]  }
 0x43e   :  { %6038 = vmatprep.subr.bf16.mxu1 %v7785_v47  ;;  %v7851_v47 = vld [vmem:[#allocation12 + $0x90c] ss:$28 sps:$4 sm:$0xff]  }
 0x440   :  { %5996 = vmatpush1.bf16.msra.mxu0 %v7780_v49  ;;  %v8378_v49 = vld [vmem:[#allocation13] sm:$0xff] }
 0x441   :  { %6039 = vmatpush1.bf16.msra.mxu1 %v7783_v50  ;;  %5997 = vmatprep.subr.bf16.mxu0 %v7788_v51  ;;  %v5642_v50 = vpop.f32.mrf.mxu1  ;;  %v7846_v51 = vld [vmem:[#allocation12 + $0x588] ss:$28 sps:$4 sm:$0xff]  }
 0x442   :  { %6040 = vmatprep.subr.bf16.mxu1 %v7791_v52  ;;  %v5681_v52 = vpop.f32.mrf.mxu0 }
 0x444   :  { %5998 = vmatpush1.bf16.msra.mxu0 %v7786_v56  ;;  %v5722_v56 = vpop.f32.mrf.mxu1 }
 0x445   :  { %6041 = vmatpush1.bf16.msra.mxu1 %v7789_v57  ;;  %5999 = vmatprep.subr.bf16.mxu0 %v7794_v59  ;;  %v7849_v57 = vld [vmem:[#allocation12 + $0x908] ss:$28 sps:$4 sm:$0xff]   ;;  %v7854_v59 = vld [vmem:[#allocation12 + $0x554] ss:$28 sps:$4 sm:$0xff]  }
 0x446   :  { %6042 = vmatprep.subr.bf16.mxu1 %v7797_v60  ;;  %v3266_v60 = vrot.slane %v8378_v49, %v8265_v28  ;;  %v7858_v28 = vld [vmem:[#allocation12 + $0xc18] ss:$28 sps:$4 sm:$0xff]  }
 0x448   :  { %6000 = vmatpush1.bf16.msra.mxu0 %v7792_v61  ;;  %v7857_v61 = vld [vmem:[#allocation12 + $0x8d4] ss:$28 sps:$4 sm:$0xff]  }
 0x449   :  { %6043 = vmatpush1.bf16.msra.mxu1 %v7795_v62  ;;  %6001 = vmatprep.subr.bf16.mxu0 %v7800_v63  ;;  %v3270_v62 = vrot.slane %v8378_v49, %v8268_v30  ;;  %v7852_v63 = vld [vmem:[#allocation12 + $0x550] ss:$28 sps:$4 sm:$0xff]   ;;  %v7862_v30 = vld [vmem:[#allocation12 + $0x1a0] ss:$28 sps:$4 sm:$0xff]  }
 0x44a   :  { %6044 = vmatprep.subr.bf16.mxu1 %v7803_v0  ;;  %v5683_v0 = vpop.f32.mrf.mxu0 }
 0x44c   :  { %6002 = vmatpush1.bf16.msra.mxu0 %v7798_v1  ;;  %v5724_v1 = vpop.f32.mrf.mxu1 }
 0x44d   :  { %6045 = vmatpush1.bf16.msra.mxu1 %v7801_v2  ;;  %6003 = vmatprep.subr.bf16.mxu0 %v7806_v3  ;;  %v7855_v2 = vld [vmem:[#allocation12 + $0x8d0] ss:$28 sps:$4 sm:$0xff]   ;;  %v7860_v3 = vld [vmem:[#allocation12 + $0xc1c] ss:$28 sps:$4 sm:$0xff]  }
 0x44e   :  { %6046 = vmatprep.subr.bf16.mxu1 %v7809_v4  ;;  %v5637_v4 = vadd.f32 %v5636_v34, %v3266_v60 }
 0x450   :  { %6004 = vmatpush1.bf16.msra.mxu0 %v7804_v5  ;;  %v7861_v5 = vld [vmem:[#allocation12 + $0x360] ss:$28 sps:$4 sm:$0xff]  }
 0x451   :  { %6047 = vmatpush1.bf16.msra.mxu1 %v7807_v8  ;;  %6005 = vmatprep.subr.bf16.mxu0 %v7812_v9  ;;  %v5639_v8 = vadd.f32 %v5638_v23, %v3270_v62  ;;  %v5680_v9 = vadd.f32 %v5679_v43, %v5637_v4 }
 0x452   :  { %6048 = vmatprep.subr.bf16.mxu1 %v7815_v11  ;;  %v5685_v11 = vpop.f32.mrf.mxu0 }
 0x454   :  { %6006 = vmatpush2.bf16.msra.mxu0 %v7810_v12  ;;  %v5726_v12 = vpop.f32.mrf.mxu1 }
 0x455   :  { %6049 = vmatpush2.bf16.msra.mxu1 %v7813_v14  ;;  %6007 = vmatprep.subr.bf16.mxu0 %v7818_v19  ;;  %v5641_v14 = vadd.f32 %v5640_v42, %v3266_v60  ;;  %v5682_v19 = vadd.f32 %v5681_v52, %v5639_v8  ;;  %v7880_v52 = vld [vmem:[#allocation12 + $0xb3c] ss:$28 sps:$4 sm:$0xff]   ;;  %v7885_v60 = vld [vmem:[#allocation12 + $0xb04] ss:$28 sps:$4 sm:$0xff]  }
 0x456   :  { %6050 = vmatprep.subr.bf16.mxu1 %v7821_v20  ;;  %v5723_v20 = vadd.f32 %v5722_v56, %v5680_v9  ;;  %v5728_v34 = vpop.f32.mrf.mxu1  ;;  %v7881_v56 = vld [vmem:[#allocation12 + $0x280] ss:$28 sps:$4 sm:$0xff]   ;;  %v7892_v9 = vld [vmem:[#allocation12 + $0x50] ss:$28 sps:$4 sm:$0xff]  }
 0x458   :  { %6008 = vmatpush2.bf16.msra.mxu0 %v7816_v21  ;;  %v7865_v21 = vld [vmem:[#allocation12 + $0xbe4] ss:$28 sps:$4 sm:$0xff]  }
 0x459   :  { %6051 = vmatpush2.bf16.msra.mxu1 %v7819_v24  ;;  %6009 = vmatprep.subr.bf16.mxu0 %v7824_v22  ;;  %v5643_v24 = vadd.f32 %v5642_v50, %v3270_v62  ;;  %v7876_v50 = vld [vmem:[#allocation12 + $0x2b8] ss:$28 sps:$4 sm:$0xff]  }
 0x45a   :  { %6052 = vmatprep.subr.bf16.mxu1 %v7827_v31  ;;  %v7866_v31 = vld [vmem:[#allocation12 + $0x328] ss:$28 sps:$4 sm:$0xff]  }
 0x45c   :  { %6010 = vmatpush2.bf16.msra.mxu0 %v7822_v32  ;;  %v5684_v32 = vadd.f32 %v5683_v0, %v5641_v14  ;;  %v7900_v14 = vld [vmem:[#allocation12 + $0xddc] ss:$28 sps:$4 sm:$0xff]  }
 0x45d   :  { %6053 = vmatpush2.bf16.msra.mxu1 %v7825_v29  ;;  %6011 = vmatprep.subr.bf16.mxu0 %v7830_v25  ;;  %v5725_v29 = vadd.f32 %v5724_v1, %v5682_v19  ;;  %v7887_v1 = vld [vmem:[#allocation12 + $0x88] ss:$28 sps:$4 sm:$0xff]   ;;  %v7901_v19 = vld [vmem:[#allocation12 + $0xa60] ss:$28 sps:$4 sm:$0xff]  }
 0x45e   :  { %6054 = vmatprep.subr.bf16.mxu1 %v7833_v33  ;;  %v7863_v33 = vld [vmem:[#allocation12 + $0xbe0] ss:$28 sps:$4 sm:$0xff]   ;;  %v5727_v23 = vadd.f32 %v5726_v12, %v5684_v32  ;;  %v7893_v12 = vld [vmem:[#allocation12 + $0xa90] ss:$28 sps:$4 sm:$0xff]   ;;  %v7907_v32 = vld [vmem:[#allocation12 + $0x868] ss:$28 sps:$4 sm:$0xff]  }
 0x460   :  { %6012 = vmatpush2.bf16.msra.mxu0 %v7828_v35 }
 0x461   :  { %6055 = vmatpush2.bf16.msra.mxu1 %v7831_v36  ;;  %6013 = vmatprep.subr.bf16.mxu0 %v7836_v37  ;;  %v7867_v36 = vld [vmem:[#allocation12 + $0x168] ss:$28 sps:$4 sm:$0xff]  }
 0x462   :  { %6056 = vmatprep.subr.bf16.mxu1 %v7839_v38  ;;  %v7870_v37 = vld [vmem:[#allocation12 + $0xbac] ss:$28 sps:$4 sm:$0xff]   ;;  %v5686_v38 = vadd.f32 %v5685_v11, %v5643_v24  ;;  %v7896_v11 = vld [vmem:[#allocation12 + $0x1d8] ss:$28 sps:$4 sm:$0xff]   ;;  %v7905_v24 = vld [vmem:[#allocation12 + $0xda4] ss:$28 sps:$4 sm:$0xff]  }
 0x464   :  { %6014 = vmatpush2.bf16.msra.mxu0 %v7834_v39 }
 0x465   :  { %6057 = vmatpush2.bf16.msra.mxu1 %v7837_v40  ;;  %6015 = vmatprep.subr.bf16.mxu0 %v7842_v41  ;;  %v7871_v40 = vld [vmem:[#allocation12 + $0x2f0] ss:$28 sps:$4 sm:$0xff]  }
 0x466   :  { %6058 = vmatprep.subr.bf16.mxu1 %v7845_v10  ;;  %v5729_v10 = vadd.f32 %v5728_v34, %v5686_v38  ;;  %v7912_v34 = vld [vmem:[#allocation12 + $0x830] ss:$28 sps:$4 sm:$0xff]   ;;  %v7920_v38 = vld [vmem:[#allocation12 + $0xcfc] ss:$28 sps:$4 sm:$0xff]  }
 0x468   :  { %6016 = vmatpush2.bf16.msra.mxu0 %v7840_v15  ;;  %v7868_v15 = vld [vmem:[#allocation12 + $0xba8] ss:$28 sps:$4 sm:$0xff]  }
 0x469   :  { %6059 = vmatpush2.bf16.msra.mxu1 %v7843_v26  ;;  %6017 = vmatprep.subr.bf16.mxu0 %v7848_v46  ;;  %v7872_v26 = vld [vmem:[#allocation12 + $0x130] ss:$28 sps:$4 sm:$0xff]  }
 0x46a   :  { %6060 = vmatprep.subr.bf16.mxu1 %v7851_v47  ;;  %v7875_v46 = vld [vmem:[#allocation12 + $0xb74] ss:$28 sps:$4 sm:$0xff]  }
 0x46c   :  { %6018 = vmatpush2.bf16.msra.mxu0 %v7846_v51  ;;  %v7877_v51 = vld [vmem:[#allocation12 + $0xf8] ss:$28 sps:$4 sm:$0xff]  }
 0x46d   :  { %6061 = vmatpush2.bf16.msra.mxu1 %v7849_v57  ;;  %6019 = vmatprep.subr.bf16.mxu0 %v7854_v59  ;;  %v7878_v57 = vld [vmem:[#allocation12 + $0xb38] ss:$28 sps:$4 sm:$0xff]   ;;  %v7882_v59 = vld [vmem:[#allocation12 + $0xc0] ss:$28 sps:$4 sm:$0xff]  }
 0x46e   :  { %6062 = vmatprep.subr.bf16.mxu1 %v7857_v61  ;;  %v7886_v61 = vld [vmem:[#allocation12 + $0x248] ss:$28 sps:$4 sm:$0xff]  }
 0x470   :  { %6020 = vmatpush2.bf16.msra.mxu0 %v7852_v63  ;;  %v7883_v63 = vld [vmem:[#allocation12 + $0xb00] ss:$28 sps:$4 sm:$0xff]  }
 0x471   :  { %6063 = vmatpush2.bf16.msra.mxu1 %v7855_v2  ;;  %6075 = vmatprep.subr.bf16.mxu0 %v7860_v3  ;;  %v7890_v2 = vld [vmem:[#allocation12 + $0xacc] ss:$28 sps:$4 sm:$0xff]  }
 0x472   :  { %7104 = vmatprep.subr.bf16.mxu1 %v7861_v5  ;;  %v7891_v3 = vld [vmem:[#allocation12 + $0x210] ss:$28 sps:$4 sm:$0xff]   ;;  %v7888_v5 = vld [vmem:[#allocation12 + $0xac8] ss:$28 sps:$4 sm:$0xff]  }
 0x473   :  { %6022 = vmatmul.mubr.bf16.vlgmr.msra.gmra.mxu0 %v8336_v18  ;;  %v5765_v22 = vpop.f32.mrf.mxu0 }
 0x474   :  { %6065 = vmatmul.mubr.bf16.vlgmr.msra.gmra.mxu1 %v8350_v48  ;;  %v5766_v25 = vadd.f32 %v5765_v22, %v5723_v20  ;;  %6076 = vmatpush1.bf16.msra.mxu0 %v7858_v28  ;;  %v7895_v28 = vld [vmem:[#allocation12 + $0xa94] ss:$28 sps:$4 sm:$0xff]   ;;  %v7906_v22 = vld [vmem:[#allocation12 + $0xa28] ss:$28 sps:$4 sm:$0xff]  }
 0x475   :  { %6107 = vmatprep.mubr.bf16.mxu0 %v8361_v55  ;;  %7105 = vmatpush3.bf16.msra.mxu1 %v7862_v30  ;;  %v5767_v35 = vpop.f32.mrf.mxu0  ;;  %v7897_v30 = vld [vmem:[#allocation12 + $0x18] ss:$28 sps:$4 sm:$0xff]  }
 0x476   :  { %7970 = vtanh.f32 %v5766_v25  ;;  %6150 = vmatprep.mubr.bf16.mxu1 %v8318_v44  ;;  %v5768_v39 = vadd.f32 %v5767_v35, %v5725_v29  ;;  %6077 = vmatprep.subr.bf16.mxu0 %v7865_v21  ;;  %v7873_v44 = vld [vmem:[#allocation12 + $0xb70] ss:$28 sps:$4 sm:$0xff]   ;;  %v7898_v20 = vld [vmem:[#allocation12 + $0xdd8] ss:$28 sps:$4 sm:$0xff]   ;;  %v7902_v21 = vld [vmem:[#allocation12 + $0x8a0] ss:$28 sps:$4 sm:$0xff]  }
 0x477   :  { %7106 = vmatprep.subr.bf16.mxu1 %v7866_v31  ;;  %v5769_v41 = vpop.f32.mrf.mxu0  ;;  %v7903_v31 = vld [vmem:[#allocation12 + $0xda0] ss:$28 sps:$4 sm:$0xff]   ;;  %v7910_v29 = vld [vmem:[#allocation12 + $0xd6c] ss:$28 sps:$4 sm:$0xff]   ;;  %v7915_v35 = vld [vmem:[#allocation12 + $0xd34] ss:$28 sps:$4 sm:$0xff]  }
 0x478   :  { %7972 = vtanh.f32 %v5768_v39  ;;  %v5770_v42 = vadd.f32 %v5769_v41, %v5727_v23  ;;  %6078 = vmatpush1.bf16.msra.mxu0 %v7863_v33  ;;  %v7911_v25 = vld [vmem:[#allocation12 + $0x9f0] ss:$28 sps:$4 sm:$0xff]   ;;  %v7908_v33 = vld [vmem:[#allocation12 + $0xd68] ss:$28 sps:$4 sm:$0xff]   ;;  %v7918_v23 = vld [vmem:[#allocation12 + $0xcf8] ss:$28 sps:$4 sm:$0xff]  }
 0x479   :  { %7107 = vmatpush3.bf16.msra.mxu1 %v7867_v36  ;;  %v5771_v43 = vpop.f32.mrf.mxu0  ;;  %6079 = vmatprep.subr.bf16.mxu0 %v7870_v37  ;;  %v7916_v36 = vld [vmem:[#allocation12 + $0x9b8] ss:$28 sps:$4 sm:$0xff]   ;;  %v7922_v39 = vld [vmem:[#allocation12 + $0x7c0] ss:$28 sps:$4 sm:$0xff]   ;;  %v7926_v41 = vld [vmem:[#allocation12 + $0x948] ss:$28 sps:$4 sm:$0xff]  }
 0x47a   :  { %7974 = vtanh.f32 %v5770_v42  ;;  %v5772_v47 = vadd.f32 %v5771_v43, %v5729_v10  ;;  %7108 = vmatprep.subr.bf16.mxu1 %v7871_v40  ;;  %v7917_v37 = vld [vmem:[#allocation12 + $0x7f8] ss:$28 sps:$4 sm:$0xff]   ;;  %v7925_v40 = vld [vmem:[#allocation12 + $0xcc4] ss:$28 sps:$4 sm:$0xff]   ;;  %v7931_v43 = vld [vmem:[#allocation12 + $0x910] ss:$28 sps:$4 sm:$0xff]  }
 0x47b   :  { %v7923_v10 = vld [vmem:[#allocation12 + $0xcc0] ss:$28 sps:$4 sm:$0xff]   ;;  %v7927_v42 = vld [vmem:[#allocation12 + $0x788] ss:$28 sps:$4 sm:$0xff]  }
 0x47c   :  { %7976 = vtanh.f32 %v5772_v47  ;;  %6080 = vmatpush1.bf16.msra.mxu0 %v7868_v15  ;;  %v7930_v15 = vld [vmem:[#allocation12 + $0xc8c] ss:$28 sps:$4 sm:$0xff]   ;;  %v7935_v47 = vld [vmem:[#allocation12 + $0xc54] ss:$28 sps:$4 sm:$0xff]  }
 0x47d   :  { %7109 = vmatpush3.bf16.msra.mxu1 %v7872_v26  ;;  %6081 = vmatprep.subr.bf16.mxu0 %v7875_v46  ;;  %v7928_v26 = vld [vmem:[#allocation12 + $0xc88] ss:$28 sps:$4 sm:$0xff]   ;;  %v7932_v46 = vld [vmem:[#allocation12 + $0x750] ss:$28 sps:$4 sm:$0xff]  }
 0x47e   :  { %7110 = vmatprep.subr.bf16.mxu1 %v7876_v50  ;;  %v7936_v50 = vld [vmem:[#allocation12 + $0x8d8] ss:$28 sps:$4 sm:$0xff]  }
 0x480   :  { %6082 = vmatpush1.bf16.msra.mxu0 %v7873_v44  ;;  %v7933_v44 = vld [vmem:[#allocation12 + $0xc50] ss:$28 sps:$4 sm:$0xff]  }
 0x481   :  { %7111 = vmatpush3.bf16.msra.mxu1 %v7877_v51  ;;  %6083 = vmatprep.subr.bf16.mxu0 %v7880_v52  ;;  %v7937_v51 = vld [vmem:[#allocation12 + $0x718] ss:$28 sps:$4 sm:$0xff]   ;;  %v7938_v52 = vld [vmem:[#allocation12 + $0x6e0] ss:$28 sps:$4 sm:$0xff]  }
 0x482   :  { %7112 = vmatprep.subr.bf16.mxu1 %v7881_v56  ;;  %v7939_v56 = vld [vmem:[#allocation12 + $0x520] ss:$28 sps:$4 sm:$0xff]  }
 0x483   :  { %v7971_v62 = vpop.eup %7970 }
 0x484   :  { %6296 = vst [vmem:[%s8460_s9] sm:$0xff] %v7971_v62  ;;  %6084 = vmatpush1.bf16.msra.mxu0 %v7878_v57  ;;  %v7940_v57 = vld [vmem:[#allocation12 + $0x6a8] ss:$28 sps:$4 sm:$0xff]   ;;  %v7944_v62 = vld [vmem:[#allocation12 + $0x638] ss:$28 sps:$4 sm:$0xff]  }
 0x485   :  { %v7973_v0 = vpop.eup %7972  ;;  %7113 = vmatpush3.bf16.msra.mxu1 %v7882_v59  ;;  %6085 = vmatprep.subr.bf16.mxu0 %v7885_v60  ;;  %v7941_v59 = vld [vmem:[#allocation12 + $0x4e8] ss:$28 sps:$4 sm:$0xff]   ;;  %v7942_v60 = vld [vmem:[#allocation12 + $0x670] ss:$28 sps:$4 sm:$0xff]  }
 0x486   :  { %6297 = vst [vmem:[%s8460_s9 + $0x8] sm:$0xff] %v7973_v0  ;;  %7114 = vmatprep.subr.bf16.mxu1 %v7886_v61  ;;  %v7943_v61 = vld [vmem:[#allocation12 + $0x4b0] ss:$28 sps:$4 sm:$0xff]   ;;  %v7946_v0 = vld [vmem:[#allocation12 + $0x600] ss:$28 sps:$4 sm:$0xff]  }
 0x487   :  { %v7975_v4 = vpop.eup %7974 }
 0x488   :  { %6303 = vst [vmem:[%s8460_s9 + $0x38] sm:$0xff] %v7975_v4  ;;  %6086 = vmatpush1.bf16.msra.mxu0 %v7883_v63  ;;  %v7945_v63 = vld [vmem:[#allocation12 + $0x478] ss:$28 sps:$4 sm:$0xff]  }
 0x489   :  { %v7977_v8 = vpop.eup %7976  ;;  %7115 = vmatpush3.bf16.msra.mxu1 %v7887_v1  ;;  %6087 = vmatprep.subr.bf16.mxu0 %v7890_v2  ;;  %v7947_v1 = vld [vmem:[#allocation12 + $0x440] ss:$28 sps:$4 sm:$0xff]   ;;  %v7948_v2 = vld [vmem:[#allocation12 + $0x5c8] ss:$28 sps:$4 sm:$0xff]   ;;  %v7952_v4 = vld [vmem:[#allocation12 + $0x558] ss:$28 sps:$4 sm:$0xff]  }
 0x48a   :  { %6304 = vst [vmem:[%s8460_s9 + $0x40] sm:$0xff] %v7977_v8  ;;  %7116 = vmatprep.subr.bf16.mxu1 %v7891_v3  ;;  %v7950_v3 = vld [vmem:[#allocation12 + $0x590] ss:$28 sps:$4 sm:$0xff]   ;;  %v7954_v8 = vld [vmem:[#allocation12 + $0xde0] ss:$28 sps:$4 sm:$0xff]  }
 0x48c   :  { %6088 = vmatpush1.bf16.msra.mxu0 %v7888_v5  ;;  %v7953_v5 = vld [vmem:[#allocation12 + $0x398] ss:$28 sps:$4 sm:$0xff]  }
 0x48d   :  { %7117 = vmatpush3.bf16.msra.mxu1 %v7892_v9  ;;  %6089 = vmatprep.subr.bf16.mxu0 %v7895_v28  ;;  %v7955_v9 = vld [vmem:[#allocation12 + $0xc20] ss:$28 sps:$4 sm:$0xff]   ;;  %v7956_v28 = vld [vmem:[#allocation12 + $0xda8] ss:$28 sps:$4 sm:$0xff]  }
 0x48e   :  { %7118 = vmatprep.subr.bf16.mxu1 %v7896_v11  ;;  %v7957_v11 = vld [vmem:[#allocation12 + $0xbe8] ss:$28 sps:$4 sm:$0xff]  }
 0x490   :  { %6090 = vmatpush1.bf16.msra.mxu0 %v7893_v12  ;;  %v7958_v12 = vld [vmem:[#allocation12 + $0xd70] ss:$28 sps:$4 sm:$0xff]  }
 0x491   :  { %7119 = vmatpush3.bf16.msra.mxu1 %v7897_v30  ;;  %6091 = vmatprep.subr.bf16.mxu0 %v7900_v14  ;;  %v7959_v30 = vld [vmem:[#allocation12 + $0xbb0] ss:$28 sps:$4 sm:$0xff]   ;;  %v7960_v14 = vld [vmem:[#allocation12 + $0xd38] ss:$28 sps:$4 sm:$0xff]  }
 0x492   :  { %7148 = vmatprep.subr.bf16.mxu1 %v7901_v19  ;;  %v7961_v19 = vld [vmem:[#allocation12 + $0xb78] ss:$28 sps:$4 sm:$0xff]  }
 0x494   :  { %6151 = vmatmul.mubr.bf16.vlgmr.msra.gmra.mxu1 %v8327_v45  ;;  %6092 = vmatpush2.bf16.msra.mxu0 %v7898_v20  ;;  %v7913_v45 = vld [vmem:[#allocation12 + $0xd30] ss:$28 sps:$4 sm:$0xff]   ;;  %v5808_v20 = vpop.f32.mrf.mxu1 }
 0x495   :  { %7149 = vmatpush3.bf16.msra.mxu1 %v7902_v21  ;;  %6232 = vmatprep.mubr.bf16.mxu1 %v8348_v16  ;;  %v7921_v16 = vld [vmem:[#allocation12 + $0x980] ss:$28 sps:$4 sm:$0xff]  }
 0x496   :  { %6093 = vmatprep.subr.bf16.mxu0 %v7905_v24  ;;  %7150 = vmatprep.subr.bf16.mxu1 %v7906_v22  ;;  %v7962_v21 = vld [vmem:[#allocation12 + $0xd00] ss:$28 sps:$4 sm:$0xff]   ;;  %v5810_v22 = vpop.f32.mrf.mxu1 }
 0x497   :  { %v7963_v24 = vld [vmem:[#allocation12 + $0xb40] ss:$28 sps:$4 sm:$0xff]  }
 0x498   :  { %6094 = vmatpush2.bf16.msra.mxu0 %v7903_v31  ;;  %v7965_v31 = vld [vmem:[#allocation12 + $0xb08] ss:$28 sps:$4 sm:$0xff]  }
 0x499   :  { %7151 = vmatpush3.bf16.msra.mxu1 %v7907_v32  ;;  %6095 = vmatprep.subr.bf16.mxu0 %v7910_v29  ;;  %v7966_v29 = vld [vmem:[#allocation12 + $0xc90] ss:$28 sps:$4 sm:$0xff]  }
 0x49a   :  { %7152 = vmatprep.subr.bf16.mxu1 %v7911_v25  ;;  %v3274_v25 = vrot.slane %v8378_v49, %v8276_v54 }
 0x49c   :  { %6096 = vmatpush2.bf16.msra.mxu0 %v7908_v33  ;;  %v7967_v33 = vld [vmem:[#allocation12 + $0xad0] ss:$28 sps:$4 sm:$0xff]  }
 0x49d   :  { %7153 = vmatpush3.bf16.msra.mxu1 %v7912_v34  ;;  %6097 = vmatprep.subr.bf16.mxu0 %v7915_v35 }
 0x49e   :  { %7154 = vmatprep.subr.bf16.mxu1 %v7916_v36  ;;  %v7968_v36 = vld [vmem:[#allocation12 + $0xc58] ss:$28 sps:$4 sm:$0xff]  }
 0x4a0   :  { %6098 = vmatpush2.bf16.msra.mxu0 %v7913_v45  ;;  %v3278_v45 = vrot.slane %v8378_v49, %v8273_v53 }
 0x4a1   :  { %7155 = vmatpush3.bf16.msra.mxu1 %v7917_v37  ;;  %6099 = vmatprep.subr.bf16.mxu0 %v7920_v38  ;;  %v5809_v38 = vadd.f32 %v5808_v20, %v3274_v25 }
 0x4a2   :  { %7156 = vmatprep.subr.bf16.mxu1 %v7921_v16  ;;  %v7969_v16 = vld [vmem:[#allocation12 + $0xa98] ss:$28 sps:$4 sm:$0xff]  }
 0x4a4   :  { %6100 = vmatpush2.bf16.msra.mxu0 %v7918_v23 }
 0x4a5   :  { %7157 = vmatpush3.bf16.msra.mxu1 %v7922_v39  ;;  %6101 = vmatprep.subr.bf16.mxu0 %v7925_v40  ;;  %v5811_v39 = vadd.f32 %v5810_v22, %v3278_v45 }
 0x4a6   :  { %7158 = vmatprep.subr.bf16.mxu1 %v7926_v41 }
 0x4a8   :  { %6102 = vmatpush2.bf16.msra.mxu0 %v7923_v10 }
 0x4a9   :  { %7159 = vmatpush3.bf16.msra.mxu1 %v7927_v42  ;;  %6103 = vmatprep.subr.bf16.mxu0 %v7930_v15 }
 0x4aa   :  { %7160 = vmatprep.subr.bf16.mxu1 %v7931_v43 }
 0x4ac   :  { %6104 = vmatpush2.bf16.msra.mxu0 %v7928_v26 }
 0x4ad   :  { %7161 = vmatpush3.bf16.msra.mxu1 %v7932_v46  ;;  %6105 = vmatprep.subr.bf16.mxu0 %v7935_v47 }
 0x4ae   :  { %7162 = vmatprep.subr.bf16.mxu1 %v7936_v50 }
 0x4b0   :  { %6106 = vmatpush2.bf16.msra.mxu0 %v7933_v44 }
 0x4b1   :  { %7163 = vmatpush3.bf16.msra.mxu1 %v7937_v51  ;;  %7126 = vmatprep.subr.bf16.mxu0 %v7938_v52 }
 0x4b3   :  { %6108 = vmatmul.mubr.bf16.vlgmr.msra.gmra.mxu0 %v8363_v58  ;;  %v5851_v32 = vpop.f32.mrf.mxu0 }
 0x4b4   :  { %6233 = vmatmul.mubr.bf16.vlgmr.msra.gmra.mxu1 %v8350_v48  ;;  %7127 = vmatpush3.bf16.msra.mxu0 %v7939_v56  ;;  %v7949_v48 = vld [vmem:[#allocation12 + $0x408] ss:$28 sps:$4 sm:$0xff]   ;;  %v5852_v40 = vadd.f32 %v5851_v32, %v5809_v38 }
 0x4b5   :  { %6191 = vmatprep.mubr.bf16.mxu0 %v8334_v13  ;;  %7128 = vmatprep.subr.bf16.mxu0 %v7940_v57  ;;  %v7951_v13 = vld [vmem:[#allocation12 + $0x3d0] ss:$28 sps:$4 sm:$0xff]   ;;  %v5853_v35 = vpop.f32.mrf.mxu0 }
 0x4b6   :  { %v5854_v54 = vadd.f32 %v5853_v35, %v5811_v39 }
 0x4b7   :  { %v5855_v23 = vpop.f32.mrf.mxu0 }
 0x4b8   :  { %7129 = vmatpush3.bf16.msra.mxu0 %v7941_v59 }
 0x4b9   :  { %7130 = vmatprep.subr.bf16.mxu0 %v7942_v60  ;;  %v5857_v42 = vpop.f32.mrf.mxu0 }
 0x4bc   :  { %7131 = vmatpush3.bf16.msra.mxu0 %v7943_v61 }
 0x4bd   :  { %7132 = vmatprep.subr.bf16.mxu0 %v7944_v62 }
 0x4c0   :  { %7133 = vmatpush3.bf16.msra.mxu0 %v7945_v63 }
 0x4c1   :  { %7134 = vmatprep.subr.bf16.mxu0 %v7946_v0 }
 0x4c4   :  { %7135 = vmatpush3.bf16.msra.mxu0 %v7947_v1 }
 0x4c5   :  { %7136 = vmatprep.subr.bf16.mxu0 %v7948_v2 }
 0x4c8   :  { %7137 = vmatpush3.bf16.msra.mxu0 %v7949_v48 }
 0x4c9   :  { %7138 = vmatprep.subr.bf16.mxu0 %v7950_v3 }
 0x4cc   :  { %7139 = vmatpush3.bf16.msra.mxu0 %v7951_v13 }
 0x4cd   :  { %7140 = vmatprep.subr.bf16.mxu0 %v7952_v4 }
 0x4d0   :  { %7141 = vmatpush3.bf16.msra.mxu0 %v7953_v5  ;;  %v3282_v5 = vrot.slane %v8378_v49, %v1079_v7 }
 0x4d1   :  { %7170 = vmatprep.subr.bf16.mxu0 %v7954_v8 }
 0x4d3   :  { %6192 = vmatmul.mubr.bf16.vlgmr.msra.gmra.mxu0 %v8336_v18  ;;  %v7964_v18 = vld [vmem:[#allocation12 + $0xcc8] ss:$28 sps:$4 sm:$0xff]  }
 0x4d4   :  { %7171 = vmatpush3.bf16.msra.mxu0 %v7955_v9  ;;  %6273 = vmatprep.mubr.bf16.mxu0 %v8361_v55  ;;  %v5812_v55 = vpop.f32.mrf.mxu1 }
 0x4d5   :  { %7172 = vmatprep.subr.bf16.mxu0 %v7956_v28  ;;  %v5813_v10 = vadd.f32 %v5812_v55, %v3274_v25  ;;  %v3286_v28 = vrot.slane %v8378_v49, %v1083_v6 }
 0x4d6   :  { %v5814_v34 = vpop.f32.mrf.mxu1 }
 0x4d7   :  { %v5815_v15 = vadd.f32 %v5814_v34, %v3278_v45  ;;  %v5856_v26 = vadd.f32 %v5855_v23, %v5813_v10 }
 0x4d8   :  { %7173 = vmatpush3.bf16.msra.mxu0 %v7957_v11  ;;  %v5894_v37 = vpop.f32.mrf.mxu1 }
 0x4d9   :  { %7174 = vmatprep.subr.bf16.mxu0 %v7958_v12  ;;  %v5895_v43 = vadd.f32 %v5894_v37, %v5852_v40  ;;  %v5858_v50 = vadd.f32 %v5857_v42, %v5815_v15 }
 0x4da   :  { %v5896_v41 = vpop.f32.mrf.mxu1 }
 0x4db   :  { %v5897_v53 = vadd.f32 %v5896_v41, %v5854_v54 }
 0x4dc   :  { %7175 = vmatpush3.bf16.msra.mxu0 %v7959_v30  ;;  %v5898_v46 = vpop.f32.mrf.mxu1 }
 0x4dd   :  { %7176 = vmatprep.subr.bf16.mxu0 %v7960_v14  ;;  %v5899_v52 = vadd.f32 %v5898_v46, %v5856_v26 }
 0x4de   :  { %v5900_v57 = vpop.f32.mrf.mxu1 }
 0x4df   :  { %v5901_v60 = vadd.f32 %v5900_v57, %v5858_v50  ;;  %v3290_v50 = vrot.slane %v8378_v49, %v1087_v17 }
 0x4e0   :  { %7177 = vmatpush3.bf16.msra.mxu0 %v7961_v19 }
 0x4e1   :  { %7178 = vmatprep.subr.bf16.mxu0 %v7962_v21 }
 0x4e4   :  { %7179 = vmatpush3.bf16.msra.mxu0 %v7963_v24 }
 0x4e5   :  { %7180 = vmatprep.subr.bf16.mxu0 %v7964_v18 }
 0x4e8   :  { %7181 = vmatpush3.bf16.msra.mxu0 %v7965_v31 }
 0x4e9   :  { %7182 = vmatprep.subr.bf16.mxu0 %v7966_v29 }
 0x4ec   :  { %7183 = vmatpush3.bf16.msra.mxu0 %v7967_v33 }
 0x4ed   :  { %7184 = vmatprep.subr.bf16.mxu0 %v7968_v36 }
 0x4f0   :  { %7185 = vmatpush3.bf16.msra.mxu0 %v7969_v16 }
 0x4f3   :  { %v5937_v47 = vpop.f32.mrf.mxu0  ;;  %6274 = vmatmul.mubr.bf16.vlgmr.msra.gmra.mxu0 %v8363_v58 }
 0x4f4   :  { %v5938_v44 = vadd.f32 %v5937_v47, %v5895_v43  ;;  %v5980_v48 = vpop.f32.mrf.mxu1 }
 0x4f5   :  { %v5939_v51 = vpop.f32.mrf.mxu0  ;;  %v5981_v12 = vadd.f32 %v5980_v48, %v3282_v5 }
 0x4f6   :  { %7978 = vtanh.f32 %v5938_v44  ;;  %v5940_v56 = vadd.f32 %v5939_v51, %v5897_v53  ;;  %v5982_v3 = vpop.f32.mrf.mxu1 }
 0x4f7   :  { %v5941_v59 = vpop.f32.mrf.mxu0  ;;  %v5983_v14 = vadd.f32 %v5982_v3, %v3286_v28 }
 0x4f8   :  { %7980 = vtanh.f32 %v5940_v56  ;;  %v5942_v61 = vadd.f32 %v5941_v59, %v5899_v52  ;;  %v5984_v13 = vpop.f32.mrf.mxu1 }
 0x4f9   :  { %v5943_v62 = vpop.f32.mrf.mxu0  ;;  %v5985_v21 = vadd.f32 %v5984_v13, %v3282_v5 }
 0x4fa   :  { %7982 = vtanh.f32 %v5942_v61  ;;  %v5944_v63 = vadd.f32 %v5943_v62, %v5901_v60  ;;  %v5986_v8 = vpop.f32.mrf.mxu1 }
 0x4fb   :  { %v5987_v18 = vadd.f32 %v5986_v8, %v3286_v28 }
 0x4fc   :  { %7984 = vtanh.f32 %v5944_v63 }
 0x503   :  { %v7979_v0 = vpop.eup %7978 }
 0x504   :  { %6298 = vst [vmem:[%s8460_s9 + $0x10] sm:$0xff] %v7979_v0 }
 0x505   :  { %v7981_v58 = vpop.eup %7980 }
 0x506   :  { %6299 = vst [vmem:[%s8460_s9 + $0x18] sm:$0xff] %v7981_v58 }
 0x507   :  { %v7983_v1 = vpop.eup %7982 }
 0x508   :  { %6305 = vst [vmem:[%s8460_s9 + $0x48] sm:$0xff] %v7983_v1 }
 0x509   :  { %v7985_v2 = vpop.eup %7984 }
 0x50a   :  { %6306 = vst [vmem:[%s8460_s9 + $0x50] sm:$0xff] %v7985_v2 }
 0x533   :  { %v6023_v4 = vpop.f32.mrf.mxu0 }
 0x534   :  { %v6066_v11 = vpop.f32.mrf.mxu1  ;;  %v6024_v19 = vadd.f32 %v6023_v4, %v5981_v12 }
 0x535   :  { %v6025_v9 = vpop.f32.mrf.mxu0 }
 0x536   :  { %v6068_v20 = vpop.f32.mrf.mxu1  ;;  %v6026_v24 = vadd.f32 %v6025_v9, %v5983_v14  ;;  %v6067_v31 = vadd.f32 %v6066_v11, %v6024_v19 }
 0x537   :  { %v6027_v30 = vpop.f32.mrf.mxu0 }
 0x538   :  { %v6028_v55 = vadd.f32 %v6027_v30, %v5985_v21  ;;  %v6070_v32 = vpop.f32.mrf.mxu1  ;;  %v6069_v29 = vadd.f32 %v6068_v20, %v6026_v24 }
 0x539   :  { %v6029_v22 = vpop.f32.mrf.mxu0 }
 0x53a   :  { %v6030_v25 = vadd.f32 %v6029_v22, %v5987_v18  ;;  %v6071_v35 = vadd.f32 %v6070_v32, %v6028_v55  ;;  %v6072_v36 = vpop.f32.mrf.mxu1 }
 0x53c   :  { %v6073_v37 = vadd.f32 %v6072_v36, %v6030_v25 }
 0x554   :  { %v7120_v54 = vpop.f32.mrf.mxu1 }
 0x556   :  { %v7121_v42 = vpop.f32.mrf.mxu1 }
 0x557   :  { %v7122_v44 = vadd.f32 %v7121_v42, %v7120_v54 }
 0x558   :  { %v7123_v15 = vpop.f32.mrf.mxu1 }
 0x559   :  { %v6153_v57 = vadd.f32 %v7122_v44, %v3290_v50 }
 0x55a   :  { %v7124_v26 = vpop.f32.mrf.mxu1 }
 0x55b   :  { %v7125_v59 = vadd.f32 %v7124_v26, %v7123_v15 }
 0x55d   :  { %v6156_v0 = vadd.f32 %v7125_v59, %v3290_v50 }
 0x573   :  { %v6109_v7 = vpop.f32.mrf.mxu0 }
 0x574   :  { %v6110_v33 = vadd.f32 %v6109_v7, %v6067_v31  ;;  %v7164_v47 = vpop.f32.mrf.mxu1 }
 0x575   :  { %v6111_v34 = vpop.f32.mrf.mxu0 }
 0x576   :  { %7986 = vtanh.f32 %v6110_v33  ;;  %v6112_v6 = vadd.f32 %v6111_v34, %v6069_v29  ;;  %v7165_v51 = vpop.f32.mrf.mxu1 }
 0x577   :  { %v6113_v45 = vpop.f32.mrf.mxu0  ;;  %v7166_v58 = vadd.f32 %v7165_v51, %v7164_v47 }
 0x578   :  { %7988 = vtanh.f32 %v6112_v6  ;;  %v6114_v38 = vadd.f32 %v6113_v45, %v6071_v35  ;;  %v7167_v60 = vpop.f32.mrf.mxu1 }
 0x579   :  { %v6115_v16 = vpop.f32.mrf.mxu0 }
 0x57a   :  { %7990 = vtanh.f32 %v6114_v38  ;;  %v6116_v23 = vadd.f32 %v6115_v16, %v6073_v37  ;;  %v7168_v1 = vpop.f32.mrf.mxu1 }
 0x57b   :  { %v7169_v4 = vadd.f32 %v7168_v1, %v7167_v60 }
 0x57c   :  { %7992 = vtanh.f32 %v6116_v23 }
 0x583   :  { %v7987_v39 = vpop.eup %7986 }
 0x584   :  { %6300 = vst [vmem:[%s8460_s9 + $0x20] sm:$0xff] %v7987_v39 }
 0x585   :  { %v7989_v40 = vpop.eup %7988 }
 0x586   :  { %6301 = vst [vmem:[%s8460_s9 + $0x28] sm:$0xff] %v7989_v40 }
 0x587   :  { %v7991_v41 = vpop.eup %7990 }
 0x588   :  { %6307 = vst [vmem:[%s8460_s9 + $0x58] sm:$0xff] %v7991_v41 }
 0x589   :  { %v7993_v10 = vpop.eup %7992 }
 0x58a   :  { %6308 = vst [vmem:[%s8460_s9 + $0x60] sm:$0xff] %v7993_v10 }
 0x593   :  { %v7142_v43 = vpop.f32.mrf.mxu0 }
 0x595   :  { %v7143_v46 = vpop.f32.mrf.mxu0 }
 0x596   :  { %v7144_v52 = vadd.f32 %v7143_v46, %v7142_v43 }
 0x597   :  { %v7145_v53 = vpop.f32.mrf.mxu0 }
 0x598   :  { %v6194_v61 = vadd.f32 %v7144_v52, %v6153_v57 }
 0x599   :  { %v7146_v56 = vpop.f32.mrf.mxu0 }
 0x59a   :  { %v7147_v62 = vadd.f32 %v7146_v56, %v7145_v53  ;;  %v6235_v3 = vadd.f32 %v7166_v58, %v6194_v61 }
 0x59c   :  { %v6197_v48 = vadd.f32 %v7147_v62, %v6156_v0 }
 0x59e   :  { %v6238_v5 = vadd.f32 %v7169_v4, %v6197_v48 }
 0x5b3   :  { %v7186_v63 = vpop.f32.mrf.mxu0 }
 0x5b5   :  { %v7187_v2 = vpop.f32.mrf.mxu0 }
 0x5b6   :  { %v7188_v13 = vadd.f32 %v7187_v2, %v7186_v63 }
 0x5b7   :  { %v7189_v27 = vpop.f32.mrf.mxu0 }
 0x5b8   :  { %v6276_v17 = vadd.f32 %v7188_v13, %v6235_v3 }
 0x5b9   :  { %v7190_v49 = vpop.f32.mrf.mxu0 }
 0x5ba   :  { %7994 = vtanh.f32 %v6276_v17  ;;  %v7191_v8 = vadd.f32 %v7190_v49, %v7189_v27 }
 0x5bc   :  { %v6279_v9 = vadd.f32 %v7191_v8, %v6238_v5 }
 0x5be   :  { %7996 = vtanh.f32 %v6279_v9 }
 0x5c7   :  { %v7995_v28 = vpop.eup %7994 }
 0x5c8   :  { %6302 = vst [vmem:[%s8460_s9 + $0x30] sm:$0xff] %v7995_v28 }
 0x5cb   :  { %v7997_v11 = vpop.eup %7996 }
 0x5cc   :  { %6309 = vst [vmem:[%s8460_s9 + $0x68] sm:$0xff] %v7997_v11 }
 0x5cd   :  { %6314 = vsyncpa [#allocation3], 1 }
 0x5ce   :  { %6315 = vsyncpa [#allocation5], 1 }
 0x5cf   :  { %6316 = vsyncpa [#allocation8], 1 }
 0x5d0   :  { %6317 = vsyncpa [#allocation11], 1 }
 0x5d1   :  { %6318 = vsyncpa [#allocation14], 1 }

</bundles_post_ra>
